<compile_context>
chip_gen: v6e
topology: v6e:2x2x1
jax: 0.10.0
libtpu: 0.0.40
codegen_flags: <defaults>
</compile_context>

<pallas_src>
import functools
import math

import jax
import jax.numpy as jnp
from jax.experimental import pallas as pl
from jax.experimental.pallas import tpu as pltpu


def _round_up(x, m):
    return ((x + m - 1) // m) * m


def _pick_tile(M, tmax, align=8):
    """Largest tile <= tmax (aligned); ensure >=2 grid blocks when M allows so the
    'parallel' axis can be split across v7x's 2 TensorCores."""
    t = min(tmax, _round_up(M, align))
    if M > align and pl.cdiv(M, t) < 2:
        t = _round_up(pl.cdiv(M, 2), align)
    return t


_GELU_C = math.sqrt(2.0 / math.pi)


def _apply_activation(y, activation):
    if activation == "relu":
        return jnp.maximum(y, 0.0)
    if activation == "gelu":
        # tanh-approx GELU (EUP-friendly; swap for exact erf if bit parity is needed)
        return 0.5 * y * (1.0 + jnp.tanh(_GELU_C * (y + 0.044715 * y * y * y)))
    return y


# ----------------------------- Pallas kernels ------------------------------

def _matmul_kernel(x_ref, w_ref, b_ref, o_ref, acc_ref, *, activation):
    @pl.when(pl.program_id(2) == 0)
    def _():
        acc_ref[...] = jnp.zeros_like(acc_ref)

    acc_ref[...] += jnp.dot(x_ref[...], w_ref[...],
                            preferred_element_type=jnp.float32)

    @pl.when(pl.program_id(2) == pl.num_programs(2) - 1)
    def _():
        y = acc_ref[...] + b_ref[...].astype(jnp.float32)
        o_ref[...] = _apply_activation(y, activation).astype(o_ref.dtype)


def pallas_linear(x, w, b, activation="none", *, tm=256, tn=512, tk=512,
                  out_dtype=jnp.bfloat16):
    """y = act(x @ w + b).  Grid (M, N, K): M/N 'parallel', K last/'arbitrary' with a
    f32 VMEM accumulator.  K is only tiled when a tile divides it exactly (no runtime
    activation padding)."""
    M, K = x.shape
    N = w.shape[1]
    tm = _pick_tile(M, tm)
    tn = min(tn, N)
    if K % tk != 0:
        tk = K
        for cand in (1024, 512, 384, 256, 128):
            if K > cand and K % cand == 0:
                tk = cand
                break
    grid = (pl.cdiv(M, tm), pl.cdiv(N, tn), K // tk)
    return pl.pallas_call(
        functools.partial(_matmul_kernel, activation=activation),
        grid=grid,
        in_specs=[
            pl.BlockSpec((tm, tk), lambda i, j, k: (i, k)),
            pl.BlockSpec((tk, tn), lambda i, j, k: (k, j)),
            pl.BlockSpec((1, tn), lambda i, j, k: (0, j)),
        ],
        out_specs=pl.BlockSpec((tm, tn), lambda i, j, k: (i, j)),
        out_shape=jax.ShapeDtypeStruct((M, N), out_dtype),
        scratch_shapes=[pltpu.VMEM((tm, tn), jnp.float32)],
        compiler_params=pltpu.CompilerParams(
            dimension_semantics=("parallel", "parallel", "arbitrary")),
    )(x, w, b.reshape(1, N))


def _mha_kernel(x_ref, wqkv_ref, bqkv_ref, wo_ref, bo_ref, o_ref, *,
                num_heads, scale):
    """Fused multi-head self-attention over a group of sequences:
    QKV projection -> per-head softmax(QK^T)V -> out projection, all in VMEM."""
    g, S, D = x_ref.shape
    hd = D // num_heads
    x2 = x_ref[...].reshape(g * S, D)                               # bf16
    qkv = (jnp.dot(x2, wqkv_ref[...], preferred_element_type=jnp.float32)
           + bqkv_ref[...].astype(jnp.float32))                     # (g*S, 3D) f32
    qkv = qkv.reshape(g, S, 3 * D)
    heads = []
    for h in range(num_heads):                                       # static unroll
        q = qkv[:, :, h * hd:(h + 1) * hd]
        k = qkv[:, :, D + h * hd:D + (h + 1) * hd]
        v = qkv[:, :, 2 * D + h * hd:2 * D + (h + 1) * hd]
        s = jnp.einsum("gqd,gkd->gqk", q, k,
                       preferred_element_type=jnp.float32) * scale
        m = jnp.max(s, axis=-1, keepdims=True)
        p = jnp.exp(s - m)
        l = jnp.sum(p, axis=-1, keepdims=True)
        o = jnp.einsum("gqk,gkd->gqd", p, v,
                       preferred_element_type=jnp.float32)
        heads.append(o / l)                                          # exact reciprocal
    attn = jnp.concatenate(heads, axis=-1).reshape(g * S, D)
    out = (jnp.dot(attn.astype(jnp.bfloat16), wo_ref[...],
                   preferred_element_type=jnp.float32)
           + bo_ref[...].astype(jnp.float32))
    o_ref[...] = out.reshape(g, S, D).astype(o_ref.dtype)


def pallas_mha(x, p, num_heads, *, group=8):
    """x: (R, S, D) -> (R, S, D); blocks are (g, S, D) so the last dim stays lane-dense."""
    R, S, D = x.shape
    scale = 1.0 / math.sqrt(D // num_heads)
    g = _pick_tile(R, group, align=1)
    grid = (pl.cdiv(R, g),)
    blk = pl.BlockSpec((g, S, D), lambda i: (i, 0, 0))
    return pl.pallas_call(
        functools.partial(_mha_kernel, num_heads=num_heads, scale=scale),
        grid=grid,
        in_specs=[
            blk,
            pl.BlockSpec((D, 3 * D), lambda i: (0, 0)),
            pl.BlockSpec((1, 3 * D), lambda i: (0, 0)),
            pl.BlockSpec((D, D), lambda i: (0, 0)),
            pl.BlockSpec((1, D), lambda i: (0, 0)),
        ],
        out_specs=blk,
        out_shape=jax.ShapeDtypeStruct((R, S, D), jnp.bfloat16),
        compiler_params=pltpu.CompilerParams(dimension_semantics=("parallel",)),
    )(x, p["wqkv"], p["bqkv"].reshape(1, 3 * D), p["wo"], p["bo"].reshape(1, D))


def _add_ln_kernel(x_ref, y_ref, g_ref, b_ref, o_ref, *, eps):
    x = x_ref[...].astype(jnp.float32) + y_ref[...].astype(jnp.float32)
    mu = jnp.mean(x, axis=-1, keepdims=True)
    var = jnp.mean(jnp.square(x - mu), axis=-1, keepdims=True)
    xn = (x - mu) * jax.lax.rsqrt(var + eps)
    o_ref[...] = (xn * g_ref[...] + b_ref[...]).astype(o_ref.dtype)


def pallas_add_layernorm(x, y, g, b, eps=1e-5, *, tm=512):
    """LayerNorm(x + y) over the last dim, fused residual add; stats in f32."""
    M, D = x.shape
    tm = _pick_tile(M, tm)
    grid = (pl.cdiv(M, tm),)
    blk = pl.BlockSpec((tm, D), lambda i: (i, 0))
    vec = pl.BlockSpec((1, D), lambda i: (0, 0))
    return pl.pallas_call(
        functools.partial(_add_ln_kernel, eps=eps),
        grid=grid,
        in_specs=[blk, blk, vec, vec],
        out_specs=blk,
        out_shape=jax.ShapeDtypeStruct((M, D), jnp.bfloat16),
        compiler_params=pltpu.CompilerParams(dimension_semantics=("parallel",)),
    )(x, y, g.reshape(1, D), b.reshape(1, D))


def _ffn_kernel(x_ref, w1_ref, b1_ref, w2_ref, b2_ref, o_ref):
    x = x_ref[...]                                                   # (tm, D) bf16
    h = (jnp.dot(x, w1_ref[...], preferred_element_type=jnp.float32)
         + b1_ref[...].astype(jnp.float32))
    h = jnp.maximum(h, 0.0).astype(jnp.bfloat16)
    y = (jnp.dot(h, w2_ref[...], preferred_element_type=jnp.float32)
         + b2_ref[...].astype(jnp.float32))
    o_ref[...] = (x.astype(jnp.float32) + y).astype(o_ref.dtype)


def pallas_ffn_residual(x, w1, b1, w2, b2, *, tm=256):
    """x + Linear(ReLU(Linear(x))): the (tm, dim_feedforward) intermediate stays in
    VMEM.  tm<=256 keeps the fused block inside v5e's 16 MiB scoped / v7x's 64 MiB."""
    M, D = x.shape
    F = w1.shape[1]
    tm = _pick_tile(M, tm)
    grid = (pl.cdiv(M, tm),)
    return pl.pallas_call(
        _ffn_kernel,
        grid=grid,
        in_specs=[
            pl.BlockSpec((tm, D), lambda i: (i, 0)),
            pl.BlockSpec((D, F), lambda i: (0, 0)),
            pl.BlockSpec((1, F), lambda i: (0, 0)),
            pl.BlockSpec((F, D), lambda i: (0, 0)),
            pl.BlockSpec((1, D), lambda i: (0, 0)),
        ],
        out_specs=pl.BlockSpec((tm, D), lambda i: (i, 0)),
        out_shape=jax.ShapeDtypeStruct((M, D), jnp.bfloat16),
        compiler_params=pltpu.CompilerParams(dimension_semantics=("parallel",)),
    )(x, w1, b1.reshape(1, F), w2, b2.reshape(1, D))


def _ln_linear_kernel(x_ref, g_ref, b_ref, w_ref, bias_ref, o_ref, *, eps):
    x = x_ref[...].astype(jnp.float32)
    mu = jnp.mean(x, axis=-1, keepdims=True)
    var = jnp.mean(jnp.square(x - mu), axis=-1, keepdims=True)
    xn = (x - mu) * jax.lax.rsqrt(var + eps) * g_ref[...] + b_ref[...]
    o_ref[...] = (jnp.dot(xn, w_ref[...], preferred_element_type=jnp.float32)
                  + bias_ref[...]).astype(o_ref.dtype)


def pallas_ln_linear(x, g, b, w, bias, eps=1e-5):
    """Fused classifier head Linear(LayerNorm(x)); x: (B, D) -> (B, num_classes)."""
    M, D = x.shape
    N = w.shape[1]
    return pl.pallas_call(
        functools.partial(_ln_linear_kernel, eps=eps),
        out_shape=jax.ShapeDtypeStruct((M, N), jnp.float32),
    )(x, g.reshape(1, D), b.reshape(1, D), w, bias.reshape(1, N))


# ------------------------------- model glue --------------------------------

def im2col_nhwc(x, kh, kw, sh, sw):
    """x: (B, H, W, C) -> (B*OH*OW, kh*kw*C); feature order (dy, dx, c)."""
    B, H, W, C = x.shape
    OH = (H - kh) // sh + 1
    OW = (W - kw) // sw + 1
    cols = []
    for dy in range(kh):
        for dx in range(kw):
            cols.append(x[:, dy:dy + sh * OH:sh, dx:dx + sw * OW:sw, :])
    cols = jnp.stack(cols, axis=3)                     # (B, OH, OW, kh*kw, C)
    return cols.reshape(B * OH * OW, kh * kw * C), OH, OW


def conv2d_gelu_nhwc(x, wmat, b, kh, kw, stride):
    """Per-frame Conv (time kernel of 1 dropped) + GELU via im2col + tiled matmul.
    Stays NHWC so no layout transposes are needed."""
    B = x.shape[0]
    OUT = wmat.shape[1]
    cols, OH, OW = im2col_nhwc(x, kh, kw, stride, stride)
    y = pallas_linear(cols.astype(jnp.bfloat16), wmat, b, activation="gelu")
    return y.reshape(B, OH, OW, OUT)


def maxpool2x2_nhwc(x):
    """MaxPool3d kernel (1,2,2) stride (1,2,2), floor mode, per-frame, NHWC."""
    B, H, W, C = x.shape
    H2, W2 = H // 2, W // 2
    x = x[:, : H2 * 2, : W2 * 2, :]
    return jnp.max(x.reshape(B, H2, 2, W2, 2, C), axis=(2, 4))


def sinusoidal_pe(length, d):
    pos = jnp.arange(length, dtype=jnp.float32)[:, None]
    i = jnp.arange(0, d, 2, dtype=jnp.float32)
    div = jnp.exp(-math.log(10000.0) * i / d)
    pe = jnp.zeros((length, d), jnp.float32)
    pe = pe.at[:, 0::2].set(jnp.sin(pos * div))
    pe = pe.at[:, 1::2].set(jnp.cos(pos * div))
    return pe


def spatial_temporal_attention(x, p, num_heads):
    """Divided space-time attention: attend over patches, then over frames."""
    B, T, N, D = x.shape
    a = pallas_mha(x.reshape(B * T, N, D), p["spatial"], num_heads)
    at = a.reshape(B, T, N, D).transpose(0, 2, 1, 3).reshape(B * N, T, D)
    a = pallas_mha(at, p["temporal"], num_heads)
    return a.reshape(B, N, T, D).transpose(0, 2, 1, 3)               # (B, T, N, D)


def encoder_layer(x, p, num_heads):
    B, T, N, D = x.shape
    rows = B * T * N
    attn_out = spatial_temporal_attention(x, p, num_heads)
    # src = LayerNorm(x + dropout(attn_out))        (dropout: eval-mode identity)
    src = pallas_add_layernorm(x.reshape(rows, D), attn_out.reshape(rows, D),
                               p["ln1_g"], p["ln1_b"])
    # src + dropout(ffn(src))                       (dropout: eval-mode identity)
    out = pallas_ffn_residual(src, p["ffn_w1"], p["ffn_b1"],
                              p["ffn_w2"], p["ffn_b2"])
    return out.reshape(B, T, N, D)


def video_transformer_forward(params, x, *, num_heads):
    # x: (B, T, 3, H, W)
    B, T, C, H, W = x.shape
    # channels-last per-frame layout; activations carried in bf16 from here on
    xf = x.astype(jnp.bfloat16).transpose(0, 1, 3, 4, 2).reshape(B * T, H, W, C)
    # patch_embedding: Conv3d(1,5,5)/s(1,3,3)+GELU+MaxPool(1,2,2),
    #                  Conv3d(1,3,3)/s(1,2,2)+GELU+MaxPool(1,2,2)
    xf = conv2d_gelu_nhwc(xf, params["conv1_wmat"], params["conv1_b"], 5, 5, 3)
    xf = maxpool2x2_nhwc(xf)
    xf = conv2d_gelu_nhwc(xf, params["conv2_wmat"], params["conv2_b"], 3, 3, 2)
    xf = maxpool2x2_nhwc(xf)
    Hp, Wp, D = xf.shape[1], xf.shape[2], xf.shape[3]
    N = Hp * Wp
    # flatten(3).permute(0,2,3,1) == plain reshape in NHWC -> (B, T, N, D)
    x = xf.reshape(B, T, N, D)
    # positional encoding (temporal + spatial, additive sinusoidal)
    x = (x.astype(jnp.float32)
         + params["pe_t"][None, :, None, :]
         + params["pe_n"][None, None, :, :]).astype(jnp.bfloat16)
    for layer in params["layers"]:
        x = encoder_layer(x, layer, num_heads)
    x = x.astype(jnp.float32).mean(axis=1).mean(axis=1)              # (B, D)
    return pallas_ln_linear(x, params["cls_ln_g"], params["cls_ln_b"],
                            params["cls_w"], params["cls_b"])


# ----------------------------- parameter init ------------------------------

def _conv_wmat(w):
    """PyTorch (OUT, C, kh, kw) conv weight -> (kh*kw*C, OUT) matmul weight (bf16),
    matching im2col's (dy, dx, c) feature order. Done once at init (no runtime pad)."""
    OUT, C, kh, kw = w.shape
    return jnp.transpose(w, (2, 3, 1, 0)).reshape(kh * kw * C, OUT).astype(jnp.bfloat16)


def init_params(key, *, d_model, dim_feedforward, num_layers, num_classes,
                num_frames, embedded_hw):
    keys = iter(jax.random.split(key, 512))

    def nrm(shape, scale=0.02, dtype=jnp.bfloat16):
        return (scale * jax.random.normal(next(keys), shape, jnp.float32)).astype(dtype)

    def attn_block():
        return {
            "wqkv": nrm((d_model, 3 * d_model)),
            "bqkv": jnp.zeros((3 * d_model,), jnp.float32),
            "wo": nrm((d_model, d_model)),
            "bo": jnp.zeros((d_model,), jnp.float32),
        }

    layers = []
    for _ in range(num_layers):
        layers.append({
            "spatial": attn_block(),
            "temporal": attn_block(),
            "ln1_g": jnp.ones((d_model,), jnp.float32),
            "ln1_b": jnp.zeros((d_model,), jnp.float32),
            "ffn_w1": nrm((d_model, dim_feedforward)),
            "ffn_b1": jnp.zeros((dim_feedforward,), jnp.float32),
            "ffn_w2": nrm((dim_feedforward, d_model)),
            "ffn_b2": jnp.zeros((d_model,), jnp.float32),
        })

    conv1_w = 0.02 * jax.random.normal(next(keys), (d_model, 3, 5, 5), jnp.float32)
    conv2_w = 0.02 * jax.random.normal(next(keys), (d_model, d_model, 3, 3), jnp.float32)

    return {
        "conv1_wmat": _conv_wmat(conv1_w),
        "conv1_b": jnp.zeros((d_model,), jnp.float32),
        "conv2_wmat": _conv_wmat(conv2_w),
        "conv2_b": jnp.zeros((d_model,), jnp.float32),
        "pe_t": sinusoidal_pe(num_frames, d_model),
        "pe_n": sinusoidal_pe(embedded_hw, d_model),
        "layers": layers,
        "cls_ln_g": jnp.ones((d_model,), jnp.float32),
        "cls_ln_b": jnp.zeros((d_model,), jnp.float32),
        "cls_w": nrm((d_model, num_classes), dtype=jnp.float32),
        "cls_b": jnp.zeros((num_classes,), jnp.float32),
    }


# ---------------------------------- main ------------------------------------

if __name__ == "__main__":
    # Small config consistent with the module's shape arithmetic.
    batch = 2
    num_frames = 4
    frame_size = 77          # embedded_hw = (((((77-5)//3+1)//2-3)//2+1)//2)**2 = 4
    d_model = 32
    num_heads = 4
    num_layers = 2
    dim_feedforward = 64
    num_classes = 2
    embedded_hw = (((((frame_size - 5) // 3 + 1) // 2 - 3) // 2 + 1) // 2) ** 2

    key = jax.random.PRNGKey(0)
    k_param, k_input = jax.random.split(key)
    params = init_params(
        k_param,
        d_model=d_model, dim_feedforward=dim_feedforward, num_layers=num_layers,
        num_classes=num_classes, num_frames=num_frames, embedded_hw=embedded_hw,
    )

    x = jax.random.normal(k_input, (batch, num_frames, 3, frame_size, frame_size),
                          jnp.float32)

    fwd = jax.jit(functools.partial(video_transformer_forward, num_heads=num_heads))
    logits = fwd(params, x)
    jax.block_until_ready(logits)
    assert logits.shape == (batch, num_classes), logits.shape
    print("KERNEL_OK")
</pallas_src>

<mosaic_0001>
module attributes {stable_mosaic.version = 11 : i64} {
  func.func @_matmul_kernel(%arg0: i32, %arg1: i32, %arg2: i32, %arg3: memref<256x75xbf16, #tpu.memory_space<vmem>>, %arg4: memref<75x32xbf16, #tpu.memory_space<vmem>>, %arg5: memref<1x32xf32, #tpu.memory_space<vmem>>, %arg6: memref<256x32xbf16, #tpu.memory_space<vmem>>, %arg7: memref<256x32xf32, #tpu.memory_space<vmem>>) attributes {dimension_semantics = [#tpu.dimension_semantics<parallel>, #tpu.dimension_semantics<parallel>, #tpu.dimension_semantics<arbitrary>], iteration_bounds = array<i64: 20, 1, 1>, scalar_prefetch = 0 : i64, scratch_operands = 1 : i64, tpu.core_type = #tpu.core_type<tc>, window_params = [{transform_indices = @transform_0, window_bounds = array<i64: 256, 75>}, {transform_indices = @transform_1, window_bounds = array<i64: 75, 32>}, {transform_indices = @transform_2, window_bounds = array<i64: 1, 32>}, {transform_indices = @transform_3, window_bounds = array<i64: 256, 32>}]} {
    %c0_i32 = arith.constant 0 : i32
    %0 = arith.cmpi eq, %arg2, %c0_i32 : i32
    %1 = arith.extui %0 : i1 to i32
    %c0_i32_0 = arith.constant 0 : i32
    %2 = arith.cmpi ne, %1, %c0_i32_0 : i32
    scf.if %2 {
      %cst_10 = arith.constant 0.000000e+00 : f32
      %12 = vector.broadcast %cst_10 : f32 to vector<256x32xf32>
      %c0_11 = arith.constant 0 : index
      %c0_12 = arith.constant 0 : index
      %13 = vector.load %arg7[%c0_11, %c0_12] : memref<256x32xf32, #tpu.memory_space<vmem>>, vector<256x32xf32>
      tpu.vector_store %arg7[%c0_11, %c0_12], %12 {strides = array<i32>} : memref<256x32xf32, #tpu.memory_space<vmem>>, vector<256x32xf32>,
    } else {
    }
    %c0 = arith.constant 0 : index
    %c0_1 = arith.constant 0 : index
    %3 = vector.load %arg7[%c0, %c0_1] : memref<256x32xf32, #tpu.memory_space<vmem>>, vector<256x32xf32>
    %c0_2 = arith.constant 0 : index
    %c0_3 = arith.constant 0 : index
    %4 = vector.load %arg3[%c0_2, %c0_3] : memref<256x75xbf16, #tpu.memory_space<vmem>>, vector<256x75xbf16>
    %c0_4 = arith.constant 0 : index
    %c0_5 = arith.constant 0 : index
    %5 = vector.load %arg4[%c0_4, %c0_5] : memref<75x32xbf16, #tpu.memory_space<vmem>>, vector<75x32xbf16>
    %cst = arith.constant dense<0.000000e+00> : vector<256x32xf32>
    %6 = tpu.matmul %4, %5, %cst {dimension_numbers = #tpu.dot_dimension_numbers<[1], [0], [0], [1], [0, 0, 1, 1], [], []>} : vector<256x75xbf16>, vector<75x32xbf16>, vector<256x32xf32> -> vector<256x32xf32>
    %7 = arith.addf %3, %6 : vector<256x32xf32>
    %c0_6 = arith.constant 0 : index
    %c0_7 = arith.constant 0 : index
    %8 = vector.load %arg7[%c0_6, %c0_7] : memref<256x32xf32, #tpu.memory_space<vmem>>, vector<256x32xf32>
    tpu.vector_store %arg7[%c0_6, %c0_7], %7 {strides = array<i32>} : memref<256x32xf32, #tpu.memory_space<vmem>>, vector<256x32xf32>,
    %c0_i32_8 = arith.constant 0 : i32
    %9 = arith.cmpi eq, %arg2, %c0_i32_8 : i32
    %10 = arith.extui %9 : i1 to i32
    %c0_i32_9 = arith.constant 0 : i32
    %11 = arith.cmpi ne, %10, %c0_i32_9 : i32
    scf.if %11 {
      %c0_10 = arith.constant 0 : index
      %c0_11 = arith.constant 0 : index
      %12 = vector.load %arg7[%c0_10, %c0_11] : memref<256x32xf32, #tpu.memory_space<vmem>>, vector<256x32xf32>
      %c0_12 = arith.constant 0 : index
      %c0_13 = arith.constant 0 : index
      %13 = vector.load %arg5[%c0_12, %c0_13] : memref<1x32xf32, #tpu.memory_space<vmem>>, vector<1x32xf32>
      %14 = vector.broadcast %13 : vector<1x32xf32> to vector<256x32xf32>
      %15 = arith.addf %12, %14 : vector<256x32xf32>
      %cst_14 = arith.constant 5.000000e-01 : f32
      %16 = vector.broadcast %cst_14 : f32 to vector<256x32xf32>
      %17 = arith.mulf %16, %15 : vector<256x32xf32>
      %cst_15 = arith.constant 4.471500e-02 : f32
      %18 = vector.broadcast %cst_15 : f32 to vector<256x32xf32>
      %19 = arith.mulf %18, %15 : vector<256x32xf32>
      %20 = arith.mulf %19, %15 : vector<256x32xf32>
      %21 = arith.mulf %20, %15 : vector<256x32xf32>
      %22 = arith.addf %15, %21 : vector<256x32xf32>
      %cst_16 = arith.constant 0.797884583 : f32
      %23 = vector.broadcast %cst_16 : f32 to vector<256x32xf32>
      %24 = arith.mulf %23, %22 : vector<256x32xf32>
      %25 = math.tanh %24 : vector<256x32xf32>
      %cst_17 = arith.constant 1.000000e+00 : f32
      %26 = vector.broadcast %cst_17 : f32 to vector<256x32xf32>
      %27 = arith.addf %26, %25 : vector<256x32xf32>
      %28 = arith.mulf %17, %27 : vector<256x32xf32>
      %29 = arith.truncf %28 : vector<256x32xf32> to vector<256x32xbf16>
      %c0_18 = arith.constant 0 : index
      %c0_19 = arith.constant 0 : index
      %30 = vector.load %arg6[%c0_18, %c0_19] : memref<256x32xbf16, #tpu.memory_space<vmem>>, vector<256x32xbf16>
      tpu.vector_store %arg6[%c0_18, %c0_19], %29 {strides = array<i32>} : memref<256x32xbf16, #tpu.memory_space<vmem>>, vector<256x32xbf16>,
    } else {
    }
    return
  }
  func.func @transform_0(%arg0: i32, %arg1: i32, %arg2: i32) -> (i32, i32) {
    %c0_i32 = arith.constant 0 : i32
    return %arg0, %arg2 : i32, i32
  }
  func.func @transform_1(%arg0: i32, %arg1: i32, %arg2: i32) -> (i32, i32) {
    %c0_i32 = arith.constant 0 : i32
    return %arg2, %arg1 : i32, i32
  }
  func.func @transform_2(%arg0: i32, %arg1: i32, %arg2: i32) -> (i32, i32) {
    %c0_i32 = arith.constant 0 : i32
    %c0_i32_0 = arith.constant 0 : i32
    return %c0_i32, %arg1 : i32, i32
  }
  func.func @transform_3(%arg0: i32, %arg1: i32, %arg2: i32) -> (i32, i32) {
    %c0_i32 = arith.constant 0 : i32
    return %arg0, %arg1 : i32, i32
  }
}

module attributes {stable_mosaic.version = 11 : i64} {
  func.func @_matmul_kernel(%arg0: i32, %arg1: i32, %arg2: i32, %arg3: memref<104x288xbf16, #tpu.memory_space<vmem>>, %arg4: memref<288x32xbf16, #tpu.memory_space<vmem>>, %arg5: memref<1x32xf32, #tpu.memory_space<vmem>>, %arg6: memref<104x32xbf16, #tpu.memory_space<vmem>>, %arg7: memref<104x32xf32, #tpu.memory_space<vmem>>) attributes {dimension_semantics = [#tpu.dimension_semantics<parallel>, #tpu.dimension_semantics<parallel>, #tpu.dimension_semantics<arbitrary>], iteration_bounds = array<i64: 2, 1, 1>, scalar_prefetch = 0 : i64, scratch_operands = 1 : i64, tpu.core_type = #tpu.core_type<tc>, window_params = [{transform_indices = @transform_0, window_bounds = array<i64: 104, 288>}, {transform_indices = @transform_1, window_bounds = array<i64: 288, 32>}, {transform_indices = @transform_2, window_bounds = array<i64: 1, 32>}, {transform_indices = @transform_3, window_bounds = array<i64: 104, 32>}]} {
    %c0_i32 = arith.constant 0 : i32
    %0 = arith.cmpi eq, %arg2, %c0_i32 : i32
    %1 = arith.extui %0 : i1 to i32
    %c0_i32_0 = arith.constant 0 : i32
    %2 = arith.cmpi ne, %1, %c0_i32_0 : i32
    scf.if %2 {
      %cst_10 = arith.constant 0.000000e+00 : f32
      %12 = vector.broadcast %cst_10 : f32 to vector<104x32xf32>
      %c0_11 = arith.constant 0 : index
      %c0_12 = arith.constant 0 : index
      %13 = vector.load %arg7[%c0_11, %c0_12] : memref<104x32xf32, #tpu.memory_space<vmem>>, vector<104x32xf32>
      tpu.vector_store %arg7[%c0_11, %c0_12], %12 {strides = array<i32>} : memref<104x32xf32, #tpu.memory_space<vmem>>, vector<104x32xf32>,
    } else {
    }
    %c0 = arith.constant 0 : index
    %c0_1 = arith.constant 0 : index
    %3 = vector.load %arg7[%c0, %c0_1] : memref<104x32xf32, #tpu.memory_space<vmem>>, vector<104x32xf32>
    %c0_2 = arith.constant 0 : index
    %c0_3 = arith.constant 0 : index
    %4 = vector.load %arg3[%c0_2, %c0_3] : memref<104x288xbf16, #tpu.memory_space<vmem>>, vector<104x288xbf16>
    %c0_4 = arith.constant 0 : index
    %c0_5 = arith.constant 0 : index
    %5 = vector.load %arg4[%c0_4, %c0_5] : memref<288x32xbf16, #tpu.memory_space<vmem>>, vector<288x32xbf16>
    %cst = arith.constant dense<0.000000e+00> : vector<104x32xf32>
    %6 = tpu.matmul %4, %5, %cst {dimension_numbers = #tpu.dot_dimension_numbers<[1], [0], [0], [1], [0, 0, 1, 1], [], []>} : vector<104x288xbf16>, vector<288x32xbf16>, vector<104x32xf32> -> vector<104x32xf32>
    %7 = arith.addf %3, %6 : vector<104x32xf32>
    %c0_6 = arith.constant 0 : index
    %c0_7 = arith.constant 0 : index
    %8 = vector.load %arg7[%c0_6, %c0_7] : memref<104x32xf32, #tpu.memory_space<vmem>>, vector<104x32xf32>
    tpu.vector_store %arg7[%c0_6, %c0_7], %7 {strides = array<i32>} : memref<104x32xf32, #tpu.memory_space<vmem>>, vector<104x32xf32>,
    %c0_i32_8 = arith.constant 0 : i32
    %9 = arith.cmpi eq, %arg2, %c0_i32_8 : i32
    %10 = arith.extui %9 : i1 to i32
    %c0_i32_9 = arith.constant 0 : i32
    %11 = arith.cmpi ne, %10, %c0_i32_9 : i32
    scf.if %11 {
      %c0_10 = arith.constant 0 : index
      %c0_11 = arith.constant 0 : index
      %12 = vector.load %arg7[%c0_10, %c0_11] : memref<104x32xf32, #tpu.memory_space<vmem>>, vector<104x32xf32>
      %c0_12 = arith.constant 0 : index
      %c0_13 = arith.constant 0 : index
      %13 = vector.load %arg5[%c0_12, %c0_13] : memref<1x32xf32, #tpu.memory_space<vmem>>, vector<1x32xf32>
      %14 = vector.broadcast %13 : vector<1x32xf32> to vector<104x32xf32>
      %15 = arith.addf %12, %14 : vector<104x32xf32>
      %cst_14 = arith.constant 5.000000e-01 : f32
      %16 = vector.broadcast %cst_14 : f32 to vector<104x32xf32>
      %17 = arith.mulf %16, %15 : vector<104x32xf32>
      %cst_15 = arith.constant 4.471500e-02 : f32
      %18 = vector.broadcast %cst_15 : f32 to vector<104x32xf32>
      %19 = arith.mulf %18, %15 : vector<104x32xf32>
      %20 = arith.mulf %19, %15 : vector<104x32xf32>
      %21 = arith.mulf %20, %15 : vector<104x32xf32>
      %22 = arith.addf %15, %21 : vector<104x32xf32>
      %cst_16 = arith.constant 0.797884583 : f32
      %23 = vector.broadcast %cst_16 : f32 to vector<104x32xf32>
      %24 = arith.mulf %23, %22 : vector<104x32xf32>
      %25 = math.tanh %24 : vector<104x32xf32>
      %cst_17 = arith.constant 1.000000e+00 : f32
      %26 = vector.broadcast %cst_17 : f32 to vector<104x32xf32>
      %27 = arith.addf %26, %25 : vector<104x32xf32>
      %28 = arith.mulf %17, %27 : vector<104x32xf32>
      %29 = arith.truncf %28 : vector<104x32xf32> to vector<104x32xbf16>
      %c0_18 = arith.constant 0 : index
      %c0_19 = arith.constant 0 : index
      %30 = vector.load %arg6[%c0_18, %c0_19] : memref<104x32xbf16, #tpu.memory_space<vmem>>, vector<104x32xbf16>
      tpu.vector_store %arg6[%c0_18, %c0_19], %29 {strides = array<i32>} : memref<104x32xbf16, #tpu.memory_space<vmem>>, vector<104x32xbf16>,
    } else {
    }
    return
  }
  func.func @transform_0(%arg0: i32, %arg1: i32, %arg2: i32) -> (i32, i32) {
    %c0_i32 = arith.constant 0 : i32
    return %arg0, %arg2 : i32, i32
  }
  func.func @transform_1(%arg0: i32, %arg1: i32, %arg2: i32) -> (i32, i32) {
    %c0_i32 = arith.constant 0 : i32
    return %arg2, %arg1 : i32, i32
  }
  func.func @transform_2(%arg0: i32, %arg1: i32, %arg2: i32) -> (i32, i32) {
    %c0_i32 = arith.constant 0 : i32
    %c0_i32_0 = arith.constant 0 : i32
    return %c0_i32, %arg1 : i32, i32
  }
  func.func @transform_3(%arg0: i32, %arg1: i32, %arg2: i32) -> (i32, i32) {
    %c0_i32 = arith.constant 0 : i32
    return %arg0, %arg1 : i32, i32
  }
}

module attributes {stable_mosaic.version = 11 : i64} {
  func.func @_mha_kernel(%arg0: i32, %arg1: memref<4x4x32xbf16, #tpu.memory_space<vmem>>, %arg2: memref<32x96xbf16, #tpu.memory_space<vmem>>, %arg3: memref<1x96xf32, #tpu.memory_space<vmem>>, %arg4: memref<32x32xbf16, #tpu.memory_space<vmem>>, %arg5: memref<1x32xf32, #tpu.memory_space<vmem>>, %arg6: memref<4x4x32xbf16, #tpu.memory_space<vmem>>) attributes {dimension_semantics = [#tpu.dimension_semantics<parallel>], iteration_bounds = array<i64: 2>, scalar_prefetch = 0 : i64, scratch_operands = 0 : i64, tpu.core_type = #tpu.core_type<tc>, window_params = [{transform_indices = @transform_0, window_bounds = array<i64: 4, 4, 32>}, {pipeline_mode = #tpu.pipeline_mode<synchronous>, transform_indices = @transform_1, window_bounds = array<i64: 32, 96>}, {pipeline_mode = #tpu.pipeline_mode<synchronous>, transform_indices = @transform_2, window_bounds = array<i64: 1, 96>}, {pipeline_mode = #tpu.pipeline_mode<synchronous>, transform_indices = @transform_3, window_bounds = array<i64: 32, 32>}, {pipeline_mode = #tpu.pipeline_mode<synchronous>, transform_indices = @transform_4, window_bounds = array<i64: 1, 32>}, {transform_indices = @transform_5, window_bounds = array<i64: 4, 4, 32>}]} {
    %c0 = arith.constant 0 : index
    %c0_0 = arith.constant 0 : index
    %c0_1 = arith.constant 0 : index
    %0 = vector.load %arg1[%c0, %c0_0, %c0_1] : memref<4x4x32xbf16, #tpu.memory_space<vmem>>, vector<4x4x32xbf16>
    %1 = vector.shape_cast %0 : vector<4x4x32xbf16> to vector<16x32xbf16>
    %c0_2 = arith.constant 0 : index
    %c0_3 = arith.constant 0 : index
    %2 = vector.load %arg2[%c0_2, %c0_3] : memref<32x96xbf16, #tpu.memory_space<vmem>>, vector<32x96xbf16>
    %cst = arith.constant dense<0.000000e+00> : vector<16x96xf32>
    %3 = tpu.matmul %1, %2, %cst {dimension_numbers = #tpu.dot_dimension_numbers<[1], [0], [0], [1], [0, 0, 1, 1], [], []>} : vector<16x32xbf16>, vector<32x96xbf16>, vector<16x96xf32> -> vector<16x96xf32>
    %c0_4 = arith.constant 0 : index
    %c0_5 = arith.constant 0 : index
    %4 = vector.load %arg3[%c0_4, %c0_5] : memref<1x96xf32, #tpu.memory_space<vmem>>, vector<1x96xf32>
    %5 = vector.broadcast %4 : vector<1x96xf32> to vector<16x96xf32>
    %6 = arith.addf %3, %5 : vector<16x96xf32>
    %7 = vector.shape_cast %6 : vector<16x96xf32> to vector<4x4x96xf32>
    %8 = vector.extract_strided_slice %7 {offsets = [0, 0, 0], sizes = [4, 4, 8], strides = [1, 1, 1]} : vector<4x4x96xf32> to vector<4x4x8xf32>
    %9 = vector.extract_strided_slice %7 {offsets = [0, 0, 32], sizes = [4, 4, 8], strides = [1, 1, 1]} : vector<4x4x96xf32> to vector<4x4x8xf32>
    %10 = vector.extract_strided_slice %7 {offsets = [0, 0, 64], sizes = [4, 4, 8], strides = [1, 1, 1]} : vector<4x4x96xf32> to vector<4x4x8xf32>
    "tpu.trace_start"() <{level = 10 : i32, message = "gqd,gkd->gqk"}> : () -> ()
    %cst_6 = arith.constant dense<0.000000e+00> : vector<4x4x4xf32>
    %11 = tpu.matmul %8, %9, %cst_6 {dimension_numbers = #tpu.dot_dimension_numbers<[2], [2], [1], [1], [0, 0, 0, 1, 1, 1], [0], [0]>} : vector<4x4x8xf32>, vector<4x4x8xf32>, vector<4x4x4xf32> -> vector<4x4x4xf32>
    "tpu.trace_stop"() : () -> ()
    %cst_7 = arith.constant 0.353553385 : f32
    %12 = vector.broadcast %cst_7 : f32 to vector<4x4x4xf32>
    %13 = arith.mulf %11, %12 : vector<4x4x4xf32>
    %cst_8 = arith.constant dense<0xFF800000> : vector<4x4xf32>
    %14 = vector.multi_reduction <maximumf>, %13, %cst_8 [2] : vector<4x4x4xf32> to vector<4x4xf32>
    %15 = vector.shape_cast %14 : vector<4x4xf32> to vector<4x4x1xf32>
    %16 = vector.broadcast %15 : vector<4x4x1xf32> to vector<4x4x4xf32>
    %17 = arith.subf %13, %16 : vector<4x4x4xf32>
    %18 = math.exp %17 : vector<4x4x4xf32>
    %cst_9 = arith.constant dense<0.000000e+00> : vector<4x4xf32>
    %19 = vector.multi_reduction <add>, %18, %cst_9 [2] : vector<4x4x4xf32> to vector<4x4xf32>
    %20 = vector.shape_cast %19 : vector<4x4xf32> to vector<4x4x1xf32>
    "tpu.trace_start"() <{level = 10 : i32, message = "gqk,gkd->gqd"}> : () -> ()
    %cst_10 = arith.constant dense<0.000000e+00> : vector<4x4x8xf32>
    %21 = tpu.matmul %18, %10, %cst_10 {dimension_numbers = #tpu.dot_dimension_numbers<[2], [1], [1], [2], [0, 0, 0, 1, 1, 2], [0], [0]>} : vector<4x4x4xf32>, vector<4x4x8xf32>, vector<4x4x8xf32> -> vector<4x4x8xf32>
    "tpu.trace_stop"() : () -> ()
    %22 = vector.broadcast %20 : vector<4x4x1xf32> to vector<4x4x8xf32>
    %23 = arith.divf %21, %22 : vector<4x4x8xf32>
    %24 = vector.extract_strided_slice %7 {offsets = [0, 0, 8], sizes = [4, 4, 8], strides = [1, 1, 1]} : vector<4x4x96xf32> to vector<4x4x8xf32>
    %25 = vector.extract_strided_slice %7 {offsets = [0, 0, 40], sizes = [4, 4, 8], strides = [1, 1, 1]} : vector<4x4x96xf32> to vector<4x4x8xf32>
    %26 = vector.extract_strided_slice %7 {offsets = [0, 0, 72], sizes = [4, 4, 8], strides = [1, 1, 1]} : vector<4x4x96xf32> to vector<4x4x8xf32>
    "tpu.trace_start"() <{level = 10 : i32, message = "gqd,gkd->gqk"}> : () -> ()
    %cst_11 = arith.constant dense<0.000000e+00> : vector<4x4x4xf32>
    %27 = tpu.matmul %24, %25, %cst_11 {dimension_numbers = #tpu.dot_dimension_numbers<[2], [2], [1], [1], [0, 0, 0, 1, 1, 1], [0], [0]>} : vector<4x4x8xf32>, vector<4x4x8xf32>, vector<4x4x4xf32> -> vector<4x4x4xf32>
    "tpu.trace_stop"() : () -> ()
    %cst_12 = arith.constant 0.353553385 : f32
    %28 = vector.broadcast %cst_12 : f32 to vector<4x4x4xf32>
    %29 = arith.mulf %27, %28 : vector<4x4x4xf32>
    %cst_13 = arith.constant dense<0xFF800000> : vector<4x4xf32>
    %30 = vector.multi_reduction <maximumf>, %29, %cst_13 [2] : vector<4x4x4xf32> to vector<4x4xf32>
    %31 = vector.shape_cast %30 : vector<4x4xf32> to vector<4x4x1xf32>
    %32 = vector.broadcast %31 : vector<4x4x1xf32> to vector<4x4x4xf32>
    %33 = arith.subf %29, %32 : vector<4x4x4xf32>
    %34 = math.exp %33 : vector<4x4x4xf32>
    %cst_14 = arith.constant dense<0.000000e+00> : vector<4x4xf32>
    %35 = vector.multi_reduction <add>, %34, %cst_14 [2] : vector<4x4x4xf32> to vector<4x4xf32>
    %36 = vector.shape_cast %35 : vector<4x4xf32> to vector<4x4x1xf32>
    "tpu.trace_start"() <{level = 10 : i32, message = "gqk,gkd->gqd"}> : () -> ()
    %cst_15 = arith.constant dense<0.000000e+00> : vector<4x4x8xf32>
    %37 = tpu.matmul %34, %26, %cst_15 {dimension_numbers = #tpu.dot_dimension_numbers<[2], [1], [1], [2], [0, 0, 0, 1, 1, 2], [0], [0]>} : vector<4x4x4xf32>, vector<4x4x8xf32>, vector<4x4x8xf32> -> vector<4x4x8xf32>
    "tpu.trace_stop"() : () -> ()
    %38 = vector.broadcast %36 : vector<4x4x1xf32> to vector<4x4x8xf32>
    %39 = arith.divf %37, %38 : vector<4x4x8xf32>
    %40 = vector.extract_strided_slice %7 {offsets = [0, 0, 16], sizes = [4, 4, 8], strides = [1, 1, 1]} : vector<4x4x96xf32> to vector<4x4x8xf32>
    %41 = vector.extract_strided_slice %7 {offsets = [0, 0, 48], sizes = [4, 4, 8], strides = [1, 1, 1]} : vector<4x4x96xf32> to vector<4x4x8xf32>
    %42 = vector.extract_strided_slice %7 {offsets = [0, 0, 80], sizes = [4, 4, 8], strides = [1, 1, 1]} : vector<4x4x96xf32> to vector<4x4x8xf32>
    "tpu.trace_start"() <{level = 10 : i32, message = "gqd,gkd->gqk"}> : () -> ()
    %cst_16 = arith.constant dense<0.000000e+00> : vector<4x4x4xf32>
    %43 = tpu.matmul %40, %41, %cst_16 {dimension_numbers = #tpu.dot_dimension_numbers<[2], [2], [1], [1], [0, 0, 0, 1, 1, 1], [0], [0]>} : vector<4x4x8xf32>, vector<4x4x8xf32>, vector<4x4x4xf32> -> vector<4x4x4xf32>
    "tpu.trace_stop"() : () -> ()
    %cst_17 = arith.constant 0.353553385 : f32
    %44 = vector.broadcast %cst_17 : f32 to vector<4x4x4xf32>
    %45 = arith.mulf %43, %44 : vector<4x4x4xf32>
    %cst_18 = arith.constant dense<0xFF800000> : vector<4x4xf32>
    %46 = vector.multi_reduction <maximumf>, %45, %cst_18 [2] : vector<4x4x4xf32> to vector<4x4xf32>
    %47 = vector.shape_cast %46 : vector<4x4xf32> to vector<4x4x1xf32>
    %48 = vector.broadcast %47 : vector<4x4x1xf32> to vector<4x4x4xf32>
    %49 = arith.subf %45, %48 : vector<4x4x4xf32>
    %50 = math.exp %49 : vector<4x4x4xf32>
    %cst_19 = arith.constant dense<0.000000e+00> : vector<4x4xf32>
    %51 = vector.multi_reduction <add>, %50, %cst_19 [2] : vector<4x4x4xf32> to vector<4x4xf32>
    %52 = vector.shape_cast %51 : vector<4x4xf32> to vector<4x4x1xf32>
    "tpu.trace_start"() <{level = 10 : i32, message = "gqk,gkd->gqd"}> : () -> ()
    %cst_20 = arith.constant dense<0.000000e+00> : vector<4x4x8xf32>
    %53 = tpu.matmul %50, %42, %cst_20 {dimension_numbers = #tpu.dot_dimension_numbers<[2], [1], [1], [2], [0, 0, 0, 1, 1, 2], [0], [0]>} : vector<4x4x4xf32>, vector<4x4x8xf32>, vector<4x4x8xf32> -> vector<4x4x8xf32>
    "tpu.trace_stop"() : () -> ()
    %54 = vector.broadcast %52 : vector<4x4x1xf32> to vector<4x4x8xf32>
    %55 = arith.divf %53, %54 : vector<4x4x8xf32>
    %56 = vector.extract_strided_slice %7 {offsets = [0, 0, 24], sizes = [4, 4, 8], strides = [1, 1, 1]} : vector<4x4x96xf32> to vector<4x4x8xf32>
    %57 = vector.extract_strided_slice %7 {offsets = [0, 0, 56], sizes = [4, 4, 8], strides = [1, 1, 1]} : vector<4x4x96xf32> to vector<4x4x8xf32>
    %58 = vector.extract_strided_slice %7 {offsets = [0, 0, 88], sizes = [4, 4, 8], strides = [1, 1, 1]} : vector<4x4x96xf32> to vector<4x4x8xf32>
    "tpu.trace_start"() <{level = 10 : i32, message = "gqd,gkd->gqk"}> : () -> ()
    %cst_21 = arith.constant dense<0.000000e+00> : vector<4x4x4xf32>
    %59 = tpu.matmul %56, %57, %cst_21 {dimension_numbers = #tpu.dot_dimension_numbers<[2], [2], [1], [1], [0, 0, 0, 1, 1, 1], [0], [0]>} : vector<4x4x8xf32>, vector<4x4x8xf32>, vector<4x4x4xf32> -> vector<4x4x4xf32>
    "tpu.trace_stop"() : () -> ()
    %cst_22 = arith.constant 0.353553385 : f32
    %60 = vector.broadcast %cst_22 : f32 to vector<4x4x4xf32>
    %61 = arith.mulf %59, %60 : vector<4x4x4xf32>
    %cst_23 = arith.constant dense<0xFF800000> : vector<4x4xf32>
    %62 = vector.multi_reduction <maximumf>, %61, %cst_23 [2] : vector<4x4x4xf32> to vector<4x4xf32>
    %63 = vector.shape_cast %62 : vector<4x4xf32> to vector<4x4x1xf32>
    %64 = vector.broadcast %63 : vector<4x4x1xf32> to vector<4x4x4xf32>
    %65 = arith.subf %61, %64 : vector<4x4x4xf32>
    %66 = math.exp %65 : vector<4x4x4xf32>
    %cst_24 = arith.constant dense<0.000000e+00> : vector<4x4xf32>
    %67 = vector.multi_reduction <add>, %66, %cst_24 [2] : vector<4x4x4xf32> to vector<4x4xf32>
    %68 = vector.shape_cast %67 : vector<4x4xf32> to vector<4x4x1xf32>
    "tpu.trace_start"() <{level = 10 : i32, message = "gqk,gkd->gqd"}> : () -> ()
    %cst_25 = arith.constant dense<0.000000e+00> : vector<4x4x8xf32>
    %69 = tpu.matmul %66, %58, %cst_25 {dimension_numbers = #tpu.dot_dimension_numbers<[2], [1], [1], [2], [0, 0, 0, 1, 1, 2], [0], [0]>} : vector<4x4x4xf32>, vector<4x4x8xf32>, vector<4x4x8xf32> -> vector<4x4x8xf32>
    "tpu.trace_stop"() : () -> ()
    %70 = vector.broadcast %68 : vector<4x4x1xf32> to vector<4x4x8xf32>
    %71 = arith.divf %69, %70 : vector<4x4x8xf32>
    %72 = tpu.concatenate %23, %39, %55, %71 in 2 : vector<4x4x8xf32>, vector<4x4x8xf32>, vector<4x4x8xf32>, vector<4x4x8xf32> -> vector<4x4x32xf32>
    %73 = vector.shape_cast %72 : vector<4x4x32xf32> to vector<16x32xf32>
    %74 = arith.truncf %73 : vector<16x32xf32> to vector<16x32xbf16>
    %c0_26 = arith.constant 0 : index
    %c0_27 = arith.constant 0 : index
    %75 = vector.load %arg4[%c0_26, %c0_27] : memref<32x32xbf16, #tpu.memory_space<vmem>>, vector<32x32xbf16>
    %cst_28 = arith.constant dense<0.000000e+00> : vector<16x32xf32>
    %76 = tpu.matmul %74, %75, %cst_28 {dimension_numbers = #tpu.dot_dimension_numbers<[1], [0], [0], [1], [0, 0, 1, 1], [], []>} : vector<16x32xbf16>, vector<32x32xbf16>, vector<16x32xf32> -> vector<16x32xf32>
    %c0_29 = arith.constant 0 : index
    %c0_30 = arith.constant 0 : index
    %77 = vector.load %arg5[%c0_29, %c0_30] : memref<1x32xf32, #tpu.memory_space<vmem>>, vector<1x32xf32>
    %78 = vector.broadcast %77 : vector<1x32xf32> to vector<16x32xf32>
    %79 = arith.addf %76, %78 : vector<16x32xf32>
    %80 = vector.shape_cast %79 : vector<16x32xf32> to vector<4x4x32xf32>
    %81 = arith.truncf %80 : vector<4x4x32xf32> to vector<4x4x32xbf16>
    %c0_31 = arith.constant 0 : index
    %c0_32 = arith.constant 0 : index
    %c0_33 = arith.constant 0 : index
    %82 = vector.load %arg6[%c0_31, %c0_32, %c0_33] : memref<4x4x32xbf16, #tpu.memory_space<vmem>>, vector<4x4x32xbf16>
    tpu.vector_store %arg6[%c0_31, %c0_32, %c0_33], %81 {strides = array<i32>} : memref<4x4x32xbf16, #tpu.memory_space<vmem>>, vector<4x4x32xbf16>,
    return
  }
  func.func @transform_0(%arg0: i32) -> (i32, i32, i32) {
    %c0_i32 = arith.constant 0 : i32
    %c0_i32_0 = arith.constant 0 : i32
    %c0_i32_1 = arith.constant 0 : i32
    return %arg0, %c0_i32, %c0_i32_0 : i32, i32, i32
  }
  func.func @transform_1(%arg0: i32) -> (i32, i32) {
    %c0_i32 = arith.constant 0 : i32
    %c0_i32_0 = arith.constant 0 : i32
    %c0_i32_1 = arith.constant 0 : i32
    return %c0_i32, %c0_i32_0 : i32, i32
  }
  func.func @transform_2(%arg0: i32) -> (i32, i32) {
    %c0_i32 = arith.constant 0 : i32
    %c0_i32_0 = arith.constant 0 : i32
    %c0_i32_1 = arith.constant 0 : i32
    return %c0_i32, %c0_i32_0 : i32, i32
  }
  func.func @transform_3(%arg0: i32) -> (i32, i32) {
    %c0_i32 = arith.constant 0 : i32
    %c0_i32_0 = arith.constant 0 : i32
    %c0_i32_1 = arith.constant 0 : i32
    return %c0_i32, %c0_i32_0 : i32, i32
  }
  func.func @transform_4(%arg0: i32) -> (i32, i32) {
    %c0_i32 = arith.constant 0 : i32
    %c0_i32_0 = arith.constant 0 : i32
    %c0_i32_1 = arith.constant 0 : i32
    return %c0_i32, %c0_i32_0 : i32, i32
  }
  func.func @transform_5(%arg0: i32) -> (i32, i32, i32) {
    %c0_i32 = arith.constant 0 : i32
    %c0_i32_0 = arith.constant 0 : i32
    %c0_i32_1 = arith.constant 0 : i32
    return %arg0, %c0_i32, %c0_i32_0 : i32, i32, i32
  }
}

module attributes {stable_mosaic.version = 11 : i64} {
  func.func @_add_ln_kernel(%arg0: i32, %arg1: memref<16x32xbf16, #tpu.memory_space<vmem>>, %arg2: memref<16x32xbf16, #tpu.memory_space<vmem>>, %arg3: memref<1x32xf32, #tpu.memory_space<vmem>>, %arg4: memref<1x32xf32, #tpu.memory_space<vmem>>, %arg5: memref<16x32xbf16, #tpu.memory_space<vmem>>) attributes {dimension_semantics = [#tpu.dimension_semantics<parallel>], iteration_bounds = array<i64: 2>, scalar_prefetch = 0 : i64, scratch_operands = 0 : i64, tpu.core_type = #tpu.core_type<tc>, window_params = [{transform_indices = @transform_0, window_bounds = array<i64: 16, 32>}, {transform_indices = @transform_1, window_bounds = array<i64: 16, 32>}, {pipeline_mode = #tpu.pipeline_mode<synchronous>, transform_indices = @transform_2, window_bounds = array<i64: 1, 32>}, {pipeline_mode = #tpu.pipeline_mode<synchronous>, transform_indices = @transform_3, window_bounds = array<i64: 1, 32>}, {transform_indices = @transform_4, window_bounds = array<i64: 16, 32>}]} {
    %c0 = arith.constant 0 : index
    %c0_0 = arith.constant 0 : index
    %0 = vector.load %arg1[%c0, %c0_0] : memref<16x32xbf16, #tpu.memory_space<vmem>>, vector<16x32xbf16>
    %1 = arith.extf %0 : vector<16x32xbf16> to vector<16x32xf32>
    %c0_1 = arith.constant 0 : index
    %c0_2 = arith.constant 0 : index
    %2 = vector.load %arg2[%c0_1, %c0_2] : memref<16x32xbf16, #tpu.memory_space<vmem>>, vector<16x32xbf16>
    %3 = arith.extf %2 : vector<16x32xbf16> to vector<16x32xf32>
    %4 = arith.addf %1, %3 : vector<16x32xf32>
    %cst = arith.constant dense<0.000000e+00> : vector<16xf32>
    %5 = vector.multi_reduction <add>, %4, %cst [1] : vector<16x32xf32> to vector<16xf32>
    %6 = vector.shape_cast %5 : vector<16xf32> to vector<16x1xf32>
    %cst_3 = arith.constant 3.200000e+01 : f32
    %7 = vector.broadcast %cst_3 : f32 to vector<16x1xf32>
    %8 = arith.divf %6, %7 : vector<16x1xf32>
    %9 = vector.broadcast %8 : vector<16x1xf32> to vector<16x32xf32>
    %10 = arith.subf %4, %9 : vector<16x32xf32>
    %11 = arith.mulf %10, %10 : vector<16x32xf32>
    %cst_4 = arith.constant dense<0.000000e+00> : vector<16xf32>
    %12 = vector.multi_reduction <add>, %11, %cst_4 [1] : vector<16x32xf32> to vector<16xf32>
    %13 = vector.shape_cast %12 : vector<16xf32> to vector<16x1xf32>
    %cst_5 = arith.constant 3.200000e+01 : f32
    %14 = vector.broadcast %cst_5 : f32 to vector<16x1xf32>
    %15 = arith.divf %13, %14 : vector<16x1xf32>
    %16 = vector.broadcast %8 : vector<16x1xf32> to vector<16x32xf32>
    %17 = arith.subf %4, %16 : vector<16x32xf32>
    %cst_6 = arith.constant 9.99999974E-6 : f32
    %18 = vector.broadcast %cst_6 : f32 to vector<16x1xf32>
    %19 = arith.addf %15, %18 : vector<16x1xf32>
    %20 = math.rsqrt %19 : vector<16x1xf32>
    %21 = vector.broadcast %20 : vector<16x1xf32> to vector<16x32xf32>
    %22 = arith.mulf %17, %21 : vector<16x32xf32>
    %c0_7 = arith.constant 0 : index
    %c0_8 = arith.constant 0 : index
    %23 = vector.load %arg3[%c0_7, %c0_8] : memref<1x32xf32, #tpu.memory_space<vmem>>, vector<1x32xf32>
    %24 = vector.broadcast %23 : vector<1x32xf32> to vector<16x32xf32>
    %25 = arith.mulf %22, %24 : vector<16x32xf32>
    %c0_9 = arith.constant 0 : index
    %c0_10 = arith.constant 0 : index
    %26 = vector.load %arg4[%c0_9, %c0_10] : memref<1x32xf32, #tpu.memory_space<vmem>>, vector<1x32xf32>
    %27 = vector.broadcast %26 : vector<1x32xf32> to vector<16x32xf32>
    %28 = arith.addf %25, %27 : vector<16x32xf32>
    %29 = arith.truncf %28 : vector<16x32xf32> to vector<16x32xbf16>
    %c0_11 = arith.constant 0 : index
    %c0_12 = arith.constant 0 : index
    %30 = vector.load %arg5[%c0_11, %c0_12] : memref<16x32xbf16, #tpu.memory_space<vmem>>, vector<16x32xbf16>
    tpu.vector_store %arg5[%c0_11, %c0_12], %29 {strides = array<i32>} : memref<16x32xbf16, #tpu.memory_space<vmem>>, vector<16x32xbf16>,
    return
  }
  func.func @transform_0(%arg0: i32) -> (i32, i32) {
    %c0_i32 = arith.constant 0 : i32
    %c0_i32_0 = arith.constant 0 : i32
    return %arg0, %c0_i32 : i32, i32
  }
  func.func @transform_1(%arg0: i32) -> (i32, i32) {
    %c0_i32 = arith.constant 0 : i32
    %c0_i32_0 = arith.constant 0 : i32
    return %arg0, %c0_i32 : i32, i32
  }
  func.func @transform_2(%arg0: i32) -> (i32, i32) {
    %c0_i32 = arith.constant 0 : i32
    %c0_i32_0 = arith.constant 0 : i32
    %c0_i32_1 = arith.constant 0 : i32
    return %c0_i32, %c0_i32_0 : i32, i32
  }
  func.func @transform_3(%arg0: i32) -> (i32, i32) {
    %c0_i32 = arith.constant 0 : i32
    %c0_i32_0 = arith.constant 0 : i32
    %c0_i32_1 = arith.constant 0 : i32
    return %c0_i32, %c0_i32_0 : i32, i32
  }
  func.func @transform_4(%arg0: i32) -> (i32, i32) {
    %c0_i32 = arith.constant 0 : i32
    %c0_i32_0 = arith.constant 0 : i32
    return %arg0, %c0_i32 : i32, i32
  }
}

module attributes {stable_mosaic.version = 11 : i64} {
  func.func @_ffn_kernel(%arg0: i32, %arg1: memref<16x32xbf16, #tpu.memory_space<vmem>>, %arg2: memref<32x64xbf16, #tpu.memory_space<vmem>>, %arg3: memref<1x64xf32, #tpu.memory_space<vmem>>, %arg4: memref<64x32xbf16, #tpu.memory_space<vmem>>, %arg5: memref<1x32xf32, #tpu.memory_space<vmem>>, %arg6: memref<16x32xbf16, #tpu.memory_space<vmem>>) attributes {dimension_semantics = [#tpu.dimension_semantics<parallel>], iteration_bounds = array<i64: 2>, scalar_prefetch = 0 : i64, scratch_operands = 0 : i64, tpu.core_type = #tpu.core_type<tc>, window_params = [{transform_indices = @transform_0, window_bounds = array<i64: 16, 32>}, {pipeline_mode = #tpu.pipeline_mode<synchronous>, transform_indices = @transform_1, window_bounds = array<i64: 32, 64>}, {pipeline_mode = #tpu.pipeline_mode<synchronous>, transform_indices = @transform_2, window_bounds = array<i64: 1, 64>}, {pipeline_mode = #tpu.pipeline_mode<synchronous>, transform_indices = @transform_3, window_bounds = array<i64: 64, 32>}, {pipeline_mode = #tpu.pipeline_mode<synchronous>, transform_indices = @transform_4, window_bounds = array<i64: 1, 32>}, {transform_indices = @transform_5, window_bounds = array<i64: 16, 32>}]} {
    %c0 = arith.constant 0 : index
    %c0_0 = arith.constant 0 : index
    %0 = vector.load %arg1[%c0, %c0_0] : memref<16x32xbf16, #tpu.memory_space<vmem>>, vector<16x32xbf16>
    %c0_1 = arith.constant 0 : index
    %c0_2 = arith.constant 0 : index
    %1 = vector.load %arg2[%c0_1, %c0_2] : memref<32x64xbf16, #tpu.memory_space<vmem>>, vector<32x64xbf16>
    %cst = arith.constant dense<0.000000e+00> : vector<16x64xf32>
    %2 = tpu.matmul %0, %1, %cst {dimension_numbers = #tpu.dot_dimension_numbers<[1], [0], [0], [1], [0, 0, 1, 1], [], []>} : vector<16x32xbf16>, vector<32x64xbf16>, vector<16x64xf32> -> vector<16x64xf32>
    %c0_3 = arith.constant 0 : index
    %c0_4 = arith.constant 0 : index
    %3 = vector.load %arg3[%c0_3, %c0_4] : memref<1x64xf32, #tpu.memory_space<vmem>>, vector<1x64xf32>
    %4 = vector.broadcast %3 : vector<1x64xf32> to vector<16x64xf32>
    %5 = arith.addf %2, %4 : vector<16x64xf32>
    %cst_5 = arith.constant 0.000000e+00 : f32
    %6 = vector.broadcast %cst_5 : f32 to vector<16x64xf32>
    %7 = arith.maximumf %5, %6 : vector<16x64xf32>
    %8 = arith.truncf %7 : vector<16x64xf32> to vector<16x64xbf16>
    %c0_6 = arith.constant 0 : index
    %c0_7 = arith.constant 0 : index
    %9 = vector.load %arg4[%c0_6, %c0_7] : memref<64x32xbf16, #tpu.memory_space<vmem>>, vector<64x32xbf16>
    %cst_8 = arith.constant dense<0.000000e+00> : vector<16x32xf32>
    %10 = tpu.matmul %8, %9, %cst_8 {dimension_numbers = #tpu.dot_dimension_numbers<[1], [0], [0], [1], [0, 0, 1, 1], [], []>} : vector<16x64xbf16>, vector<64x32xbf16>, vector<16x32xf32> -> vector<16x32xf32>
    %c0_9 = arith.constant 0 : index
    %c0_10 = arith.constant 0 : index
    %11 = vector.load %arg5[%c0_9, %c0_10] : memref<1x32xf32, #tpu.memory_space<vmem>>, vector<1x32xf32>
    %12 = vector.broadcast %11 : vector<1x32xf32> to vector<16x32xf32>
    %13 = arith.addf %10, %12 : vector<16x32xf32>
    %14 = arith.extf %0 : vector<16x32xbf16> to vector<16x32xf32>
    %15 = arith.addf %14, %13 : vector<16x32xf32>
    %16 = arith.truncf %15 : vector<16x32xf32> to vector<16x32xbf16>
    %c0_11 = arith.constant 0 : index
    %c0_12 = arith.constant 0 : index
    %17 = vector.load %arg6[%c0_11, %c0_12] : memref<16x32xbf16, #tpu.memory_space<vmem>>, vector<16x32xbf16>
    tpu.vector_store %arg6[%c0_11, %c0_12], %16 {strides = array<i32>} : memref<16x32xbf16, #tpu.memory_space<vmem>>, vector<16x32xbf16>,
    return
  }
  func.func @transform_0(%arg0: i32) -> (i32, i32) {
    %c0_i32 = arith.constant 0 : i32
    %c0_i32_0 = arith.constant 0 : i32
    return %arg0, %c0_i32 : i32, i32
  }
  func.func @transform_1(%arg0: i32) -> (i32, i32) {
    %c0_i32 = arith.constant 0 : i32
    %c0_i32_0 = arith.constant 0 : i32
    %c0_i32_1 = arith.constant 0 : i32
    return %c0_i32, %c0_i32_0 : i32, i32
  }
  func.func @transform_2(%arg0: i32) -> (i32, i32) {
    %c0_i32 = arith.constant 0 : i32
    %c0_i32_0 = arith.constant 0 : i32
    %c0_i32_1 = arith.constant 0 : i32
    return %c0_i32, %c0_i32_0 : i32, i32
  }
  func.func @transform_3(%arg0: i32) -> (i32, i32) {
    %c0_i32 = arith.constant 0 : i32
    %c0_i32_0 = arith.constant 0 : i32
    %c0_i32_1 = arith.constant 0 : i32
    return %c0_i32, %c0_i32_0 : i32, i32
  }
  func.func @transform_4(%arg0: i32) -> (i32, i32) {
    %c0_i32 = arith.constant 0 : i32
    %c0_i32_0 = arith.constant 0 : i32
    %c0_i32_1 = arith.constant 0 : i32
    return %c0_i32, %c0_i32_0 : i32, i32
  }
  func.func @transform_5(%arg0: i32) -> (i32, i32) {
    %c0_i32 = arith.constant 0 : i32
    %c0_i32_0 = arith.constant 0 : i32
    return %arg0, %c0_i32 : i32, i32
  }
}

module attributes {stable_mosaic.version = 11 : i64} {
  func.func @_ln_linear_kernel(%arg0: memref<2x32xf32, #tpu.memory_space<vmem>>, %arg1: memref<1x32xf32, #tpu.memory_space<vmem>>, %arg2: memref<1x32xf32, #tpu.memory_space<vmem>>, %arg3: memref<32x2xf32, #tpu.memory_space<vmem>>, %arg4: memref<1x2xf32, #tpu.memory_space<vmem>>, %arg5: memref<2x2xf32, #tpu.memory_space<vmem>>) attributes {dimension_semantics = [], scalar_prefetch = 0 : i64, scratch_operands = 0 : i64, tpu.core_type = #tpu.core_type<tc>} {
    %c0 = arith.constant 0 : index
    %c0_0 = arith.constant 0 : index
    %0 = vector.load %arg0[%c0, %c0_0] : memref<2x32xf32, #tpu.memory_space<vmem>>, vector<2x32xf32>
    %cst = arith.constant dense<0.000000e+00> : vector<2xf32>
    %1 = vector.multi_reduction <add>, %0, %cst [1] : vector<2x32xf32> to vector<2xf32>
    %2 = vector.shape_cast %1 : vector<2xf32> to vector<2x1xf32>
    %cst_1 = arith.constant 3.200000e+01 : f32
    %3 = vector.broadcast %cst_1 : f32 to vector<2x1xf32>
    %4 = arith.divf %2, %3 : vector<2x1xf32>
    %5 = vector.broadcast %4 : vector<2x1xf32> to vector<2x32xf32>
    %6 = arith.subf %0, %5 : vector<2x32xf32>
    %7 = arith.mulf %6, %6 : vector<2x32xf32>
    %cst_2 = arith.constant dense<0.000000e+00> : vector<2xf32>
    %8 = vector.multi_reduction <add>, %7, %cst_2 [1] : vector<2x32xf32> to vector<2xf32>
    %9 = vector.shape_cast %8 : vector<2xf32> to vector<2x1xf32>
    %cst_3 = arith.constant 3.200000e+01 : f32
    %10 = vector.broadcast %cst_3 : f32 to vector<2x1xf32>
    %11 = arith.divf %9, %10 : vector<2x1xf32>
    %12 = vector.broadcast %4 : vector<2x1xf32> to vector<2x32xf32>
    %13 = arith.subf %0, %12 : vector<2x32xf32>
    %cst_4 = arith.constant 9.99999974E-6 : f32
    %14 = vector.broadcast %cst_4 : f32 to vector<2x1xf32>
    %15 = arith.addf %11, %14 : vector<2x1xf32>
    %16 = math.rsqrt %15 : vector<2x1xf32>
    %17 = vector.broadcast %16 : vector<2x1xf32> to vector<2x32xf32>
    %18 = arith.mulf %13, %17 : vector<2x32xf32>
    %c0_5 = arith.constant 0 : index
    %c0_6 = arith.constant 0 : index
    %19 = vector.load %arg1[%c0_5, %c0_6] : memref<1x32xf32, #tpu.memory_space<vmem>>, vector<1x32xf32>
    %20 = vector.broadcast %19 : vector<1x32xf32> to vector<2x32xf32>
    %21 = arith.mulf %18, %20 : vector<2x32xf32>
    %c0_7 = arith.constant 0 : index
    %c0_8 = arith.constant 0 : index
    %22 = vector.load %arg2[%c0_7, %c0_8] : memref<1x32xf32, #tpu.memory_space<vmem>>, vector<1x32xf32>
    %23 = vector.broadcast %22 : vector<1x32xf32> to vector<2x32xf32>
    %24 = arith.addf %21, %23 : vector<2x32xf32>
    %c0_9 = arith.constant 0 : index
    %c0_10 = arith.constant 0 : index
    %25 = vector.load %arg3[%c0_9, %c0_10] : memref<32x2xf32, #tpu.memory_space<vmem>>, vector<32x2xf32>
    %cst_11 = arith.constant dense<0.000000e+00> : vector<2x2xf32>
    %26 = tpu.matmul %24, %25, %cst_11 {dimension_numbers = #tpu.dot_dimension_numbers<[1], [0], [0], [1], [0, 0, 1, 1], [], []>} : vector<2x32xf32>, vector<32x2xf32>, vector<2x2xf32> -> vector<2x2xf32>
    %c0_12 = arith.constant 0 : index
    %c0_13 = arith.constant 0 : index
    %27 = vector.load %arg4[%c0_12, %c0_13] : memref<1x2xf32, #tpu.memory_space<vmem>>, vector<1x2xf32>
    %28 = vector.broadcast %27 : vector<1x2xf32> to vector<2x2xf32>
    %29 = arith.addf %26, %28 : vector<2x2xf32>
    %c0_14 = arith.constant 0 : index
    %c0_15 = arith.constant 0 : index
    %30 = vector.load %arg5[%c0_14, %c0_15] : memref<2x2xf32, #tpu.memory_space<vmem>>, vector<2x2xf32>
    tpu.vector_store %arg5[%c0_14, %c0_15], %29 {strides = array<i32>} : memref<2x2xf32, #tpu.memory_space<vmem>>, vector<2x2xf32>,
    return
  }
}

</mosaic_0001>

<bundles_post_ra>
// kernel: video_transformer_forward.11
= control target key start
LH: loop header
LB: loop body
LE: loop exit
PB: predicated region body
PF: predicated region fallthrough
CT: control target
= control target key end

     0   :  { %s2206_s12 = smov 0   ;;  %s2208_s13 = smov 0   ;;  %s2822_s0 = inlined_call_operand.vmem [shape: bf16[5000,75], index: 0, kind: input, shape index: {}]   ;;  %s2823_s1 = inlined_call_operand.vmem [shape: bf16[75,32], index: 1, kind: input, shape index: {}]   ;;  %s2824_s2 = inlined_call_operand.vmem [shape: f32[1,32], index: 2, kind: input, shape index: {}]   ;;  %s2825_s3 = inlined_call_operand.vmem [shape: bf16[5000,32], index: 3, kind: output, shape index: {}]  }
   0x1   :  { %s2210_s14 = smov 0   ;;  %s2212_s15 = smov 0  }
   0x2   :  { %s2214_s16 = smov 0  }
   0x3 LB: > { %s1684_s17 = sadd.s32 4294967295, %s2150_s16   ;;  %s32_s18 = sadd.s32 1, %s2146_s15  ;;  %s2150_s16 = sphi %s2214_s16, %s13_s16   ;;  %s2146_s15 = sphi %s2212_s15, %s2833_s15   ;;  %s2142_s14 = sphi %s2210_s14, %s2832_s14   ;;  %s2138_s13 = sphi %s2208_s13, %s2831_s13   ;;  %s2134_s12 = sphi %s2206_s12, %s2830_s12  }
   0x4   : > { %p34_p0 = scmp.ge.s32.totalorder %s32_s18, 20  ;;  %s123_s19 = sadd.s32 1, %s2138_s13 }
   0x5   : > { %p133_p1 = scmp.ne.s32.totalorder %s2138_s13, %s2134_s12  ;;  %p134_p2 = scmp.eq.s32.totalorder %s1684_s17, 19 }
   0x6   : > { %s2835_s18 = smov (%p34_p0, %s32_s18), 0  ;;  %p1690_p4 = scmp.ge.s32.totalorder %s2150_s16, 1 }
   0x7   : > { %p2238_p3 = por %p134_p2, %p133_p1  ;;  %s118_s21 = ssub.s32 %s2146_s15, %s2835_s18 }
   0x8   : > { %p196_p5 = scmp.lt.s32.totalorder %s2150_s16, 21  ;;  %p121_p6 = scmp.eq.s32.totalorder %s118_s21, 0 }
   0xa   : > { %p197_p7 = pnand %p1690_p4, %p196_p5 }
   0xb   : > { %s2247_s22 = scalar_select %p121_p6, %s2138_s13, %s123_s19  }
   0xc   : > { %200 = sbr.rel (%p197_p7) target bundleno = 424 (0x1a8), region = 32  ;;  %s2256_s27 = sshll.u32 (!%p197_p7), %s2142_s14, 5 }
   0xd   : > { %p242_p8 = scmp.lt.s32.totalorder (!%p197_p7), %s2256_s27, 624  ;;  %s234_s21 = sand.u32 (!%p197_p7), 1, %s2134_s12  }
   0xe   : > { %s2428_s12 = sshll.u32 (!%p197_p7), %s234_s21, 7 }
   0xf   : > { %s2450_s23 = scalar_lea.vmem (!%p197_p7), [#allocation3], %s2428_s12  }
  0x11   : > { %v1995_v0 = vld [vmem:[%s2823_s1 + $0x20] sm:$0x3f]   ;;  %vm541_vm0 = vcmask 1044480   ;;  %vm542_vm1 = vcmask 1045504   ;;  %v2184_v1 = vmov 65535   ;;  %v1996_v4 = vld [vmem:[%s2823_s1 + $0x18] sm:$0xff]  }
  0x12   : > { %v543_v2 = vsel %vm541_vm0, 4294967295, %v2184_v1  ;;  %vm276_vm2 = vcmask 261120   ;;  %v2185_v6 = vmov 0.0   ;;  %v1997_v7 = vld [vmem:[%s2823_s1 + $0x10] sm:$0xff]   ;;  %s243_s30 = scalar_select %p242_p8, %s2256_s27, 624  ;;  %v1998_v8 = vld [vmem:[%s2823_s1 + $0x8] sm:$0xff]  }
  0x13   : > { %v544_v3 = vsel %vm542_vm1, %v543_v2, 0  ;;  %279 = vst.msk [vmem:[#allocation2 + $0x10] sm:$0xff] %vm276_vm2, %v2185_v6  ;;  %277 = vst.msk [vmem:[#allocation2] sm:$0xff] %vm276_vm2, %v2185_v6  ;;  %vm492_vm3 = vcmask 613376   ;;  %v1999_v11 = vld [vmem:[%s2823_s1] sm:$0xff]   ;;  %vm1264_vm4 = vcmask 257024  }
  0x14   : > { %v546_v5 = vand.u32 %v1995_v0, %v544_v3  ;;  %278 = vst.msk [vmem:[#allocation2 + $0x8] sm:$0xff] %vm276_vm2, %v2185_v6  ;;  %280 = vst.msk [vmem:[#allocation2 + $0x18] sm:$0xff] %vm276_vm2, %v2185_v6  ;;  %s1693_s4 = sshll.u32 %s243_s30, 2  ;;  %v2349_v52 = vld [vmem:[%s2824_s2] ss:$0 sm:$0xff]  ;;  %s1305_s24 = ssub.s32 (%p2238_p3), 625, %s2256_s27 }
  0x15   : > { %281 = vst.msk [vmem:[#allocation2 + $0x20] sm:$0xff] %vm276_vm2, %v2185_v6  ;;  %282 = vst.msk [vmem:[#allocation2 + $0x28] sm:$0xff] %vm276_vm2, %v2185_v6  ;;  %s2303_s9 = scalar_lea.vmem %s2822_s0, %s1693_s4  ;;  %s1813_s25 = sshll.u32 (%p2238_p3), %s2142_s14, 7 }
  0x16   : > { %1837 = vmatprep.subr.bf16.mxu0 %v546_v5  ;;  %1879 = vmatprep.subr.bf16.mxu1 %v546_v5  ;;  %283 = vst.msk [vmem:[#allocation2 + $0x30] sm:$0xff] %vm276_vm2, %v2185_v6  ;;  %284 = vst.msk [vmem:[#allocation2 + $0x38] sm:$0xff] %vm276_vm2, %v2185_v6  ;;  %v2000_v9 = vld [vmem:[%s2303_s9] sm:$0xff]   ;;  %v2002_v12 = vld [vmem:[%s2303_s9 + $0x8] sm:$0xff]   ;;  %p1306_p9 = scmp.lt.s32.totalorder (%p2238_p3), %s1305_s24, 32  ;;  %s2689_s29 = scalar_lea.vmem (%p2238_p3), %s2825_s3, %s1813_s25  }
  0x17   : > { %285 = vst.msk [vmem:[#allocation2 + $0x40] sm:$0xff] %vm276_vm2, %v2185_v6  ;;  %286 = vst.msk [vmem:[#allocation2 + $0x48] sm:$0xff] %vm276_vm2, %v2185_v6  ;;  %1838 = vmatpush3.bf16.msra.mxu0 %v546_v5  ;;  %1884 = vmatpush3.bf16.msra.mxu1 %v546_v5  ;;  %v2001_v10 = vld [vmem:[%s2303_s9 + $0x40] sm:$0xff]   ;;  %v2003_v13 = vld [vmem:[%s2303_s9 + $0x48] sm:$0xff]  }
  0x18   : > { %287 = vst.msk [vmem:[#allocation2 + $0x50] sm:$0xff] %vm276_vm2, %v2185_v6  ;;  %288 = vst.msk [vmem:[#allocation2 + $0x58] sm:$0xff] %vm276_vm2, %v2185_v6  ;;  %1839 = vmatprep.subr.bf16.mxu0 %v1996_v4  ;;  %1880 = vmatprep.subr.bf16.mxu1 %v1996_v4  ;;  %v2004_v14 = vld [vmem:[%s2303_s9 + $0x10] sm:$0xff]   ;;  %v2006_v16 = vld [vmem:[%s2303_s9 + $0x18] sm:$0xff]  }
  0x19   : > { %289 = vst.msk [vmem:[#allocation2 + $0x60] sm:$0xff] %vm276_vm2, %v2185_v6  ;;  %290 = vst.msk [vmem:[#allocation2 + $0x68] sm:$0xff] %vm276_vm2, %v2185_v6  ;;  %1847 = vmatprep.mubr.msk.bf16.mxu0 %vm492_vm3, %v2000_v9  ;;  %1863 = vmatprep.mubr.msk.bf16.mxu1 %vm492_vm3, %v2001_v10  ;;  %v2005_v15 = vld [vmem:[%s2303_s9 + $0x50] sm:$0xff]   ;;  %v2007_v17 = vld [vmem:[%s2303_s9 + $0x58] sm:$0xff]  }
  0x1a   : > { %291 = vst.msk [vmem:[#allocation2 + $0x70] sm:$0xff] %vm276_vm2, %v2185_v6  ;;  %292 = vst.msk [vmem:[#allocation2 + $0x78] sm:$0xff] %vm276_vm2, %v2185_v6  ;;  %v2008_v18 = vld [vmem:[%s2303_s9 + $0x20] sm:$0xff]   ;;  %v2010_v20 = vld [vmem:[%s2303_s9 + $0x28] sm:$0xff]  }
  0x1b   : > { %293 = vst.msk [vmem:[#allocation2 + $0x80] sm:$0xff] %vm276_vm2, %v2185_v6  ;;  %294 = vst.msk [vmem:[#allocation2 + $0x88] sm:$0xff] %vm276_vm2, %v2185_v6  ;;  %1840 = vmatpush3.bf16.msra.mxu0 %v1996_v4  ;;  %1885 = vmatpush3.bf16.msra.mxu1 %v1996_v4  ;;  %v2009_v19 = vld [vmem:[%s2303_s9 + $0x60] sm:$0xff]   ;;  %v2011_v21 = vld [vmem:[%s2303_s9 + $0x68] sm:$0xff]  }
  0x1c   : > { %295 = vst.msk [vmem:[#allocation2 + $0x90] sm:$0xff] %vm276_vm2, %v2185_v6  ;;  %296 = vst.msk [vmem:[#allocation2 + $0x98] sm:$0xff] %vm276_vm2, %v2185_v6  ;;  %1841 = vmatprep.subr.bf16.mxu0 %v1997_v7  ;;  %1881 = vmatprep.subr.bf16.mxu1 %v1997_v7  ;;  %v2012_v22 = vld [vmem:[%s2303_s9 + $0x30] sm:$0xff]   ;;  %v2014_v24 = vld [vmem:[%s2303_s9 + $0x38] sm:$0xff]  }
  0x1d   : > { %297 = vst.msk [vmem:[#allocation2 + $0xa0] sm:$0xff] %vm276_vm2, %v2185_v6  ;;  %298 = vst.msk [vmem:[#allocation2 + $0xa8] sm:$0xff] %vm276_vm2, %v2185_v6  ;;  %v2013_v23 = vld [vmem:[%s2303_s9 + $0x70] sm:$0xff]   ;;  %v2015_v25 = vld [vmem:[%s2303_s9 + $0x78] sm:$0xff]  }
  0x1e   : > { %299 = vst.msk [vmem:[#allocation2 + $0xb0] sm:$0xff] %vm276_vm2, %v2185_v6  ;;  %300 = vst.msk [vmem:[#allocation2 + $0xb8] sm:$0xff] %vm276_vm2, %v2185_v6  ;;  %v311_v26 = vld [vmem:[#allocation2 + $0x10] sm:$0xff]  ;;  %v309_v30 = vld [vmem:[#allocation2] sm:$0xff] }
  0x1f   : > { %301 = vst.msk [vmem:[#allocation2 + $0xc0] sm:$0xff] %vm276_vm2, %v2185_v6  ;;  %302 = vst.msk [vmem:[#allocation2 + $0xc8] sm:$0xff] %vm276_vm2, %v2185_v6  ;;  %1842 = vmatpush3.bf16.msra.mxu0 %v1997_v7  ;;  %1886 = vmatpush3.bf16.msra.mxu1 %v1997_v7  ;;  %v312_v36 = vld [vmem:[#allocation2 + $0x18] sm:$0xff]  ;;  %v310_v42 = vld [vmem:[#allocation2 + $0x8] sm:$0xff] }
  0x20   : > { %303 = vst.msk [vmem:[#allocation2 + $0xd0] sm:$0xff] %vm276_vm2, %v2185_v6  ;;  %304 = vst.msk [vmem:[#allocation2 + $0xd8] sm:$0xff] %vm276_vm2, %v2185_v6  ;;  %1843 = vmatprep.subr.bf16.mxu0 %v1998_v8  ;;  %1882 = vmatprep.subr.bf16.mxu1 %v1998_v8  ;;  %v315_v48 = vld [vmem:[#allocation2 + $0x30] sm:$0xff]  ;;  %v313_v55 = vld [vmem:[#allocation2 + $0x20] sm:$0xff] }
  0x21   : > { %305 = vst.msk [vmem:[#allocation2 + $0xe0] sm:$0xff] %vm276_vm2, %v2185_v6  ;;  %306 = vst.msk [vmem:[#allocation2 + $0xe8] sm:$0xff] %vm276_vm2, %v2185_v6  ;;  %v316_v3 = vld [vmem:[#allocation2 + $0x38] sm:$0xff] }
  0x22   : > { %307 = vst.msk [vmem:[#allocation2 + $0xf0] sm:$0xff] %vm276_vm2, %v2185_v6  ;;  %308 = vst.msk [vmem:[#allocation2 + $0xf8] sm:$0xff] %vm276_vm2, %v2185_v6  ;;  %v325_v31 = vld [vmem:[#allocation2 + $0x80] sm:$0xff]  ;;  %v326_v43 = vld [vmem:[#allocation2 + $0x88] sm:$0xff] }
  0x23   : > { %1844 = vmatpush3.bf16.msra.mxu0 %v1998_v8  ;;  %1887 = vmatpush3.bf16.msra.mxu1 %v1998_v8  ;;  %v327_v27 = vld [vmem:[#allocation2 + $0x90] sm:$0xff]  ;;  %v328_v37 = vld [vmem:[#allocation2 + $0x98] sm:$0xff] }
  0x24   : > { %1845 = vmatprep.subr.bf16.mxu0 %v1999_v11  ;;  %1883 = vmatprep.subr.bf16.mxu1 %v1999_v11  ;;  %v329_v56 = vld [vmem:[#allocation2 + $0xa0] sm:$0xff] }
  0x25   : > { %v331_v49 = vld [vmem:[#allocation2 + $0xb0] sm:$0xff]  ;;  %v332_v4 = vld [vmem:[#allocation2 + $0xb8] sm:$0xff] }
  0x27   : > { %1846 = vmatpush3.bf16.msra.mxu0 %v1999_v11  ;;  %1888 = vmatpush3.bf16.msra.mxu1 %v1999_v11 }
  0x2a   : > { %1848 = vmatmul.mubr.msk.bf16.vlgmr.msra.gmra.mxu0 %vm492_vm3, %v2002_v12  ;;  %1864 = vmatmul.mubr.msk.bf16.vlgmr.msra.gmra.mxu1 %vm492_vm3, %v2003_v13 }
  0x2b   : > { %1851 = vmatprep.mubr.msk.bf16.mxu0 %vm492_vm3, %v2004_v14  ;;  %1867 = vmatprep.mubr.msk.bf16.mxu1 %vm492_vm3, %v2005_v15 }
  0x32   : > { %1852 = vmatmul.mubr.msk.bf16.gmra.mxu0 %vm492_vm3, %v2006_v16  ;;  %1868 = vmatmul.mubr.msk.bf16.gmra.mxu1 %vm492_vm3, %v2007_v17 }
  0x33   : > { %1855 = vmatprep.mubr.msk.bf16.mxu0 %vm492_vm3, %v2008_v18  ;;  %1871 = vmatprep.mubr.msk.bf16.mxu1 %vm492_vm3, %v2009_v19 }
  0x3a   : > { %1856 = vmatmul.mubr.msk.bf16.gmra.mxu0 %vm492_vm3, %v2010_v20  ;;  %1872 = vmatmul.mubr.msk.bf16.gmra.mxu1 %vm492_vm3, %v2011_v21 }
  0x3b   : > { %1859 = vmatprep.mubr.msk.bf16.mxu0 %vm492_vm3, %v2012_v22  ;;  %1875 = vmatprep.mubr.msk.bf16.mxu1 %vm492_vm3, %v2013_v23 }
  0x42   : > { %1860 = vmatmul.mubr.msk.bf16.gmra.mxu0 %vm492_vm3, %v2014_v24  ;;  %1876 = vmatmul.mubr.msk.bf16.gmra.mxu1 %vm492_vm3, %v2015_v25 }
  0xea   : > { %v1849_v28 = vpop.f32.mrf.mxu0  ;;  %v1865_v29 = vpop.f32.mrf.mxu1 }
  0xeb   : > { %v711_v32 = vadd.f32 %v1849_v28, %v311_v26  ;;  %v727_v33 = vadd.f32 %v1865_v29, %v327_v27 }
  0xec   : > { %v582_v34 = vpop.f32.mrf.mxu0  ;;  %v646_v35 = vpop.f32.mrf.mxu1 }
  0xed   : > { %744 = vst.msk [vmem:[#allocation2 + $0x10] sm:$0xff] %vm276_vm2, %v711_v32  ;;  %760 = vst.msk [vmem:[#allocation2 + $0x90] sm:$0xff] %vm276_vm2, %v727_v33  ;;  %v709_v38 = vadd.f32 %v582_v34, %v309_v30  ;;  %v725_v39 = vadd.f32 %v646_v35, %v325_v31 }
  0xee   : > { %v1850_v40 = vpop.f32.mrf.mxu0  ;;  %v1866_v41 = vpop.f32.mrf.mxu1 }
  0xef   : > { %742 = vst.msk [vmem:[#allocation2] sm:$0xff] %vm276_vm2, %v709_v38  ;;  %758 = vst.msk [vmem:[#allocation2 + $0x80] sm:$0xff] %vm276_vm2, %v725_v39  ;;  %v712_v44 = vadd.f32 %v1850_v40, %v312_v36  ;;  %v728_v45 = vadd.f32 %v1866_v41, %v328_v37 }
  0xf0   : > { %v585_v46 = vpop.f32.mrf.mxu0  ;;  %v649_v47 = vpop.f32.mrf.mxu1 }
  0xf1   : > { %745 = vst.msk [vmem:[#allocation2 + $0x18] sm:$0xff] %vm276_vm2, %v712_v44  ;;  %761 = vst.msk [vmem:[#allocation2 + $0x98] sm:$0xff] %vm276_vm2, %v728_v45  ;;  %v710_v50 = vadd.f32 %v585_v46, %v310_v42  ;;  %v726_v51 = vadd.f32 %v649_v47, %v326_v43 }
  0xf2   : > { %v1853_v53 = vpop.f32.mrf.mxu0  ;;  %v1869_v54 = vpop.f32.mrf.mxu1 }
  0xf3   : > { %743 = vst.msk [vmem:[#allocation2 + $0x8] sm:$0xff] %vm276_vm2, %v710_v50  ;;  %759 = vst.msk [vmem:[#allocation2 + $0x88] sm:$0xff] %vm276_vm2, %v726_v51  ;;  %v715_v57 = vadd.f32 %v1853_v53, %v315_v48  ;;  %v731_v58 = vadd.f32 %v1869_v54, %v331_v49 }
  0xf4   : > { %v779_v59 = vld [vmem:[#allocation2 + $0x10] sm:$0xff]  ;;  %v598_v61 = vpop.f32.mrf.mxu0  ;;  %v662_v62 = vpop.f32.mrf.mxu1 }
  0xf5   : > { %v795_v60 = vld [vmem:[#allocation2 + $0x90] sm:$0xff]  ;;  %v818_v63 = vadd.f32 %v2349_v52, %v779_v59  ;;  %748 = vst.msk [vmem:[#allocation2 + $0x30] sm:$0xff] %vm276_vm2, %v715_v57  ;;  %764 = vst.msk [vmem:[#allocation2 + $0xb0] sm:$0xff] %vm276_vm2, %v731_v58  ;;  %v713_v1 = vadd.f32 %v598_v61, %v313_v55  ;;  %v729_v2 = vadd.f32 %v662_v62, %v329_v56 }
  0xf6   : > { %v834_v0 = vadd.f32 %v2349_v52, %v795_v60  ;;  %v777_v5 = vld [vmem:[#allocation2] sm:$0xff]  ;;  %v1854_v7 = vpop.f32.mrf.mxu0  ;;  %v1870_v8 = vpop.f32.mrf.mxu1 }
  0xf7   : > { %v793_v6 = vld [vmem:[#allocation2 + $0x80] sm:$0xff]  ;;  %v882_v9 = vmul.f32 0.044715, %v818_v63  ;;  %746 = vst.msk [vmem:[#allocation2 + $0x20] sm:$0xff] %vm276_vm2, %v713_v1  ;;  %762 = vst.msk [vmem:[#allocation2 + $0xa0] sm:$0xff] %vm276_vm2, %v729_v2  ;;  %v816_v11 = vadd.f32 %v2349_v52, %v777_v5  ;;  %v716_v15 = vadd.f32 %v1854_v7, %v316_v3  ;;  %v732_v16 = vadd.f32 %v1870_v8, %v332_v4 }
  0xf8   : > { %v898_v10 = vmul.f32 0.044715, %v834_v0  ;;  %v832_v12 = vadd.f32 %v2349_v52, %v793_v6  ;;  %v780_v13 = vld [vmem:[#allocation2 + $0x18] sm:$0xff]  ;;  %v2363_v21 = vmul.f32 0.5, %v818_v63  ;;  %v2367_v25 = vmul.f32 0.5, %v834_v0  ;;  %v2375_v51 = vpop.f32.mrf.mxu0  ;;  %v2377_v53 = vpop.f32.mrf.mxu1 }
  0xf9   : > { %v796_v14 = vld [vmem:[#allocation2 + $0x98] sm:$0xff]  ;;  %v914_v17 = vmul.f32 %v882_v9, %v818_v63  ;;  %v819_v19 = vadd.f32 %v2349_v52, %v780_v13  ;;  %v880_v22 = vmul.f32 0.044715, %v816_v11  ;;  %749 = vst.msk [vmem:[#allocation2 + $0x38] sm:$0xff] %vm276_vm2, %v716_v15  ;;  %765 = vst.msk [vmem:[#allocation2 + $0xb8] sm:$0xff] %vm276_vm2, %v732_v16  ;;  %v2369_v30 = vmul.f32 0.5, %v816_v11 }
  0xfa   : > { %v930_v18 = vmul.f32 %v898_v10, %v834_v0  ;;  %v835_v20 = vadd.f32 %v2349_v52, %v796_v14  ;;  %v896_v23 = vmul.f32 0.044715, %v832_v12  ;;  %v778_v28 = vld [vmem:[#allocation2 + $0x8] sm:$0xff]  ;;  %v2373_v44 = vmul.f32 0.5, %v832_v12  ;;  %v2386_v5 = vpop.f32.mrf.mxu0  ;;  %v2388_v6 = vpop.f32.mrf.mxu1 }
  0xfb   : > { %v946_v24 = vmul.f32 %v914_v17, %v818_v63  ;;  %v883_v27 = vmul.f32 0.044715, %v819_v19  ;;  %v794_v29 = vld [vmem:[#allocation2 + $0x88] sm:$0xff]  ;;  %v912_v31 = vmul.f32 %v880_v22, %v816_v11  ;;  %v817_v37 = vadd.f32 %v2349_v52, %v778_v28 }
  0xfc   : > { %v962_v26 = vmul.f32 %v930_v18, %v834_v0  ;;  %v928_v32 = vmul.f32 %v896_v23, %v832_v12  ;;  %v899_v33 = vmul.f32 0.044715, %v835_v20  ;;  %v833_v41 = vadd.f32 %v2349_v52, %v794_v29  ;;  %v783_v50 = vld [vmem:[#allocation2 + $0x30] sm:$0xff]  ;;  %v2398_v23 = vpop.f32.mrf.mxu0 }
  0xfd   : > { %v978_v34 = vadd.f32 %v946_v24, %v818_v63  ;;  %v915_v36 = vmul.f32 %v883_v27, %v819_v19  ;;  %v944_v38 = vmul.f32 %v912_v31, %v816_v11  ;;  %v881_v49 = vmul.f32 0.044715, %v817_v37  ;;  %v799_v57 = vld [vmem:[#allocation2 + $0xb0] sm:$0xff]  ;;  %v2400_v24 = vpop.f32.mrf.mxu1 }
  0xfe   : > { %v994_v35 = vadd.f32 %v962_v26, %v834_v0  ;;  %v960_v39 = vmul.f32 %v928_v32, %v832_v12  ;;  %v931_v40 = vmul.f32 %v899_v33, %v835_v20  ;;  %v2379_v54 = vmul.f32 0.5, %v819_v19  ;;  %v781_v58 = vld [vmem:[#allocation2 + $0x20] sm:$0xff] }
  0xff   : > { %v1010_v42 = vmul.f32 0.7978846, %v978_v34  ;;  %v947_v45 = vmul.f32 %v915_v36, %v819_v19  ;;  %v976_v46 = vadd.f32 %v944_v38, %v816_v11  ;;  %v897_v56 = vmul.f32 0.044715, %v833_v41  ;;  %v797_v10 = vld [vmem:[#allocation2 + $0xa0] sm:$0xff]  ;;  %v314_v38 = vld [vmem:[#allocation2 + $0x28] sm:$0xff] }
 0x100   : > { %v1026_v43 = vmul.f32 0.7978846, %v994_v35  ;;  %v992_v47 = vadd.f32 %v960_v39, %v832_v12  ;;  %v963_v48 = vmul.f32 %v931_v40, %v835_v20  ;;  %v913_v63 = vmul.f32 %v881_v49, %v817_v37  ;;  %v784_v13 = vld [vmem:[#allocation2 + $0x38] sm:$0xff]  ;;  %v330_v49 = vld [vmem:[#allocation2 + $0xa8] sm:$0xff] }
 0x101   : > { %2016 = vtanh.f32 %v1010_v42  ;;  %v979_v55 = vadd.f32 %v947_v45, %v819_v19  ;;  %v1008_v59 = vmul.f32 0.7978846, %v976_v46  ;;  %v929_v0 = vmul.f32 %v897_v56, %v833_v41  ;;  %v800_v14 = vld [vmem:[#allocation2 + $0xb8] sm:$0xff] }
 0x102   : > { %2018 = vtanh.f32 %v1026_v43  ;;  %v1024_v60 = vmul.f32 0.7978846, %v992_v47  ;;  %v995_v61 = vadd.f32 %v963_v48, %v835_v20  ;;  %v822_v1 = vadd.f32 %v2349_v52, %v783_v50  ;;  %v2419_v43 = vpop.f32.mrf.mxu1 }
 0x103   : > { %v1011_v62 = vmul.f32 0.7978846, %v979_v55  ;;  %2020 = vtanh.f32 %v1008_v59  ;;  %v838_v3 = vadd.f32 %v2349_v52, %v799_v57  ;;  %v2384_v4 = vadd.f32 %v2349_v52, %v781_v58 }
 0x104   : > { %v1027_v2 = vmul.f32 0.7978846, %v995_v61  ;;  %2022 = vtanh.f32 %v1024_v60  ;;  %v2390_v7 = vmul.f32 0.5, %v835_v20  ;;  %v945_v8 = vmul.f32 %v913_v63, %v817_v37 }
 0x105   : > { %v961_v9 = vmul.f32 %v929_v0, %v833_v41  ;;  %2024 = vtanh.f32 %v1011_v62  ;;  %v886_v11 = vmul.f32 0.044715, %v822_v1  ;;  %v902_v12 = vmul.f32 0.044715, %v838_v3 }
 0x106   : > { %2026 = vtanh.f32 %v1027_v2  ;;  %v2392_v15 = vmul.f32 0.5, %v817_v37  ;;  %v977_v16 = vadd.f32 %v945_v8, %v817_v37  ;;  %v884_v22 = vmul.f32 0.044715, %v2384_v4 }
 0x107   : > { %v993_v17 = vadd.f32 %v961_v9, %v833_v41  ;;  %v918_v18 = vmul.f32 %v886_v11, %v822_v1  ;;  %v934_v19 = vmul.f32 %v902_v12, %v838_v3  ;;  %v2396_v20 = vadd.f32 %v2349_v52, %v797_v10 }
 0x108   : > { %v1009_v26 = vmul.f32 0.7978846, %v977_v16  ;;  %v2403_v28 = vadd.f32 %v2349_v52, %v784_v13  ;;  %v2406_v29 = vadd.f32 %v2349_v52, %v800_v14  ;;  %v2408_v31 = vmul.f32 0.5, %v833_v41  ;;  %v2417_v41 = vpop.f32.mrf.mxu0 }
 0x109   : > { %v1025_v27 = vmul.f32 0.7978846, %v993_v17  ;;  %v950_v32 = vmul.f32 %v918_v18, %v822_v1  ;;  %v966_v33 = vmul.f32 %v934_v19, %v838_v3  ;;  %v916_v34 = vmul.f32 %v884_v22, %v2384_v4 }
 0x10a   : > { %2028 = vtanh.f32 %v1009_v26  ;;  %v2411_v35 = vmul.f32 0.5, %v822_v1  ;;  %v900_v36 = vmul.f32 0.044715, %v2396_v20  ;;  %v887_v37 = vmul.f32 0.044715, %v2403_v28 }
 0x10b   : > { %2030 = vtanh.f32 %v1025_v27  ;;  %v982_v39 = vadd.f32 %v950_v32, %v822_v1  ;;  %v998_v40 = vadd.f32 %v966_v33, %v838_v3  ;;  %v948_v42 = vmul.f32 %v916_v34, %v2384_v4  ;;  %v335_v34 = vld [vmem:[#allocation2 + $0xd0] sm:$0xff] }
 0x10c   : > { %v2421_v45 = vmul.f32 0.5, %v838_v3  ;;  %v932_v46 = vmul.f32 %v900_v36, %v2396_v20  ;;  %v919_v47 = vmul.f32 %v887_v37, %v2403_v28  ;;  %v903_v48 = vmul.f32 0.044715, %v2406_v29  ;;  %v2435_v3 = vpop.f32.mrf.mxu0  ;;  %v317_v36 = vld [vmem:[#allocation2 + $0x40] sm:$0xff] }
 0x10d   : > { %v1014_v55 = vmul.f32 0.7978846, %v982_v39  ;;  %v1030_v56 = vmul.f32 0.7978846, %v998_v40  ;;  %v980_v57 = vadd.f32 %v948_v42, %v2384_v4  ;;  %v714_v58 = vadd.f32 %v2375_v51, %v314_v38  ;;  %v2437_v51 = vpop.f32.mrf.mxu1  ;;  %v333_v42 = vld [vmem:[#allocation2 + $0xc0] sm:$0xff] }
 0x10e   : > { %v2017_v50 = vpop.eup %2016  ;;  %v964_v61 = vmul.f32 %v932_v46, %v2396_v20  ;;  %v951_v62 = vmul.f32 %v919_v47, %v2403_v28  ;;  %v935_v63 = vmul.f32 %v903_v48, %v2406_v29  ;;  %v730_v2 = vadd.f32 %v2377_v53, %v330_v49  ;;  %v319_v53 = vld [vmem:[#allocation2 + $0x50] sm:$0xff]  ;;  %v1861_v37 = vpop.f32.mrf.mxu0  ;;  %v320_v49 = vld [vmem:[#allocation2 + $0x58] sm:$0xff] }
 0x10f   : > { %v2019_v59 = vpop.eup %2018  ;;  %v1074_v60 = vadd.f32 1.0, %v2017_v50  ;;  %2032 = vtanh.f32 %v1014_v55  ;;  %v1012_v1 = vmul.f32 0.7978846, %v980_v57  ;;  %747 = vst.msk [vmem:[#allocation2 + $0x28] sm:$0xff] %vm276_vm2, %v714_v58  ;;  %v2447_v38 = vpop.f32.mrf.mxu1  ;;  %v336_v50 = vld [vmem:[#allocation2 + $0xd8] sm:$0xff] }
 0x110   : > { %v1090_v0 = vadd.f32 1.0, %v2019_v59  ;;  %v2021_v8 = vpop.eup %2020  ;;  %2034 = vtanh.f32 %v1030_v56  ;;  %v996_v10 = vadd.f32 %v964_v61, %v2396_v20  ;;  %v983_v11 = vadd.f32 %v951_v62, %v2403_v28  ;;  %763 = vst.msk [vmem:[#allocation2 + $0xa8] sm:$0xff] %vm276_vm2, %v730_v2  ;;  %v334_v61 = vld [vmem:[#allocation2 + $0xc8] sm:$0xff]  ;;  %v323_v62 = vld [vmem:[#allocation2 + $0x70] sm:$0xff] }
 0x111   : > { %v1106_v9 = vmul.f32 %v1074_v60, %v2363_v21  ;;  %v2023_v12 = vpop.eup %2022  ;;  %v1072_v14 = vadd.f32 1.0, %v2021_v8  ;;  %2036 = vtanh.f32 %v1012_v1  ;;  %v967_v16 = vmul.f32 %v935_v63, %v2406_v29  ;;  %v630_v63 = vpop.f32.mrf.mxu0 }
 0x112   : > { %v1122_v13 = vmul.f32 %v1090_v0, %v2367_v25  ;;  %v2025_v17 = vpop.eup %2024  ;;  %v1088_v19 = vadd.f32 1.0, %v2023_v12  ;;  %v1028_v21 = vmul.f32 0.7978846, %v996_v10  ;;  %v1015_v22 = vmul.f32 0.7978846, %v983_v11  ;;  %v694_v0 = vpop.f32.mrf.mxu1 }
 0x113   : > { %v1783_v18 = vpack.c.bf16 %v1106_v9, %v1106_v9  ;;  %v2027_v26 = vpop.eup %2026  ;;  %v1104_v32 = vmul.f32 %v1072_v14, %v2369_v30  ;;  %v1075_v33 = vadd.f32 1.0, %v2025_v17  ;;  %v999_v25 = vadd.f32 %v967_v16, %v2406_v29  ;;  %v339_v9 = vld [vmem:[#allocation2 + $0xf0] sm:$0xff]  ;;  %v321_v14 = vld [vmem:[#allocation2 + $0x60] sm:$0xff] }
 0x114   : > { %v1799_v27 = vpack.c.bf16 %v1122_v13, %v1122_v13  ;;  %v1120_v39 = vmul.f32 %v1088_v19, %v2373_v44  ;;  %v1091_v40 = vadd.f32 1.0, %v2027_v26  ;;  %2038 = vtanh.f32 %v1028_v21  ;;  %v337_v16 = vld [vmem:[#allocation2 + $0xe0] sm:$0xff]  ;;  %v1862_v26 = vpop.f32.mrf.mxu0 }
 0x115   : > { %1267 = vst.msk [vmem:[%s2450_s23 + $0x8] sm:$0xf] %vm1264_vm4, %v1783_v18  ;;  %v719_v30 = vadd.f32 %v2386_v5, %v319_v53  ;;  %v1781_v46 = vpack.c.bf16 %v1104_v32, %v1104_v32  ;;  %v1107_v47 = vmul.f32 %v1075_v33, %v2379_v54  ;;  %2040 = vtanh.f32 %v1015_v22  ;;  %v324_v22 = vld [vmem:[#allocation2 + $0x78] sm:$0xff] }
 0x116   : > { %1283 = vst.msk [vmem:[%s2450_s23 + $0x48] sm:$0xf] %vm1264_vm4, %v1799_v27  ;;  %v1031_v48 = vmul.f32 0.7978846, %v999_v25  ;;  %v1797_v55 = vpack.c.bf16 %v1120_v39, %v1120_v39  ;;  %v1123_v56 = vmul.f32 %v1091_v40, %v2390_v7  ;;  %v782_v57 = vld [vmem:[#allocation2 + $0x28] sm:$0xff]  ;;  %v735_v44 = vadd.f32 %v2388_v6, %v335_v34  ;;  %v1878_v27 = vpop.f32.mrf.mxu1 }
 0x117   : > { %752 = vst.msk [vmem:[#allocation2 + $0x50] sm:$0xff] %vm276_vm2, %v719_v30  ;;  %v717_v5 = vadd.f32 %v2398_v23, %v317_v36  ;;  %v2029_v58 = vpop.eup %2028  ;;  %v1784_v59 = vpack.c.bf16 %v1107_v47, %v1107_v47  ;;  %v2466_v54 = vadd.f32 %v2349_v52, %v782_v57  ;;  %v733_v60 = vadd.f32 %v2400_v24, %v333_v42  ;;  %v318_v7 = vld [vmem:[#allocation2 + $0x48] sm:$0xff] }
 0x118   : > { %1265 = vst.msk [vmem:[%s2450_s23] sm:$0xf] %vm1264_vm4, %v1781_v46  ;;  %2042 = vtanh.f32 %v1031_v48  ;;  %v2031_v1 = vpop.eup %2030  ;;  %1281 = vst.msk [vmem:[%s2450_s23 + $0x40] sm:$0xf] %vm1264_vm4, %v1797_v55  ;;  %v1800_v6 = vpack.c.bf16 %v1123_v56, %v1123_v56  ;;  %v1073_v23 = vadd.f32 1.0, %v2029_v58  ;;  %v798_v2 = vld [vmem:[#allocation2 + $0xa8] sm:$0xff]  ;;  %v720_v8 = vadd.f32 %v2417_v41, %v320_v49 }
 0x119   : > { %768 = vst.msk [vmem:[#allocation2 + $0xd0] sm:$0xff] %vm276_vm2, %v735_v44  ;;  %750 = vst.msk [vmem:[#allocation2 + $0x40] sm:$0xff] %vm276_vm2, %v717_v5  ;;  %v736_v24 = vadd.f32 %v2419_v43, %v336_v50  ;;  %v1089_v10 = vadd.f32 1.0, %v2031_v1  ;;  %v852_v11 = vmul.f32 0.5, %v2384_v4  ;;  %v885_v12 = vmul.f32 0.044715, %v2466_v54 }
 0x11a   : > { %1268 = vst.msk [vmem:[%s2450_s23 + $0xc] sm:$0xf] %vm1264_vm4, %v1784_v59  ;;  %v2480_v13 = vadd.f32 %v2349_v52, %v798_v2  ;;  %1284 = vst.msk [vmem:[%s2450_s23 + $0x4c] sm:$0xf] %vm1264_vm4, %v1800_v6  ;;  %v1105_v41 = vmul.f32 %v1073_v23, %v2392_v15  ;;  %v718_v43 = vadd.f32 %v2435_v3, %v318_v7  ;;  %v868_v18 = vmul.f32 0.5, %v2396_v20  ;;  %v340_v15 = vld [vmem:[#allocation2 + $0xf8] sm:$0xff] }
 0x11b   : > { %766 = vst.msk [vmem:[#allocation2 + $0xc0] sm:$0xff] %vm276_vm2, %v733_v60  ;;  %753 = vst.msk [vmem:[#allocation2 + $0x58] sm:$0xff] %vm276_vm2, %v720_v8  ;;  %v734_v4 = vadd.f32 %v2437_v51, %v334_v61  ;;  %v723_v53 = vadd.f32 %v1861_v37, %v323_v62  ;;  %v1121_v17 = vmul.f32 %v1089_v10, %v2408_v31  ;;  %v855_v57 = vmul.f32 0.5, %v2403_v28 }
 0x11c   : > { %769 = vst.msk [vmem:[#allocation2 + $0xd8] sm:$0xff] %vm276_vm2, %v736_v24  ;;  %v917_v19 = vmul.f32 %v885_v12, %v2466_v54  ;;  %v901_v21 = vmul.f32 0.044715, %v2480_v13  ;;  %v2033_v32 = vpop.eup %2032  ;;  %v1782_v33 = vpack.c.bf16 %v1105_v41, %v1105_v41  ;;  %751 = vst.msk [vmem:[#allocation2 + $0x48] sm:$0xff] %vm276_vm2, %v718_v43  ;;  %v739_v31 = vadd.f32 %v2447_v38, %v339_v9 }
 0x11d   : > { %767 = vst.msk [vmem:[#allocation2 + $0xc8] sm:$0xff] %vm276_vm2, %v734_v4  ;;  %756 = vst.msk [vmem:[#allocation2 + $0x70] sm:$0xff] %vm276_vm2, %v723_v53  ;;  %v721_v20 = vadd.f32 %v630_v63, %v321_v14  ;;  %v737_v3 = vadd.f32 %v694_v0, %v337_v16  ;;  %v2035_v51 = vpop.eup %2034  ;;  %v1798_v25 = vpack.c.bf16 %v1121_v17, %v1121_v17  ;;  %v1078_v34 = vadd.f32 1.0, %v2033_v32 }
 0x11e   : > { %v949_v36 = vmul.f32 %v917_v19, %v2466_v54  ;;  %v933_v37 = vmul.f32 %v901_v21, %v2480_v13  ;;  %v787_v39 = vld [vmem:[#allocation2 + $0x50] sm:$0xff]  ;;  %v2037_v40 = vpop.eup %2036  ;;  %1266 = vst.msk [vmem:[%s2450_s23 + $0x4] sm:$0xf] %vm1264_vm4, %v1782_v33  ;;  %v1094_v30 = vadd.f32 1.0, %v2035_v51  ;;  %v724_v38 = vadd.f32 %v1862_v26, %v324_v22 }
 0x11f   : > { %v2503_v42 = vadd.f32 %v2349_v52, %v787_v39  ;;  %772 = vst.msk [vmem:[#allocation2 + $0xf0] sm:$0xff] %vm276_vm2, %v739_v31  ;;  %754 = vst.msk [vmem:[#allocation2 + $0x60] sm:$0xff] %vm276_vm2, %v721_v20  ;;  %v740_v46 = vadd.f32 %v1878_v27, %v340_v15  ;;  %v1110_v47 = vmul.f32 %v1078_v34, %v2411_v35  ;;  %v1076_v48 = vadd.f32 1.0, %v2037_v40 }
 0x120   : > { %770 = vst.msk [vmem:[#allocation2 + $0xe0] sm:$0xff] %vm276_vm2, %v737_v3  ;;  %v981_v49 = vadd.f32 %v949_v36, %v2466_v54  ;;  %v965_v50 = vmul.f32 %v933_v37, %v2480_v13  ;;  %v803_v55 = vld [vmem:[#allocation2 + $0xd0] sm:$0xff]  ;;  %v1126_v56 = vmul.f32 %v1094_v30, %v2421_v45  ;;  %757 = vst.msk [vmem:[#allocation2 + $0x78] sm:$0xff] %vm276_vm2, %v724_v38  ;;  %v785_v45 = vld [vmem:[#allocation2 + $0x40] sm:$0xff]  ;;  %v871_v63 = vmul.f32 0.5, %v2406_v29 }
 0x121   : > { %1282 = vst.msk [vmem:[%s2450_s23 + $0x44] sm:$0xf] %vm1264_vm4, %v1798_v25  ;;  %v890_v44 = vmul.f32 0.044715, %v2503_v42  ;;  %v2517_v5 = vadd.f32 %v2349_v52, %v803_v55  ;;  %v2039_v35 = vpop.eup %2038  ;;  %v1787_v58 = vpack.c.bf16 %v1110_v47, %v1110_v47  ;;  %v1108_v59 = vmul.f32 %v1076_v48, %v852_v11 }
 0x122   : > { %773 = vst.msk [vmem:[#allocation2 + $0xf8] sm:$0xff] %vm276_vm2, %v740_v46  ;;  %v1013_v60 = vmul.f32 0.7978846, %v981_v49  ;;  %v997_v7 = vadd.f32 %v965_v50, %v2480_v13  ;;  %v2041_v61 = vpop.eup %2040  ;;  %v1803_v28 = vpack.c.bf16 %v1126_v56, %v1126_v56  ;;  %v1092_v62 = vadd.f32 1.0, %v2039_v35  ;;  %v801_v1 = vld [vmem:[#allocation2 + $0xc0] sm:$0xff]  ;;  %v788_v16 = vld [vmem:[#allocation2 + $0x58] sm:$0xff] }
 0x123   : > { %v922_v0 = vmul.f32 %v890_v44, %v2503_v42  ;;  %1271 = vst.msk [vmem:[%s2450_s23 + $0x18] sm:$0xf] %vm1264_vm4, %v1787_v58  ;;  %v1785_v6 = vpack.c.bf16 %v1108_v59, %v1108_v59  ;;  %v1079_v23 = vadd.f32 1.0, %v2041_v61  ;;  %v906_v10 = vmul.f32 0.044715, %v2517_v5  ;;  %v804_v53 = vld [vmem:[#allocation2 + $0xd8] sm:$0xff] }
 0x124   : > { %2044 = vtanh.f32 %v1013_v60  ;;  %v1029_v2 = vmul.f32 0.7978846, %v997_v7  ;;  %1287 = vst.msk [vmem:[%s2450_s23 + $0x58] sm:$0xf] %vm1264_vm4, %v1803_v28  ;;  %v1124_v24 = vmul.f32 %v1092_v62, %v868_v18  ;;  %v2531_v29 = vadd.f32 %v2349_v52, %v785_v45  ;;  %v786_v17 = vld [vmem:[#allocation2 + $0x48] sm:$0xff]  ;;  %v791_v39 = vld [vmem:[#allocation2 + $0x70] sm:$0xff] }
 0x125   : > { %v2043_v8 = vpop.eup %2042  ;;  %v954_v9 = vmul.f32 %v922_v0, %v2503_v42  ;;  %1269 = vst.msk [vmem:[%s2450_s23 + $0x10] sm:$0xf] %vm1264_vm4, %v1785_v6  ;;  %v1111_v11 = vmul.f32 %v1079_v23, %v855_v57  ;;  %v2536_v14 = vadd.f32 %v2349_v52, %v801_v1  ;;  %v938_v4 = vmul.f32 %v906_v10, %v2517_v5  ;;  %v802_v25 = vld [vmem:[#allocation2 + $0xc8] sm:$0xff] }
 0x126   : > { %v1095_v12 = vadd.f32 1.0, %v2043_v8  ;;  %2046 = vtanh.f32 %v1029_v2  ;;  %v1801_v41 = vpack.c.bf16 %v1124_v24, %v1124_v24  ;;  %v888_v21 = vmul.f32 0.044715, %v2531_v29  ;;  %v789_v23 = vld [vmem:[#allocation2 + $0x60] sm:$0xff] }
 0x127   : > { %v986_v43 = vadd.f32 %v954_v9, %v2503_v42  ;;  %v1788_v18 = vpack.c.bf16 %v1111_v11, %v1111_v11  ;;  %v970_v26 = vmul.f32 %v938_v4, %v2517_v5  ;;  %v904_v15 = vmul.f32 0.044715, %v2536_v14 }
 0x128   : > { %v1127_v19 = vmul.f32 %v1095_v12, %v871_v63  ;;  %1285 = vst.msk [vmem:[%s2450_s23 + $0x50] sm:$0xf] %vm1264_vm4, %v1801_v41  ;;  %v2546_v27 = vadd.f32 %v2349_v52, %v788_v16  ;;  %v920_v33 = vmul.f32 %v888_v21, %v2531_v29  ;;  %v2552_v31 = vadd.f32 %v2349_v52, %v804_v53  ;;  %v792_v21 = vld [vmem:[#allocation2 + $0x78] sm:$0xff] }
 0x129   : > { %v1018_v22 = vmul.f32 0.7978846, %v986_v43  ;;  %1272 = vst.msk [vmem:[%s2450_s23 + $0x1c] sm:$0xf] %vm1264_vm4, %v1788_v18  ;;  %v2555_v20 = vadd.f32 %v2349_v52, %v786_v17  ;;  %v1002_v3 = vadd.f32 %v970_v26, %v2517_v5  ;;  %v936_v51 = vmul.f32 %v904_v15, %v2536_v14 }
 0x12a   : > { %v1804_v32 = vpack.c.bf16 %v1127_v19, %v1127_v19  ;;  %v952_v34 = vmul.f32 %v920_v33, %v2531_v29  ;;  %v891_v36 = vmul.f32 0.044715, %v2546_v27  ;;  %v907_v37 = vmul.f32 0.044715, %v2552_v31  ;;  %v805_v19 = vld [vmem:[#allocation2 + $0xe0] sm:$0xff] }
 0x12b   : > { %2048 = vtanh.f32 %v1018_v22  ;;  %v853_v40 = vmul.f32 0.5, %v2466_v54  ;;  %v1034_v30 = vmul.f32 0.7978846, %v1002_v3  ;;  %v968_v38 = vmul.f32 %v936_v51, %v2536_v14  ;;  %v808_v22 = vld [vmem:[#allocation2 + $0xf8] sm:$0xff] }
 0x12c   : > { %1288 = vst.msk [vmem:[%s2450_s23 + $0x5c] sm:$0xf] %vm1264_vm4, %v1804_v32  ;;  %v889_v46 = vmul.f32 0.044715, %v2555_v20  ;;  %v984_v47 = vadd.f32 %v952_v34, %v2531_v29  ;;  %v923_v48 = vmul.f32 %v891_v36, %v2546_v27  ;;  %v939_v49 = vmul.f32 %v907_v37, %v2552_v31 }
 0x12d   : > { %v2571_v50 = vadd.f32 %v2349_v52, %v802_v25  ;;  %2050 = vtanh.f32 %v1034_v30  ;;  %v1000_v55 = vadd.f32 %v968_v38, %v2536_v14  ;;  %v2576_v54 = vadd.f32 %v2349_v52, %v791_v39 }
 0x12e   : > { %v921_v56 = vmul.f32 %v889_v46, %v2555_v20  ;;  %v869_v57 = vmul.f32 0.5, %v2480_v13  ;;  %v1016_v44 = vmul.f32 0.7978846, %v984_v47  ;;  %v955_v35 = vmul.f32 %v923_v48, %v2546_v27  ;;  %v807_v13 = vld [vmem:[#allocation2 + $0xf0] sm:$0xff] }
 0x12f   : > { %v971_v58 = vmul.f32 %v939_v49, %v2552_v31  ;;  %v858_v60 = vmul.f32 0.5, %v2503_v42  ;;  %v1032_v7 = vmul.f32 0.7978846, %v1000_v55  ;;  %v905_v61 = vmul.f32 0.044715, %v2571_v50  ;;  %v322_v55 = vld [vmem:[#allocation2 + $0x68] sm:$0xff] }
 0x130   : > { %v953_v45 = vmul.f32 %v921_v56, %v2555_v20  ;;  %2052 = vtanh.f32 %v1016_v44  ;;  %v987_v62 = vadd.f32 %v955_v35, %v2546_v27  ;;  %v894_v42 = vmul.f32 0.044715, %v2576_v54  ;;  %v633_v56 = vpop.f32.mrf.mxu0 }
 0x131   : > { %v2045_v59 = vpop.eup %2044  ;;  %v1003_v63 = vadd.f32 %v971_v58, %v2552_v31  ;;  %2054 = vtanh.f32 %v1032_v7  ;;  %v937_v6 = vmul.f32 %v905_v61, %v2571_v50  ;;  %v2592_v16 = vadd.f32 %v2349_v52, %v807_v13 }
 0x132   : > { %v1077_v28 = vadd.f32 1.0, %v2045_v59  ;;  %v985_v1 = vadd.f32 %v953_v45, %v2555_v20  ;;  %v1019_v24 = vmul.f32 0.7978846, %v987_v62  ;;  %v926_v12 = vmul.f32 %v894_v42, %v2576_v54 }
 0x133   : > { %v2047_v0 = vpop.eup %2046  ;;  %v1035_v9 = vmul.f32 0.7978846, %v1003_v63  ;;  %v969_v11 = vmul.f32 %v937_v6, %v2571_v50  ;;  %v2595_v4 = vadd.f32 %v2349_v52, %v789_v23  ;;  %v874_v53 = vmul.f32 0.5, %v2517_v5  ;;  %v697_v6 = vpop.f32.mrf.mxu1 }
 0x134   : > { %v1109_v2 = vmul.f32 %v1077_v28, %v853_v40  ;;  %v1093_v8 = vadd.f32 1.0, %v2047_v0  ;;  %v1017_v10 = vmul.f32 0.7978846, %v985_v1  ;;  %2056 = vtanh.f32 %v1019_v24  ;;  %v338_v1 = vld [vmem:[#allocation2 + $0xe8] sm:$0xff] }
 0x135   : > { %2058 = vtanh.f32 %v1035_v9  ;;  %v1001_v17 = vadd.f32 %v969_v11, %v2571_v50  ;;  %v958_v18 = vmul.f32 %v926_v12, %v2576_v54  ;;  %v856_v32 = vmul.f32 0.5, %v2531_v29 }
 0x136   : > { %v1786_v41 = vpack.c.bf16 %v1109_v2, %v1109_v2  ;;  %v1125_v43 = vmul.f32 %v1093_v8, %v869_v57  ;;  %2060 = vtanh.f32 %v1017_v10  ;;  %v910_v33 = vmul.f32 0.044715, %v2592_v16 }
 0x137   : > { %v1033_v5 = vmul.f32 0.7978846, %v1001_v17  ;;  %v990_v51 = vadd.f32 %v958_v18, %v2576_v54  ;;  %v892_v25 = vmul.f32 0.044715, %v2595_v4  ;;  %v2610_v36 = vadd.f32 %v2349_v52, %v805_v19 }
 0x138   : > { %v2049_v26 = vpop.eup %2048  ;;  %1270 = vst.msk [vmem:[%s2450_s23 + $0x14] sm:$0xf] %vm1264_vm4, %v1786_v41  ;;  %v1802_v15 = vpack.c.bf16 %v1125_v43, %v1125_v43  ;;  %v942_v34 = vmul.f32 %v910_v33, %v2592_v16  ;;  %v2613_v37 = vadd.f32 %v2349_v52, %v792_v21  ;;  %v2616_v29 = vadd.f32 %v2349_v52, %v808_v22 }
 0x139   : > { %v1082_v3 = vadd.f32 1.0, %v2049_v26  ;;  %2062 = vtanh.f32 %v1033_v5  ;;  %v1022_v40 = vmul.f32 0.7978846, %v990_v51  ;;  %v924_v30 = vmul.f32 %v892_v25, %v2595_v4 }
 0x13a   : > { %1286 = vst.msk [vmem:[%s2450_s23 + $0x54] sm:$0xf] %vm1264_vm4, %v1802_v15  ;;  %v2051_v38 = vpop.eup %2050  ;;  %v872_v46 = vmul.f32 0.5, %v2536_v14  ;;  %v859_v47 = vmul.f32 0.5, %v2546_v27  ;;  %v974_v48 = vmul.f32 %v942_v34, %v2592_v16  ;;  %v908_v49 = vmul.f32 0.044715, %v2610_v36 }
 0x13b   : > { %v1114_v39 = vmul.f32 %v1082_v3, %v858_v60  ;;  %v1098_v44 = vadd.f32 1.0, %v2051_v38  ;;  %2064 = vtanh.f32 %v1022_v40  ;;  %v956_v35 = vmul.f32 %v924_v30, %v2595_v4 }
 0x13c   : > { %v875_v58 = vmul.f32 0.5, %v2552_v31  ;;  %v1006_v59 = vadd.f32 %v974_v48, %v2592_v16  ;;  %v940_v60 = vmul.f32 %v908_v49, %v2610_v36  ;;  %v895_v14 = vmul.f32 0.044715, %v2613_v37 }
 0x13d   : > { %v1791_v57 = vpack.c.bf16 %v1114_v39, %v1114_v39  ;;  %v2053_v27 = vpop.eup %2052  ;;  %v1130_v7 = vmul.f32 %v1098_v44, %v874_v53  ;;  %v988_v45 = vadd.f32 %v956_v35, %v2595_v4  ;;  %v911_v61 = vmul.f32 0.044715, %v2616_v29 }
 0x13e   : > { %v722_v28 = vadd.f32 %v633_v56, %v322_v55  ;;  %v2055_v62 = vpop.eup %2054  ;;  %v1080_v63 = vadd.f32 1.0, %v2053_v27  ;;  %v1038_v13 = vmul.f32 0.7978846, %v1006_v59  ;;  %v972_v31 = vmul.f32 %v940_v60, %v2610_v36 }
 0x13f   : > { %1275 = vst.msk [vmem:[%s2450_s23 + $0x28] sm:$0xf] %vm1264_vm4, %v1791_v57  ;;  %v927_v0 = vmul.f32 %v895_v14, %v2613_v37  ;;  %v1807_v42 = vpack.c.bf16 %v1130_v7, %v1130_v7  ;;  %v1096_v23 = vadd.f32 1.0, %v2055_v62  ;;  %v1020_v2 = vmul.f32 0.7978846, %v988_v45 }
 0x140   : > { %v943_v8 = vmul.f32 %v911_v61, %v2616_v29  ;;  %755 = vst.msk [vmem:[#allocation2 + $0x68] sm:$0xff] %vm276_vm2, %v722_v28  ;;  %v1112_v24 = vmul.f32 %v1080_v63, %v856_v32  ;;  %2066 = vtanh.f32 %v1038_v13  ;;  %v1004_v9 = vadd.f32 %v972_v31, %v2610_v36 }
 0x141   : > { %v959_v10 = vmul.f32 %v927_v0, %v2613_v37  ;;  %v2057_v11 = vpop.eup %2056  ;;  %1291 = vst.msk [vmem:[%s2450_s23 + $0x68] sm:$0xf] %vm1264_vm4, %v1807_v42  ;;  %v1128_v12 = vmul.f32 %v1096_v23, %v872_v46  ;;  %2068 = vtanh.f32 %v1020_v2  ;;  %v738_v43 = vadd.f32 %v697_v6, %v338_v1 }
 0x142   : > { %v975_v41 = vmul.f32 %v943_v8, %v2616_v29  ;;  %v2059_v53 = vpop.eup %2058  ;;  %v1789_v17 = vpack.c.bf16 %v1112_v24, %v1112_v24  ;;  %v1083_v18 = vadd.f32 1.0, %v2057_v11  ;;  %v1036_v19 = vmul.f32 0.7978846, %v1004_v9 }
 0x143   : > { %v991_v21 = vadd.f32 %v959_v10, %v2613_v37  ;;  %v2061_v22 = vpop.eup %2060  ;;  %v1805_v26 = vpack.c.bf16 %v1128_v12, %v1128_v12  ;;  %v1099_v15 = vadd.f32 1.0, %v2059_v53  ;;  %v857_v32 = vmul.f32 0.5, %v2555_v20  ;;  %771 = vst.msk [vmem:[#allocation2 + $0xe8] sm:$0xff] %vm276_vm2, %v738_v43 }
 0x144   : > { %v1007_v33 = vadd.f32 %v975_v41, %v2616_v29  ;;  %1273 = vst.msk [vmem:[%s2450_s23 + $0x20] sm:$0xf] %vm1264_vm4, %v1789_v17  ;;  %v1115_v3 = vmul.f32 %v1083_v18, %v859_v47  ;;  %v1081_v5 = vadd.f32 1.0, %v2061_v22  ;;  %2070 = vtanh.f32 %v1036_v19 }
 0x145   : > { %v1023_v51 = vmul.f32 0.7978846, %v991_v21  ;;  %1289 = vst.msk [vmem:[%s2450_s23 + $0x60] sm:$0xf] %vm1264_vm4, %v1805_v26  ;;  %v1131_v25 = vmul.f32 %v1099_v15, %v875_v58  ;;  %v873_v20 = vmul.f32 0.5, %v2571_v50  ;;  %v862_v57 = vmul.f32 0.5, %v2576_v54 }
 0x146   : > { %v1039_v34 = vmul.f32 0.7978846, %v1007_v33  ;;  %v2063_v39 = vpop.eup %2062  ;;  %v1792_v40 = vpack.c.bf16 %v1115_v3, %v1115_v3  ;;  %v1113_v30 = vmul.f32 %v1081_v5, %v857_v32  ;;  %v878_v54 = vmul.f32 0.5, %v2592_v16 }
 0x147   : > { %2072 = vtanh.f32 %v1023_v51  ;;  %v790_v38 = vld [vmem:[#allocation2 + $0x68] sm:$0xff]  ;;  %v1808_v46 = vpack.c.bf16 %v1131_v25, %v1131_v25  ;;  %v1097_v48 = vadd.f32 1.0, %v2063_v39  ;;  %v860_v63 = vmul.f32 0.5, %v2595_v4 }
 0x148   : > { %2074 = vtanh.f32 %v1039_v34  ;;  %v829_v47 = vadd.f32 %v2349_v52, %v790_v38  ;;  %v2065_v49 = vpop.eup %2064  ;;  %1276 = vst.msk [vmem:[%s2450_s23 + $0x2c] sm:$0xf] %vm1264_vm4, %v1792_v40  ;;  %v1790_v55 = vpack.c.bf16 %v1113_v30, %v1113_v30  ;;  %v876_v8 = vmul.f32 0.5, %v2610_v36 }
 0x149   : > { %1292 = vst.msk [vmem:[%s2450_s23 + $0x6c] sm:$0xf] %vm1264_vm4, %v1808_v46  ;;  %v1129_v56 = vmul.f32 %v1097_v48, %v873_v20  ;;  %v1086_v44 = vadd.f32 1.0, %v2065_v49  ;;  %v863_v12 = vmul.f32 0.5, %v2613_v37  ;;  %v879_v43 = vmul.f32 0.5, %v2616_v29 }
 0x14a   : > { %v893_v50 = vmul.f32 0.044715, %v829_v47  ;;  %1274 = vst.msk [vmem:[%s2450_s23 + $0x24] sm:$0xf] %vm1264_vm4, %v1790_v55  ;;  %v806_v35 = vld [vmem:[#allocation2 + $0xe8] sm:$0xff]  ;;  %v861_v26 = vmul.f32 0.5, %v829_v47 }
 0x14b   : > { %v1806_v58 = vpack.c.bf16 %v1129_v56, %v1129_v56  ;;  %v1118_v59 = vmul.f32 %v1086_v44, %v862_v57  ;;  %v845_v14 = vadd.f32 %v2349_v52, %v806_v35 }
 0x14c   : > { %v925_v60 = vmul.f32 %v893_v50, %v829_v47 }
 0x14d   : > { %v2067_v27 = vpop.eup %2066  ;;  %1290 = vst.msk [vmem:[%s2450_s23 + $0x64] sm:$0xf] %vm1264_vm4, %v1806_v58  ;;  %v1795_v7 = vpack.c.bf16 %v1118_v59, %v1118_v59  ;;  %v909_v61 = vmul.f32 0.044715, %v845_v14  ;;  %v877_v3 = vmul.f32 0.5, %v845_v14 }
 0x14e   : > { %v957_v45 = vmul.f32 %v925_v60, %v829_v47  ;;  %v2069_v28 = vpop.eup %2068  ;;  %v1102_v62 = vadd.f32 1.0, %v2067_v27 }
 0x14f   : > { %1279 = vst.msk [vmem:[%s2450_s23 + $0x38] sm:$0xf] %vm1264_vm4, %v1795_v7  ;;  %v1084_v13 = vadd.f32 1.0, %v2069_v28  ;;  %v941_v0 = vmul.f32 %v909_v61, %v845_v14 }
 0x150   : > { %v989_v31 = vadd.f32 %v957_v45, %v829_v47  ;;  %v1134_v1 = vmul.f32 %v1102_v62, %v878_v54 }
 0x151   : > { %v2071_v52 = vpop.eup %2070  ;;  %v1116_v6 = vmul.f32 %v1084_v13, %v860_v63  ;;  %v973_v23 = vmul.f32 %v941_v0, %v845_v14 }
 0x152   : > { %v1021_v42 = vmul.f32 0.7978846, %v989_v31  ;;  %v1811_v2 = vpack.c.bf16 %v1134_v1, %v1134_v1  ;;  %v1100_v24 = vadd.f32 1.0, %v2071_v52 }
 0x153   : > { %v1793_v9 = vpack.c.bf16 %v1116_v6, %v1116_v6  ;;  %v1005_v10 = vadd.f32 %v973_v23, %v845_v14 }
 0x154   : > { %v2073_v16 = vpop.eup %2072  ;;  %2076 = vtanh.f32 %v1021_v42  ;;  %1295 = vst.msk [vmem:[%s2450_s23 + $0x78] sm:$0xf] %vm1264_vm4, %v1811_v2  ;;  %v1132_v11 = vmul.f32 %v1100_v24, %v876_v8 }
 0x155   : > { %v2075_v4 = vpop.eup %2074  ;;  %v1087_v41 = vadd.f32 1.0, %v2073_v16  ;;  %1277 = vst.msk [vmem:[%s2450_s23 + $0x30] sm:$0xf] %vm1264_vm4, %v1793_v9  ;;  %v1037_v53 = vmul.f32 0.7978846, %v1005_v10 }
 0x156   : > { %v1103_v36 = vadd.f32 1.0, %v2075_v4  ;;  %v1809_v17 = vpack.c.bf16 %v1132_v11, %v1132_v11 }
 0x157   : > { %v1119_v18 = vmul.f32 %v1087_v41, %v863_v12  ;;  %2078 = vtanh.f32 %v1037_v53 }
 0x158   : > { %v1135_v19 = vmul.f32 %v1103_v36, %v879_v43  ;;  %1293 = vst.msk [vmem:[%s2450_s23 + $0x70] sm:$0xf] %vm1264_vm4, %v1809_v17 }
 0x159   : > { %v1796_v21 = vpack.c.bf16 %v1119_v18, %v1119_v18 }
 0x15a   : > { %v1812_v22 = vpack.c.bf16 %v1135_v19, %v1135_v19 }
 0x15b   : > { %1280 = vst.msk [vmem:[%s2450_s23 + $0x3c] sm:$0xf] %vm1264_vm4, %v1796_v21 }
 0x15c   : > { %1296 = vst.msk [vmem:[%s2450_s23 + $0x7c] sm:$0xf] %vm1264_vm4, %v1812_v22 }
 0x161   : > { %v2077_v37 = vpop.eup %2076 }
 0x162   : > { %v1085_v15 = vadd.f32 1.0, %v2077_v37 }
 0x164   : > { %v1117_v29 = vmul.f32 %v1085_v15, %v861_v26  ;;  %v2079_v32 = vpop.eup %2078 }
 0x165   : > { %v1101_v5 = vadd.f32 1.0, %v2079_v32 }
 0x166   : > { %v1794_v33 = vpack.c.bf16 %v1117_v29, %v1117_v29 }
 0x167   : > { %v1133_v51 = vmul.f32 %v1101_v5, %v877_v3  ;;  %1303 = sbr.rel (!%p2238_p3) target bundleno = 424 (0x1a8), region = 44 }
 0x168   : > { %1278 = vst.msk [vmem:[%s2450_s23 + $0x34] sm:$0xf] %vm1264_vm4, %v1794_v33 }
 0x169   : > { %v1810_v25 = vpack.c.bf16 %v1133_v51, %v1133_v51 }
 0x16b   : > { %1294 = vst.msk [vmem:[%s2450_s23 + $0x74] sm:$0xf] %vm1264_vm4, %v1810_v25 }
 0x16c   : > { %s2837_s24 = smov (!%p1306_p9, %s1305_s24), 32 }
 0x16d   : > { %s1766_s30 = sshll.u32 %s2837_s24, 6 }
 0x16e   : > { %p1769_p10 = scmp.eq.s32.totalorder %s1766_s30, 0 }
 0x16f   : > { %s2695_s4 = sshrl.u32 (!%p1769_p10), %s2837_s24, 5 }
 0x170   : > { %1315 = sbr.rel (%p1769_p10) target bundleno = 424 (0x1a8), region = 48  ;;  %p1770_p11 = scmp.le.s32.totalorder (!%p1769_p10), %s2695_s4, 0 }
 0x175   : > { %1611 = sbr.rel (%p1770_p11) target bundleno = 407 (0x197), region = 126  ;;  %s2827_s14 = smov (!%p1770_p11), %s2689_s29 }
 0x176   : > { %s2828_s20 = smov (!%p1770_p11), %s2450_s23  ;;  %s2704_s27 = smov (!%p1770_p11), 0  }
 0x177   : > { %s2706_s5 = smov (!%p1770_p11), 0  }
 0x17a LB: >> { %v1332_v34 = vld [vmem:[%s2158_s20] sm:$0xf]  ;;  %v1334_v39 = vld [vmem:[%s2158_s20 + $0x4] sm:$0xf]  ;;  %v1336_v40 = vld [vmem:[%s2158_s20 + $0x8] sm:$0xf]  ;;  %s2166_s5 = sphi %s2706_s5, %s1326_s5   ;;  %s2162_s27 = sphi %s2704_s27, %s2829_s27   ;;  %s2158_s20 = sphi %s2828_s20, %s1401_s20   ;;  %s2154_s14 = sphi %s2827_s14, %s1402_s14  }
 0x17b   : >> { %1333 = vst [vmem:[%s2154_s14] sm:$0xf] %v1332_v34  ;;  %1335 = vst [vmem:[%s2154_s14 + $0x4] sm:$0xf] %v1334_v39  ;;  %v1338_v30 = vld [vmem:[%s2158_s20 + $0xc] sm:$0xf]  ;;  %s1396_s6 = sadd.s32 1, %s2162_s27 }
 0x17c   : >> { %1337 = vst [vmem:[%s2154_s14 + $0x8] sm:$0xf] %v1336_v40  ;;  %v1340_v20 = vld [vmem:[%s2158_s20 + $0x10] sm:$0xf]  ;;  %v1342_v38 = vld [vmem:[%s2158_s20 + $0x14] sm:$0xf]  ;;  %p1397_p12 = scmp.ge.s32.totalorder %s1396_s6, %s2695_s4 }
 0x17d   : >> { %1339 = vst [vmem:[%s2154_s14 + $0xc] sm:$0xf] %v1338_v30  ;;  %1341 = vst [vmem:[%s2154_s14 + $0x10] sm:$0xf] %v1340_v20  ;;  %v1344_v46 = vld [vmem:[%s2158_s20 + $0x18] sm:$0xf] }
 0x17e   : >> { %1343 = vst [vmem:[%s2154_s14 + $0x14] sm:$0xf] %v1342_v38  ;;  %v1346_v48 = vld [vmem:[%s2158_s20 + $0x1c] sm:$0xf]  ;;  %v1348_v47 = vld [vmem:[%s2158_s20 + $0x20] sm:$0xf] }
 0x17f   : >> { %1345 = vst [vmem:[%s2154_s14 + $0x18] sm:$0xf] %v1344_v46  ;;  %1347 = vst [vmem:[%s2154_s14 + $0x1c] sm:$0xf] %v1346_v48  ;;  %v1350_v49 = vld [vmem:[%s2158_s20 + $0x24] sm:$0xf] }
 0x180   : >> { %1349 = vst [vmem:[%s2154_s14 + $0x20] sm:$0xf] %v1348_v47  ;;  %v1352_v55 = vld [vmem:[%s2158_s20 + $0x28] sm:$0xf]  ;;  %v1354_v56 = vld [vmem:[%s2158_s20 + $0x2c] sm:$0xf] }
 0x181   : >> { %1351 = vst [vmem:[%s2154_s14 + $0x24] sm:$0xf] %v1350_v49  ;;  %1353 = vst [vmem:[%s2154_s14 + $0x28] sm:$0xf] %v1352_v55  ;;  %v1356_v57 = vld [vmem:[%s2158_s20 + $0x30] sm:$0xf] }
 0x182   : >> { %1355 = vst [vmem:[%s2154_s14 + $0x2c] sm:$0xf] %v1354_v56  ;;  %v1358_v44 = vld [vmem:[%s2158_s20 + $0x34] sm:$0xf]  ;;  %v1360_v50 = vld [vmem:[%s2158_s20 + $0x38] sm:$0xf] }
 0x183   : >> { %1357 = vst [vmem:[%s2154_s14 + $0x30] sm:$0xf] %v1356_v57  ;;  %1359 = vst [vmem:[%s2154_s14 + $0x34] sm:$0xf] %v1358_v44  ;;  %v1362_v35 = vld [vmem:[%s2158_s20 + $0x3c] sm:$0xf] }
 0x184   : >> { %1361 = vst [vmem:[%s2154_s14 + $0x38] sm:$0xf] %v1360_v50  ;;  %v1364_v58 = vld [vmem:[%s2158_s20 + $0x40] sm:$0xf]  ;;  %v1366_v59 = vld [vmem:[%s2158_s20 + $0x44] sm:$0xf] }
 0x185   : >> { %1363 = vst [vmem:[%s2154_s14 + $0x3c] sm:$0xf] %v1362_v35  ;;  %1365 = vst [vmem:[%s2154_s14 + $0x40] sm:$0xf] %v1364_v58  ;;  %v1368_v60 = vld [vmem:[%s2158_s20 + $0x48] sm:$0xf] }
 0x186   : >> { %1367 = vst [vmem:[%s2154_s14 + $0x44] sm:$0xf] %v1366_v59  ;;  %v1370_v14 = vld [vmem:[%s2158_s20 + $0x4c] sm:$0xf]  ;;  %v1372_v27 = vld [vmem:[%s2158_s20 + $0x50] sm:$0xf] }
 0x187   : >> { %1369 = vst [vmem:[%s2154_s14 + $0x48] sm:$0xf] %v1368_v60  ;;  %1371 = vst [vmem:[%s2154_s14 + $0x4c] sm:$0xf] %v1370_v14  ;;  %v1374_v7 = vld [vmem:[%s2158_s20 + $0x54] sm:$0xf] }
 0x188   : >> { %1373 = vst [vmem:[%s2154_s14 + $0x50] sm:$0xf] %v1372_v27  ;;  %v1376_v45 = vld [vmem:[%s2158_s20 + $0x58] sm:$0xf]  ;;  %v1378_v61 = vld [vmem:[%s2158_s20 + $0x5c] sm:$0xf] }
 0x189   : >> { %1375 = vst [vmem:[%s2154_s14 + $0x54] sm:$0xf] %v1374_v7  ;;  %1377 = vst [vmem:[%s2154_s14 + $0x58] sm:$0xf] %v1376_v45  ;;  %v1380_v28 = vld [vmem:[%s2158_s20 + $0x60] sm:$0xf] }
 0x18a   : >> { %1379 = vst [vmem:[%s2154_s14 + $0x5c] sm:$0xf] %v1378_v61  ;;  %v1382_v54 = vld [vmem:[%s2158_s20 + $0x64] sm:$0xf]  ;;  %v1384_v62 = vld [vmem:[%s2158_s20 + $0x68] sm:$0xf] }
 0x18b   : >> { %1381 = vst [vmem:[%s2154_s14 + $0x60] sm:$0xf] %v1380_v28  ;;  %1383 = vst [vmem:[%s2154_s14 + $0x64] sm:$0xf] %v1382_v54  ;;  %v1386_v63 = vld [vmem:[%s2158_s20 + $0x6c] sm:$0xf] }
 0x18c   : >> { %1385 = vst [vmem:[%s2154_s14 + $0x68] sm:$0xf] %v1384_v62  ;;  %v1388_v13 = vld [vmem:[%s2158_s20 + $0x70] sm:$0xf]  ;;  %v1390_v31 = vld [vmem:[%s2158_s20 + $0x74] sm:$0xf] }
 0x18d   : >> { %1387 = vst [vmem:[%s2154_s14 + $0x6c] sm:$0xf] %v1386_v63  ;;  %1389 = vst [vmem:[%s2154_s14 + $0x70] sm:$0xf] %v1388_v13  ;;  %v1392_v0 = vld [vmem:[%s2158_s20 + $0x78] sm:$0xf] }
 0x18e   : >> { %1391 = vst [vmem:[%s2154_s14 + $0x74] sm:$0xf] %v1390_v31  ;;  %v1394_v1 = vld [vmem:[%s2158_s20 + $0x7c] sm:$0xf]  ;;  %1393 = vst [vmem:[%s2154_s14 + $0x78] sm:$0xf] %v1392_v0 }
 0x18f   : >> { %1395 = vst [vmem:[%s2154_s14 + $0x7c] sm:$0xf] %v1394_v1  ;;  %s2839_s6 = smov (%p1397_p12, %s1396_s6), 0  ;;  %s1326_s5 = sadd.s32 1, %s2166_s5  }
 0x190   : >> { %s1771_s7 = sshll.u32 %s2839_s6, 7  ;;  %p1325_p13 = scmp.ge.s32.totalorder %s1326_s5, %s2695_s4 }
 0x191   : >> { %s1401_s20 = scalar_lea.vmem %s2450_s23, %s1771_s7 [#allocation3]   ;;  %s1402_s14 = scalar_lea.vmem %s2689_s29, %s1771_s7  }
 0x192   : >> { %s2829_s27 = smov %s2839_s6  ;;  %1328 = sbr.rel (!%p1325_p13) target bundleno = 378 (0x17a), region = 132 }
 0x197 PF: > { %s2799_s8 = sand.u32 31, %s2837_s24   ;;  %s1814_s9 = sshll.u32 %s2695_s4, 7 }
 0x198   : > { %s1407_s10 = scalar_lea.vmem %s2450_s23, %s1814_s9 [#allocation3]   ;;  %s1409_s11 = scalar_lea.vmem %s2689_s29, %s1814_s9  }
 0x199   : > { %p1776_p0 = scmp.le.s32.totalorder %s2799_s8, 0 }
 0x19a   : > { %s2168_s17 = smov (!%p1776_p0), %s1409_s11   ;;  %s2172_s19 = smov (!%p1776_p0), %s1407_s10  }
 0x19b   : > { %1625 = sbr.rel (%p1776_p0) target bundleno = 424 (0x1a8), region = 137  ;;  %s2176_s21 = smov (!%p1776_p0), 0  }
 0x19c   : > { %s2180_s12 = smov (!%p1776_p0), 0  }
 0x1a0 LB: >> { %v1419_v52 = vld [vmem:[%s2174_s19] sm:$0xf]  ;;  %s1421_s24 = sadd.s32 1, %s2178_s21  ;;  %s1413_s12 = sadd.s32 1, %s2182_s12   ;;  %s2182_s12 = sphi %s2180_s12, %s1413_s12   ;;  %s2178_s21 = sphi %s2176_s21, %s2177_s21   ;;  %s2174_s19 = sphi %s2172_s19, %s1426_s19   ;;  %s2170_s17 = sphi %s2168_s17, %s1427_s17  }
 0x1a1   : >> { %1420 = vst [vmem:[%s2170_s17] sm:$0xf] %v1419_v52  ;;  %p1422_p1 = scmp.ge.s32.totalorder %s1421_s24, %s2799_s8  ;;  %p1412_p2 = scmp.ge.s32.totalorder %s1413_s12, %s2799_s8 }
 0x1a3   : >> { %s2841_s24 = smov (%p1422_p1, %s1421_s24), 0  ;;  %1415 = sbr.rel (!%p1412_p2) target bundleno = 416 (0x1a0), region = 143 }
 0x1a4   : >> { %s1777_s23 = sshll.u32 %s2841_s24, 2  ;;  %s2177_s21 = smov %s2841_s24  }
 0x1a5   : >> { %s1426_s19 = scalar_lea.vmem %s1407_s10, %s1777_s23 [#allocation3]   ;;  %s1427_s17 = scalar_lea.vmem %s1409_s11, %s1777_s23  }
 0x1a8 PF: > { %s13_s16 = sadd.s32 1, %s2150_s16   ;;  %s2830_s12 = smov %s2138_s13 }
 0x1a9   : > { %p10_p3 = scmp.ge.s32.totalorder %s13_s16, 22   ;;  %s2831_s13 = smov %s2247_s22 }
 0x1aa   : > { %s2832_s14 = smov %s2146_s15  ;;  %s2833_s15 = smov %s2835_s18 }
 0x1ab   :  { %12 = sbr.rel (!%p10_p3) target bundleno = 3 (0x3), region = 154 }

// kernel: video_transformer_forward.12
= control target key start
LH: loop header
LB: loop body
LE: loop exit
PB: predicated region body
PF: predicated region fallthrough
CT: control target
= control target key end

     0   :  { %s1849_s12 = smov 0   ;;  %s1851_s13 = smov 0   ;;  %s2267_s0 = inlined_call_operand.vmem [shape: bf16[200,288], index: 0, kind: input, shape index: {}]   ;;  %s2268_s1 = inlined_call_operand.vmem [shape: bf16[288,32], index: 1, kind: input, shape index: {}]   ;;  %s2269_s2 = inlined_call_operand.vmem [shape: f32[1,32], index: 2, kind: input, shape index: {}]   ;;  %s2270_s3 = inlined_call_operand.vmem [shape: bf16[200,32], index: 3, kind: output, shape index: {}]  }
   0x1   :  { %s1853_s14 = smov 0   ;;  %s1855_s15 = smov 0  }
   0x2   :  { %s1857_s16 = smov 0  }
   0x3 LB: > { %s1346_s17 = sadd.s32 4294967295, %s1793_s16   ;;  %s32_s18 = sadd.s32 1, %s1789_s15  ;;  %s1793_s16 = sphi %s1857_s16, %s13_s16   ;;  %s1789_s15 = sphi %s1855_s15, %s2278_s15   ;;  %s1785_s14 = sphi %s1853_s14, %s2277_s14   ;;  %s1781_s13 = sphi %s1851_s13, %s2276_s13   ;;  %s1777_s12 = sphi %s1849_s12, %s2275_s12  }
   0x4   : > { %p34_p0 = scmp.ge.s32.totalorder %s32_s18, 2  ;;  %s123_s19 = sadd.s32 1, %s1781_s13 }
   0x5   : > { %p133_p1 = scmp.ne.s32.totalorder %s1781_s13, %s1777_s12  ;;  %p134_p2 = scmp.eq.s32.totalorder %s1346_s17, 1 }
   0x6   : > { %s2280_s18 = smov (%p34_p0, %s32_s18), 0  ;;  %p1352_p4 = scmp.ge.s32.totalorder %s1793_s16, 1 }
   0x7   : > { %p1881_p3 = por %p134_p2, %p133_p1  ;;  %s118_s21 = ssub.s32 %s1789_s15, %s2280_s18 }
   0x8   : > { %p201_p5 = scmp.lt.s32.totalorder %s1793_s16, 3  ;;  %p121_p6 = scmp.eq.s32.totalorder %s118_s21, 0 }
   0xa   : > { %p202_p7 = pnand %p1352_p4, %p201_p5 }
   0xb   : > { %s1890_s22 = scalar_select %p121_p6, %s1781_s13, %s123_s19  }
   0xc   : > { %205 = sbr.rel (%p202_p7) target bundleno = 404 (0x194), region = 32  ;;  %s242_s4 = sand.u32 (!%p202_p7), 1, %s1777_s12  }
   0xd   : > { %s1905_s29 = smul.u32 (!%p202_p7), 13, %s1785_s14 }
   0xe   : > { %s2095_s5 = smul.u32 (!%p202_p7), 52, %s242_s4 }
   0xf   : > { %p252_p8 = scmp.lt.s32.totalorder (!%p202_p7), %s1905_s29, 24 }
  0x10   : > { %s2116_s12 = scalar_lea.vmem (!%p202_p7), [#allocation3], %s2095_s5  }
  0x11   : > { %v1648_v0 = vld [vmem:[%s2268_s1 + $0x78] sm:$0xff]   ;;  %v1827_v2 = vmov 0.0   ;;  %v1650_v3 = vld [vmem:[%s2268_s1 + $0x70] sm:$0xff]   ;;  %vm1828_vm0 = vmmov 0   ;;  %vm289_vm1 = vcmask 261120   ;;  %v1652_v5 = vld [vmem:[%s2268_s1 + $0x68] sm:$0xff]  }
  0x12   : > { %v1649_v1 = vld [vmem:[%s2268_s1 + $0x38] sm:$0xff]   ;;  %1507 = vmatprep.subr.bf16.mxu1 %v1827_v2  ;;  %1440 = vmatprep.subr.bf16.mxu0 %v1648_v0  ;;  %v1651_v4 = vld [vmem:[%s2268_s1 + $0x30] sm:$0xff]   ;;  %290 = vst.msk [vmem:[#allocation2] sm:$0xff] %vm289_vm1, %v1827_v2  ;;  %291 = vst.msk [vmem:[#allocation2 + $0x8] sm:$0xff] %vm289_vm1, %v1827_v2  ;;  %s253_s9 = scalar_select %p252_p8, %s1905_s29, 24  ;;  %vm1016_vm2 = vcmask 257024  }
  0x13   : > { %1511 = vmatprep.mubr.msk.bf16.mxu1 %vm1828_vm0, %v1827_v2  ;;  %1441 = vmatpush3.bf16.msra.mxu0 %v1649_v1  ;;  %292 = vst.msk [vmem:[#allocation2 + $0x10] sm:$0xff] %vm289_vm1, %v1827_v2  ;;  %293 = vst.msk [vmem:[#allocation2 + $0x18] sm:$0xff] %vm289_vm1, %v1827_v2  ;;  %v1653_v6 = vld [vmem:[%s2268_s1 + $0x28] sm:$0xff]   ;;  %v1654_v7 = vld [vmem:[%s2268_s1 + $0x60] sm:$0xff]   ;;  %s1038_s6 = ssub.s32 (%p1881_p3), 25, %s1905_s29 }
  0x14   : > { %1442 = vmatprep.subr.bf16.mxu0 %v1650_v3  ;;  %294 = vst.msk [vmem:[#allocation2 + $0x20] sm:$0xff] %vm289_vm1, %v1827_v2  ;;  %295 = vst.msk [vmem:[#allocation2 + $0x28] sm:$0xff] %vm289_vm1, %v1827_v2  ;;  %v1655_v8 = vld [vmem:[%s2268_s1 + $0x20] sm:$0xff]   ;;  %v1656_v9 = vld [vmem:[%s2268_s1 + $0x58] sm:$0xff]   ;;  %s1540_s24 = smul.u32 12, %s253_s9  ;;  %p1039_p9 = scmp.lt.s32.totalorder (%p1881_p3), %s1038_s6, 13 }
  0x15   : > { %296 = vst.msk [vmem:[#allocation2 + $0x30] sm:$0xff] %vm289_vm1, %v1827_v2  ;;  %297 = vst.msk [vmem:[#allocation2 + $0x38] sm:$0xff] %vm289_vm1, %v1827_v2  ;;  %v1660_v10 = vld [vmem:[%s2268_s1 + $0x88] sm:$0xff]   ;;  %v1657_v11 = vld [vmem:[%s2268_s1 + $0x18] sm:$0xff]  }
  0x16   : > { %298 = vst.msk [vmem:[#allocation2 + $0x40] sm:$0xff] %vm289_vm1, %v1827_v2  ;;  %299 = vst.msk [vmem:[#allocation2 + $0x48] sm:$0xff] %vm289_vm1, %v1827_v2  ;;  %1508 = vmatpush3.bf16.msra.mxu1 %v1660_v10  ;;  %v1663_v12 = vld [vmem:[%s2268_s1 + $0x80] sm:$0xff]   ;;  %s1968_s7 = scalar_lea.vmem %s2267_s0, %s1540_s24  ;;  %v1658_v13 = vld [vmem:[%s2268_s1 + $0x50] sm:$0xff]  }
  0x17   : > { %300 = vst.msk [vmem:[#allocation2 + $0x50] sm:$0xff] %vm289_vm1, %v1827_v2  ;;  %301 = vst.msk [vmem:[#allocation2 + $0x58] sm:$0xff] %vm289_vm1, %v1827_v2  ;;  %1443 = vmatpush3.bf16.msra.mxu0 %v1651_v4  ;;  %1509 = vmatprep.subr.bf16.mxu1 %v1827_v2  ;;  %v1659_v14 = vld [vmem:[%s2268_s1 + $0x10] sm:$0xff]   ;;  %v1661_v16 = vld [vmem:[%s2268_s1 + $0x48] sm:$0xff]  }
  0x18   : > { %302 = vst.msk [vmem:[#allocation2 + $0x60] sm:$0xff] %vm289_vm1, %v1827_v2  ;;  %1444 = vmatprep.subr.bf16.mxu0 %v1652_v5  ;;  %v1666_v15 = vld [vmem:[%s1968_s7 + $0x8] ss:$12 sps:$4 sm:$0xff]   ;;  %v1669_v17 = vld [vmem:[%s1968_s7 + $0x4] ss:$12 sps:$4 sm:$0xff]  }
  0x19   : > { %640 = vmatprep.mubr.bf16.mxu0 %v1669_v17  ;;  %v1662_v18 = vld [vmem:[%s2268_s1 + $0x8] sm:$0xff]   ;;  %v1664_v19 = vld [vmem:[%s2268_s1 + $0x40] sm:$0xff]   ;;  %v1678_v27 = vld [vmem:[%s1968_s7 + $0x50] ss:$12 sps:$4 sm:$0xff]  }
  0x1a   : > { %1510 = vmatpush3.bf16.msra.mxu1 %v1663_v12  ;;  %v1670_v20 = vld [vmem:[%s1968_s7 + $0x20] ss:$12 sps:$4 sm:$0xff]   ;;  %v1671_v23 = vld [vmem:[%s1968_s7 + $0x1c] ss:$12 sps:$4 sm:$0xff]   ;;  %v1674_v24 = vld [vmem:[%s1968_s7 + $0x38] ss:$12 sps:$4 sm:$0xff]  }
  0x1b   : > { %1445 = vmatpush3.bf16.msra.mxu0 %v1653_v6  ;;  %v1665_v21 = vld [vmem:[%s2268_s1] sm:$0xff]   ;;  %v1677_v28 = vld [vmem:[%s1968_s7 + $0x30] ss:$12 sps:$4 sm:$0xff]   ;;  %v1679_v29 = vld [vmem:[%s1968_s7 + $0x4c] ss:$12 sps:$4 sm:$0xff]  }
  0x1c   : > { %1446 = vmatprep.subr.bf16.mxu0 %v1654_v7  ;;  %v1667_v22 = vld [vmem:[%s1968_s7] ss:$12 sps:$4 sm:$0xff]   ;;  %v1673_v25 = vld [vmem:[%s1968_s7 + $0x18] ss:$12 sps:$4 sm:$0xff]   ;;  %v1682_v30 = vld [vmem:[%s1968_s7 + $0x68] ss:$12 sps:$4 sm:$0xff]  }
  0x1d   : > { %1512 = vmatmul.mubr.msk.bf16.vlgmr.msra.gmra.mxu1 %vm289_vm1, %v1666_v15  ;;  %v1675_v26 = vld [vmem:[%s1968_s7 + $0x34] ss:$12 sps:$4 sm:$0xff]   ;;  %v1683_v32 = vld [vmem:[%s1968_s7 + $0x64] ss:$12 sps:$4 sm:$0xff]   ;;  %v1687_v35 = vld [vmem:[%s1968_s7 + $0x7c] ss:$12 sps:$4 sm:$0xff]  }
  0x1e   : > { %1515 = vmatprep.mubr.msk.bf16.mxu1 %vm1828_vm0, %v1827_v2  ;;  %v1681_v31 = vld [vmem:[%s1968_s7 + $0x48] ss:$12 sps:$4 sm:$0xff]   ;;  %v1686_v33 = vld [vmem:[%s1968_s7 + $0x80] ss:$12 sps:$4 sm:$0xff]   ;;  %v1690_v36 = vld [vmem:[%s1968_s7 + $0x98] ss:$0 sps:$4 sm:$0xff]  }
  0x1f   : > { %1447 = vmatpush3.bf16.msra.mxu0 %v1655_v8  ;;  %v1685_v34 = vld [vmem:[%s1968_s7 + $0x60] ss:$12 sps:$4 sm:$0xff]   ;;  %v340_v37 = vld [vmem:[%s1968_s7 + $0x90] sm:$0xff]  ;;  %v1689_v38 = vld [vmem:[%s1968_s7 + $0x78] ss:$12 sps:$4 sm:$0xff]   ;;  %s1439_s7 = smul.u32 (%p1881_p3), 52, %s1785_s14 }
  0x20   : > { %1448 = vmatprep.subr.bf16.mxu0 %v1656_v9  ;;  %v1373_v39 = vcombine.high %v340_v37, %v340_v37  ;;  %v1372_v40 = vcombine.low %v340_v37, %v340_v37  ;;  %v303_v53 = vld [vmem:[#allocation2] sm:$0xff]  ;;  %v304_v61 = vld [vmem:[#allocation2 + $0x8] sm:$0xff]  ;;  %v305_v5 = vld [vmem:[#allocation2 + $0x10] sm:$0xff] }
  0x21   : > { %v2032_v9 = vld [vmem:[%s2269_s2] ss:$0 sm:$0xff]  ;;  %v306_v15 = vld [vmem:[#allocation2 + $0x18] sm:$0xff]  ;;  %s2192_s10 = scalar_lea.vmem (%p1881_p3), %s2270_s3, %s1439_s7  }
  0x23   : > { %1449 = vmatpush3.bf16.msra.mxu0 %v1657_v11 }
  0x24   : > { %1450 = vmatprep.subr.bf16.mxu0 %v1658_v13 }
  0x25   : > { %1516 = vmatmul.mubr.msk.bf16.gmra.mxu1 %vm289_vm1, %v1670_v20 }
  0x26   : > { %1519 = vmatprep.mubr.msk.bf16.mxu1 %vm1828_vm0, %v1827_v2 }
  0x27   : > { %1451 = vmatpush3.bf16.msra.mxu0 %v1659_v14 }
  0x28   : > { %1452 = vmatprep.subr.bf16.mxu0 %v1661_v16 }
  0x2b   : > { %1453 = vmatpush3.bf16.msra.mxu0 %v1662_v18 }
  0x2c   : > { %1454 = vmatprep.subr.bf16.mxu0 %v1664_v19 }
  0x2d   : > { %1520 = vmatmul.mubr.msk.bf16.gmra.mxu1 %vm289_vm1, %v1674_v24 }
  0x2e   : > { %1523 = vmatprep.mubr.msk.bf16.mxu1 %vm1828_vm0, %v1827_v2 }
  0x2f   : > { %1455 = vmatpush3.bf16.msra.mxu0 %v1665_v21 }
  0x32   : > { %641 = vmatmul.mubr.bf16.vlgmr.msra.gmra.mxu0 %v1667_v22 }
  0x33   : > { %648 = vmatprep.mubr.bf16.mxu0 %v1671_v23 }
  0x35   : > { %1524 = vmatmul.mubr.msk.bf16.gmra.mxu1 %vm289_vm1, %v1678_v27 }
  0x36   : > { %1527 = vmatprep.mubr.msk.bf16.mxu1 %vm1828_vm0, %v1827_v2 }
  0x3a   : > { %649 = vmatmul.mubr.bf16.gmra.mxu0 %v1673_v25 }
  0x3b   : > { %656 = vmatprep.mubr.bf16.mxu0 %v1675_v26  ;;  %v307_v26 = vld [vmem:[#allocation2 + $0x20] sm:$0xff] }
  0x3d   : > { %1528 = vmatmul.mubr.msk.bf16.gmra.mxu1 %vm289_vm1, %v1682_v30 }
  0x3e   : > { %1531 = vmatprep.mubr.msk.bf16.mxu1 %vm1828_vm0, %v1827_v2 }
  0x42   : > { %657 = vmatmul.mubr.bf16.gmra.mxu0 %v1677_v28 }
  0x43   : > { %664 = vmatprep.mubr.bf16.mxu0 %v1679_v29 }
  0x45   : > { %1532 = vmatmul.mubr.msk.bf16.gmra.mxu1 %vm289_vm1, %v1686_v33 }
  0x46   : > { %1535 = vmatprep.mubr.msk.bf16.mxu1 %vm1828_vm0, %v1827_v2 }
  0x4a   : > { %665 = vmatmul.mubr.bf16.gmra.mxu0 %v1681_v31 }
  0x4b   : > { %672 = vmatprep.mubr.bf16.mxu0 %v1683_v32 }
  0x4d   : > { %1536 = vmatmul.mubr.msk.bf16.gmra.mxu1 %vm289_vm1, %v1690_v36 }
  0x52   : > { %673 = vmatmul.mubr.bf16.gmra.mxu0 %v1685_v34 }
  0x53   : > { %680 = vmatprep.mubr.bf16.mxu0 %v1687_v35 }
  0x5a   : > { %681 = vmatmul.mubr.bf16.gmra.mxu0 %v1689_v38 }
  0x5b   : > { %688 = vmatprep.mubr.bf16.mxu0 %v1373_v39 }
  0x62   : > { %689 = vmatmul.mubr.bf16.gmra.mxu0 %v1372_v40 }
  0xdd   : > { %v730_v41 = vpop.f32.mrf.mxu1 }
  0xdf   : > { %v1513_v42 = vpop.f32.mrf.mxu1 }
  0xe1   : > { %v733_v43 = vpop.f32.mrf.mxu1 }
  0xe3   : > { %v1514_v44 = vpop.f32.mrf.mxu1 }
  0xe5   : > { %v738_v45 = vpop.f32.mrf.mxu1 }
  0xe7   : > { %v1517_v46 = vpop.f32.mrf.mxu1 }
  0xe9   : > { %v741_v47 = vpop.f32.mrf.mxu1 }
  0xeb   : > { %v1518_v49 = vpop.f32.mrf.mxu1 }
  0xed   : > { %v746_v52 = vpop.f32.mrf.mxu1 }
  0xef   : > { %v1521_v56 = vpop.f32.mrf.mxu1 }
  0xf1   : > { %v749_v60 = vpop.f32.mrf.mxu1 }
  0xf2   : > { %v1456_v48 = vpop.f32.mrf.mxu0 }
  0xf3   : > { %v1522_v0 = vpop.f32.mrf.mxu1 }
  0xf4   : > { %v1457_v50 = vpop.f32.mrf.mxu0 }
  0xf5   : > { %v1458_v51 = vadd.f32 %v1457_v50, %v1456_v48  ;;  %v754_v4 = vpop.f32.mrf.mxu1 }
  0xf6   : > { %v1459_v54 = vpop.f32.mrf.mxu0 }
  0xf7   : > { %v731_v55 = vadd.f32 %v1458_v51, %v730_v41  ;;  %v1525_v8 = vpop.f32.mrf.mxu1 }
  0xf8   : > { %v1460_v57 = vpop.f32.mrf.mxu0 }
  0xf9   : > { %v784_v58 = vadd.f32 %v731_v55, %v303_v53  ;;  %v1461_v59 = vadd.f32 %v1460_v57, %v1459_v54  ;;  %v2034_v13 = vpop.f32.mrf.mxu1 }
  0xfa   : > { %v1462_v62 = vpop.f32.mrf.mxu0 }
  0xfb   : > { %797 = vst.msk [vmem:[#allocation2] sm:$0xff] %vm289_vm1, %v784_v58  ;;  %v734_v63 = vadd.f32 %v1461_v59, %v733_v43  ;;  %v1526_v19 = vpop.f32.mrf.mxu1  ;;  %v308_v43 = vld [vmem:[#allocation2 + $0x28] sm:$0xff]  ;;  %v309_v58 = vld [vmem:[#allocation2 + $0x30] sm:$0xff] }
  0xfc   : > { %v1463_v1 = vpop.f32.mrf.mxu0 }
  0xfd   : > { %v785_v2 = vadd.f32 %v734_v63, %v304_v61  ;;  %v1464_v3 = vadd.f32 %v1463_v1, %v1462_v62  ;;  %v2041_v24 = vpop.f32.mrf.mxu1 }
  0xfe   : > { %v1465_v6 = vpop.f32.mrf.mxu0 }
  0xff   : > { %798 = vst.msk [vmem:[#allocation2 + $0x8] sm:$0xff] %vm289_vm1, %v785_v2  ;;  %v739_v7 = vadd.f32 %v1464_v3, %v738_v45  ;;  %v1529_v31 = vpop.f32.mrf.mxu1 }
 0x100   : > { %v1466_v10 = vpop.f32.mrf.mxu0 }
 0x101   : > { %v786_v11 = vadd.f32 %v739_v7, %v305_v5  ;;  %v1467_v12 = vadd.f32 %v1466_v10, %v1465_v6  ;;  %v2050_v36 = vpop.f32.mrf.mxu1 }
 0x102   : > { %v813_v14 = vld [vmem:[#allocation2] sm:$0xff]  ;;  %v1468_v16 = vpop.f32.mrf.mxu0 }
 0x103   : > { %v2037_v17 = vadd.f32 %v2032_v9, %v813_v14  ;;  %799 = vst.msk [vmem:[#allocation2 + $0x10] sm:$0xff] %vm289_vm1, %v786_v11  ;;  %v742_v18 = vadd.f32 %v1467_v12, %v741_v47  ;;  %v1530_v44 = vpop.f32.mrf.mxu1 }
 0x104   : > { %v1469_v20 = vpop.f32.mrf.mxu0 }
 0x105   : > { %v859_v21 = vmul.f32 0.044715, %v2037_v17  ;;  %v787_v22 = vadd.f32 %v742_v18, %v306_v15  ;;  %v1470_v23 = vadd.f32 %v1469_v20, %v1468_v16  ;;  %v2060_v50 = vpop.f32.mrf.mxu1 }
 0x106   : > { %v814_v25 = vld [vmem:[#allocation2 + $0x8] sm:$0xff]  ;;  %v1471_v27 = vpop.f32.mrf.mxu0 }
 0x107   : > { %v872_v28 = vmul.f32 %v859_v21, %v2037_v17  ;;  %v2045_v29 = vadd.f32 %v2032_v9, %v814_v25  ;;  %800 = vst.msk [vmem:[#allocation2 + $0x18] sm:$0xff] %vm289_vm1, %v787_v22  ;;  %v747_v30 = vadd.f32 %v1470_v23, %v746_v52  ;;  %v1533_v59 = vpop.f32.mrf.mxu1 }
 0x108   : > { %v1472_v32 = vpop.f32.mrf.mxu0 }
 0x109   : > { %v885_v33 = vmul.f32 %v872_v28, %v2037_v17  ;;  %v860_v34 = vmul.f32 0.044715, %v2045_v29  ;;  %v788_v35 = vadd.f32 %v747_v30, %v307_v26  ;;  %v1473_v38 = vadd.f32 %v1472_v32, %v1471_v27  ;;  %v2070_v1 = vpop.f32.mrf.mxu1  ;;  %v311_v27 = vld [vmem:[#allocation2 + $0x40] sm:$0xff] }
 0x10a   : > { %v815_v37 = vld [vmem:[#allocation2 + $0x10] sm:$0xff]  ;;  %v1474_v39 = vpop.f32.mrf.mxu0 }
 0x10b   : > { %v898_v40 = vadd.f32 %v885_v33, %v2037_v17  ;;  %v873_v41 = vmul.f32 %v860_v34, %v2045_v29  ;;  %v2055_v42 = vadd.f32 %v2032_v9, %v815_v37  ;;  %801 = vst.msk [vmem:[#allocation2 + $0x20] sm:$0xff] %vm289_vm1, %v788_v35  ;;  %v750_v45 = vadd.f32 %v1473_v38, %v749_v60  ;;  %v1534_v11 = vpop.f32.mrf.mxu1 }
 0x10c   : > { %v1475_v46 = vpop.f32.mrf.mxu0 }
 0x10d   : > { %v911_v47 = vmul.f32 0.7978846, %v898_v40  ;;  %v886_v48 = vmul.f32 %v873_v41, %v2045_v29  ;;  %v861_v49 = vmul.f32 0.044715, %v2055_v42  ;;  %v789_v52 = vadd.f32 %v750_v45, %v308_v43  ;;  %v2081_v19 = vpop.f32.mrf.mxu1 }
 0x10e   : > { %v816_v51 = vld [vmem:[#allocation2 + $0x18] sm:$0xff]  ;;  %v1476_v53 = vadd.f32 %v1475_v46, %v1474_v39  ;;  %v1477_v54 = vpop.f32.mrf.mxu0  ;;  %v312_v39 = vld [vmem:[#allocation2 + $0x48] sm:$0xff]  ;;  %v846_v46 = vmul.f32 0.5, %v2037_v17 }
 0x10f   : > { %1693 = vtanh.f32 %v911_v47  ;;  %v899_v55 = vadd.f32 %v886_v48, %v2045_v29  ;;  %v874_v56 = vmul.f32 %v861_v49, %v2055_v42  ;;  %v2065_v57 = vadd.f32 %v2032_v9, %v816_v51  ;;  %802 = vst.msk [vmem:[#allocation2 + $0x28] sm:$0xff] %vm289_vm1, %v789_v52 }
 0x110   : > { %v755_v60 = vadd.f32 %v1476_v53, %v754_v4  ;;  %v1478_v61 = vpop.f32.mrf.mxu0  ;;  %v310_v4 = vld [vmem:[#allocation2 + $0x38] sm:$0xff] }
 0x111   : > { %v912_v62 = vmul.f32 0.7978846, %v899_v55  ;;  %v887_v63 = vmul.f32 %v874_v56, %v2055_v42  ;;  %v862_v0 = vmul.f32 0.044715, %v2065_v57  ;;  %v1479_v5 = vadd.f32 %v1478_v61, %v1477_v54  ;;  %v313_v56 = vld [vmem:[#allocation2 + $0x50] sm:$0xff] }
 0x112   : > { %v817_v2 = vld [vmem:[#allocation2 + $0x20] sm:$0xff]  ;;  %v790_v3 = vadd.f32 %v755_v60, %v309_v58  ;;  %v1480_v6 = vpop.f32.mrf.mxu0 }
 0x113   : > { %1695 = vtanh.f32 %v912_v62  ;;  %v900_v7 = vadd.f32 %v887_v63, %v2055_v42  ;;  %v875_v8 = vmul.f32 %v862_v0, %v2065_v57  ;;  %v2075_v10 = vadd.f32 %v2032_v9, %v817_v2 }
 0x114   : > { %803 = vst.msk [vmem:[#allocation2 + $0x30] sm:$0xff] %vm289_vm1, %v790_v3  ;;  %v758_v12 = vadd.f32 %v1479_v5, %v2034_v13  ;;  %v1481_v14 = vpop.f32.mrf.mxu0  ;;  %v1537_v13 = vpop.f32.mrf.mxu1  ;;  %v847_v62 = vmul.f32 0.5, %v2045_v29 }
 0x115   : > { %v913_v15 = vmul.f32 0.7978846, %v900_v7  ;;  %v888_v16 = vmul.f32 %v875_v8, %v2065_v57  ;;  %v863_v18 = vmul.f32 0.044715, %v2075_v10  ;;  %v1482_v21 = vadd.f32 %v1481_v14, %v1480_v6 }
 0x116   : > { %v791_v20 = vadd.f32 %v758_v12, %v310_v4  ;;  %v1483_v22 = vpop.f32.mrf.mxu0  ;;  %v818_v26 = vld [vmem:[#allocation2 + $0x28] sm:$0xff]  ;;  %v781_v35 = vpop.f32.mrf.mxu1  ;;  %v314_v12 = vld [vmem:[#allocation2 + $0x58] sm:$0xff] }
 0x117   : > { %1697 = vtanh.f32 %v913_v15  ;;  %v901_v23 = vadd.f32 %v888_v16, %v2065_v57  ;;  %v876_v25 = vmul.f32 %v863_v18, %v2075_v10  ;;  %v2086_v28 = vadd.f32 %v2032_v9, %v818_v26 }
 0x118   : > { %804 = vst.msk [vmem:[#allocation2 + $0x38] sm:$0xff] %vm289_vm1, %v791_v20  ;;  %v763_v30 = vadd.f32 %v1482_v21, %v2041_v24  ;;  %v1484_v31 = vpop.f32.mrf.mxu0  ;;  %v1538_v45 = vpop.f32.mrf.mxu1  ;;  %v848_v15 = vmul.f32 0.5, %v2055_v42 }
 0x119   : > { %v914_v32 = vmul.f32 0.7978846, %v901_v23  ;;  %v889_v33 = vmul.f32 %v876_v25, %v2075_v10  ;;  %v1485_v34 = vadd.f32 %v1484_v31, %v1483_v22  ;;  %v864_v37 = vmul.f32 0.044715, %v2086_v28 }
 0x11a   : > { %v792_v38 = vadd.f32 %v763_v30, %v311_v27  ;;  %v1486_v40 = vpop.f32.mrf.mxu0  ;;  %v849_v45 = vmul.f32 0.5, %v2065_v57 }
 0x11b   : > { %1699 = vtanh.f32 %v914_v32  ;;  %v902_v41 = vadd.f32 %v889_v33, %v2075_v10  ;;  %v819_v43 = vld [vmem:[#allocation2 + $0x30] sm:$0xff]  ;;  %v766_v44 = vadd.f32 %v1485_v34, %v2050_v36  ;;  %v877_v47 = vmul.f32 %v864_v37, %v2086_v28  ;;  %v315_v37 = vld [vmem:[#allocation2 + $0x60] sm:$0xff] }
 0x11c   : > { %v1694_v24 = vpop.eup %1693  ;;  %v2100_v48 = vadd.f32 %v2032_v9, %v819_v43  ;;  %805 = vst.msk [vmem:[#allocation2 + $0x40] sm:$0xff] %vm289_vm1, %v792_v38  ;;  %v1487_v49 = vpop.f32.mrf.mxu0 }
 0x11d   : > { %v937_v51 = vadd.f32 1.0, %v1694_v24  ;;  %v915_v52 = vmul.f32 0.7978846, %v902_v41  ;;  %v793_v53 = vadd.f32 %v766_v44, %v312_v39  ;;  %v1488_v54 = vadd.f32 %v1487_v49, %v1486_v40 }
 0x11e   : > { %v890_v36 = vmul.f32 %v877_v47, %v2086_v28  ;;  %v865_v55 = vmul.f32 0.044715, %v2100_v48  ;;  %v1489_v58 = vpop.f32.mrf.mxu0 }
 0x11f   : > { %v950_v59 = vmul.f32 %v937_v51, %v846_v46  ;;  %1701 = vtanh.f32 %v915_v52  ;;  %v820_v17 = vld [vmem:[#allocation2 + $0x38] sm:$0xff]  ;;  %806 = vst.msk [vmem:[#allocation2 + $0x48] sm:$0xff] %vm289_vm1, %v793_v53  ;;  %v771_v60 = vadd.f32 %v1488_v54, %v2060_v50 }
 0x120   : > { %v1696_v61 = vpop.eup %1695  ;;  %v903_v63 = vadd.f32 %v890_v36, %v2086_v28  ;;  %v878_v0 = vmul.f32 %v865_v55, %v2100_v48  ;;  %v2111_v2 = vadd.f32 %v2032_v9, %v820_v17  ;;  %v1490_v3 = vpop.f32.mrf.mxu0 }
 0x121   : > { %v1426_v5 = vpack.c.bf16 %v950_v59, %v950_v59  ;;  %v938_v6 = vadd.f32 1.0, %v1696_v61  ;;  %v794_v7 = vadd.f32 %v771_v60, %v313_v56  ;;  %v1491_v8 = vadd.f32 %v1490_v3, %v1489_v58 }
 0x122   : > { %v916_v4 = vmul.f32 0.7978846, %v903_v63  ;;  %v891_v11 = vmul.f32 %v878_v0, %v2100_v48  ;;  %v866_v50 = vmul.f32 0.044715, %v2111_v2  ;;  %v1492_v14 = vpop.f32.mrf.mxu0  ;;  %v850_v56 = vmul.f32 0.5, %v2075_v10 }
 0x123   : > { %1017 = vst.msk [vmem:[%s2116_s12] sm:$0xf] %vm1016_vm2, %v1426_v5  ;;  %v951_v29 = vmul.f32 %v938_v6, %v847_v62  ;;  %v821_v16 = vld [vmem:[#allocation2 + $0x40] sm:$0xff]  ;;  %v774_v18 = vadd.f32 %v1491_v8, %v2070_v1  ;;  %v851_v8 = vmul.f32 0.5, %v2086_v28 }
 0x124   : > { %807 = vst.msk [vmem:[#allocation2 + $0x50] sm:$0xff] %vm289_vm1, %v794_v7  ;;  %v1698_v20 = vpop.eup %1697  ;;  %1703 = vtanh.f32 %v916_v4  ;;  %v904_v21 = vadd.f32 %v891_v11, %v2100_v48  ;;  %v879_v22 = vmul.f32 %v866_v50, %v2111_v2  ;;  %v2126_v23 = vadd.f32 %v2032_v9, %v821_v16  ;;  %v1493_v25 = vpop.f32.mrf.mxu0 }
 0x125   : > { %v1427_v26 = vpack.c.bf16 %v951_v29, %v951_v29  ;;  %v939_v27 = vadd.f32 1.0, %v1698_v20  ;;  %v795_v13 = vadd.f32 %v774_v18, %v314_v12  ;;  %v1494_v42 = vadd.f32 %v1493_v25, %v1492_v14 }
 0x126   : > { %v917_v30 = vmul.f32 0.7978846, %v904_v21  ;;  %v892_v31 = vmul.f32 %v879_v22, %v2111_v2  ;;  %v867_v1 = vmul.f32 0.044715, %v2126_v23  ;;  %v822_v32 = vld [vmem:[#allocation2 + $0x48] sm:$0xff]  ;;  %v1495_v33 = vpop.f32.mrf.mxu0  ;;  %v852_v21 = vmul.f32 0.5, %v2100_v48 }
 0x127   : > { %1018 = vst.msk [vmem:[%s2116_s12 + $0x4] sm:$0xf] %vm1016_vm2, %v1427_v26  ;;  %v952_v34 = vmul.f32 %v939_v27, %v848_v15  ;;  %v2133_v35 = vadd.f32 %v2032_v9, %v822_v32  ;;  %v779_v38 = vadd.f32 %v1494_v42, %v2081_v19 }
 0x128   : > { %808 = vst.msk [vmem:[#allocation2 + $0x58] sm:$0xff] %vm289_vm1, %v795_v13  ;;  %v1700_v39 = vpop.eup %1699  ;;  %1705 = vtanh.f32 %v917_v30  ;;  %v905_v40 = vadd.f32 %v892_v31, %v2111_v2  ;;  %v880_v41 = vmul.f32 %v867_v1, %v2126_v23  ;;  %v1496_v43 = vpop.f32.mrf.mxu0 }
 0x129   : > { %v1428_v44 = vpack.c.bf16 %v952_v34, %v952_v34  ;;  %v940_v24 = vadd.f32 1.0, %v1700_v39  ;;  %v868_v46 = vmul.f32 0.044715, %v2133_v35  ;;  %v796_v52 = vadd.f32 %v779_v38, %v315_v37 }
 0x12a   : > { %v918_v47 = vmul.f32 0.7978846, %v905_v40  ;;  %v893_v49 = vmul.f32 %v880_v41, %v2126_v23  ;;  %v854_v38 = vmul.f32 0.5, %v2126_v23 }
 0x12b   : > { %v823_v51 = vld [vmem:[#allocation2 + $0x50] sm:$0xff]  ;;  %1019 = vst.msk [vmem:[%s2116_s12 + $0x8] sm:$0xf] %vm1016_vm2, %v1428_v44  ;;  %v953_v19 = vmul.f32 %v940_v24, %v849_v45  ;;  %v881_v53 = vmul.f32 %v868_v46, %v2133_v35 }
 0x12c   : > { %v2146_v54 = vadd.f32 %v2032_v9, %v823_v51  ;;  %v1702_v36 = vpop.eup %1701  ;;  %1707 = vtanh.f32 %v918_v47  ;;  %v906_v57 = vadd.f32 %v893_v49, %v2126_v23  ;;  %809 = vst.msk [vmem:[#allocation2 + $0x60] sm:$0xff] %vm289_vm1, %v796_v52 }
 0x12d   : > { %v1429_v55 = vpack.c.bf16 %v953_v19, %v953_v19  ;;  %v941_v58 = vadd.f32 1.0, %v1702_v36  ;;  %v894_v59 = vmul.f32 %v881_v53, %v2133_v35 }
 0x12e   : > { %v919_v17 = vmul.f32 0.7978846, %v906_v57  ;;  %v869_v60 = vmul.f32 0.044715, %v2146_v54  ;;  %v856_v23 = vmul.f32 0.5, %v2146_v54 }
 0x12f   : > { %v824_v61 = vld [vmem:[#allocation2 + $0x58] sm:$0xff]  ;;  %1020 = vst.msk [vmem:[%s2116_s12 + $0xc] sm:$0xf] %vm1016_vm2, %v1429_v55  ;;  %v954_v62 = vmul.f32 %v941_v58, %v850_v56  ;;  %v907_v63 = vadd.f32 %v894_v59, %v2133_v35 }
 0x130   : > { %v844_v0 = vadd.f32 %v2032_v9, %v824_v61  ;;  %1709 = vtanh.f32 %v919_v17  ;;  %v882_v3 = vmul.f32 %v869_v60, %v2146_v54 }
 0x131   : > { %v1704_v5 = vpop.eup %1703  ;;  %v1430_v10 = vpack.c.bf16 %v954_v62, %v954_v62  ;;  %v920_v6 = vmul.f32 0.7978846, %v907_v63 }
 0x132   : > { %v870_v7 = vmul.f32 0.044715, %v844_v0  ;;  %v942_v4 = vadd.f32 1.0, %v1704_v5  ;;  %v895_v11 = vmul.f32 %v882_v3, %v2146_v54  ;;  %v857_v19 = vmul.f32 0.5, %v844_v0 }
 0x133   : > { %1021 = vst.msk [vmem:[%s2116_s12 + $0x10] sm:$0xf] %vm1016_vm2, %v1430_v10  ;;  %1711 = vtanh.f32 %v920_v6  ;;  %v825_v12 = vld [vmem:[#allocation2 + $0x60] sm:$0xff] }
 0x134   : > { %v883_v50 = vmul.f32 %v870_v7, %v844_v0  ;;  %v955_v14 = vmul.f32 %v942_v4, %v851_v8  ;;  %v908_v29 = vadd.f32 %v895_v11, %v2146_v54  ;;  %v845_v15 = vadd.f32 %v2032_v9, %v825_v12 }
 0x135   : > { %v1706_v16 = vpop.eup %1705  ;;  %v853_v9 = vmul.f32 0.5, %v2111_v2  ;;  %v855_v2 = vmul.f32 0.5, %v2133_v35 }
 0x136   : > { %v896_v18 = vmul.f32 %v883_v50, %v844_v0  ;;  %v1431_v20 = vpack.c.bf16 %v955_v14, %v955_v14  ;;  %v943_v28 = vadd.f32 1.0, %v1706_v16  ;;  %v921_v22 = vmul.f32 0.7978846, %v908_v29 }
 0x137   : > { %v871_v26 = vmul.f32 0.044715, %v845_v15  ;;  %v858_v56 = vmul.f32 0.5, %v845_v15 }
 0x138   : > { %v909_v25 = vadd.f32 %v896_v18, %v844_v0  ;;  %1022 = vst.msk [vmem:[%s2116_s12 + $0x14] sm:$0xf] %vm1016_vm2, %v1431_v20  ;;  %v956_v27 = vmul.f32 %v943_v28, %v852_v21  ;;  %1713 = vtanh.f32 %v921_v22 }
 0x139   : > { %v1708_v13 = vpop.eup %1707  ;;  %v884_v30 = vmul.f32 %v871_v26, %v845_v15 }
 0x13a   : > { %v922_v42 = vmul.f32 0.7978846, %v909_v25  ;;  %v1432_v31 = vpack.c.bf16 %v956_v27, %v956_v27  ;;  %v944_v1 = vadd.f32 1.0, %v1708_v13 }
 0x13b   : > { %v897_v32 = vmul.f32 %v884_v30, %v845_v15 }
 0x13c   : > { %1715 = vtanh.f32 %v922_v42  ;;  %1023 = vst.msk [vmem:[%s2116_s12 + $0x18] sm:$0xf] %vm1016_vm2, %v1432_v31  ;;  %v957_v48 = vmul.f32 %v944_v1, %v853_v9 }
 0x13d   : > { %v1710_v33 = vpop.eup %1709  ;;  %v910_v34 = vadd.f32 %v897_v32, %v845_v15 }
 0x13e   : > { %v1433_v37 = vpack.c.bf16 %v957_v48, %v957_v48  ;;  %v945_v39 = vadd.f32 1.0, %v1710_v33 }
 0x13f   : > { %v923_v40 = vmul.f32 0.7978846, %v910_v34 }
 0x140   : > { %v1712_v41 = vpop.eup %1711  ;;  %1024 = vst.msk [vmem:[%s2116_s12 + $0x1c] sm:$0xf] %vm1016_vm2, %v1433_v37  ;;  %v958_v43 = vmul.f32 %v945_v39, %v854_v38 }
 0x141   : > { %v946_v44 = vadd.f32 1.0, %v1712_v41  ;;  %1717 = vtanh.f32 %v923_v40 }
 0x142   : > { %v1434_v45 = vpack.c.bf16 %v958_v43, %v958_v43 }
 0x143   : > { %v959_v24 = vmul.f32 %v946_v44, %v855_v2 }
 0x144   : > { %1025 = vst.msk [vmem:[%s2116_s12 + $0x20] sm:$0xf] %vm1016_vm2, %v1434_v45 }
 0x145   : > { %v1714_v46 = vpop.eup %1713  ;;  %v1435_v47 = vpack.c.bf16 %v959_v24, %v959_v24 }
 0x146   : > { %v947_v49 = vadd.f32 1.0, %v1714_v46 }
 0x147   : > { %1026 = vst.msk [vmem:[%s2116_s12 + $0x24] sm:$0xf] %vm1016_vm2, %v1435_v47 }
 0x148   : > { %v960_v52 = vmul.f32 %v947_v49, %v856_v23 }
 0x149   : > { %v1716_v51 = vpop.eup %1715 }
 0x14a   : > { %v948_v35 = vadd.f32 1.0, %v1716_v51  ;;  %v1436_v53 = vpack.c.bf16 %v960_v52, %v960_v52 }
 0x14c   : > { %v961_v36 = vmul.f32 %v948_v35, %v857_v19  ;;  %1027 = vst.msk [vmem:[%s2116_s12 + $0x28] sm:$0xf] %vm1016_vm2, %v1436_v53 }
 0x14e   : > { %v1437_v57 = vpack.c.bf16 %v961_v36, %v961_v36  ;;  %v1718_v55 = vpop.eup %1717 }
 0x14f   : > { %v949_v58 = vadd.f32 1.0, %v1718_v55 }
 0x150   : > { %1028 = vst.msk [vmem:[%s2116_s12 + $0x2c] sm:$0xf] %vm1016_vm2, %v1437_v57 }
 0x151   : > { %v962_v59 = vmul.f32 %v949_v58, %v858_v56  ;;  %1036 = sbr.rel (!%p1881_p3) target bundleno = 404 (0x194), region = 44 }
 0x153   : > { %v1438_v54 = vpack.c.bf16 %v962_v59, %v962_v59 }
 0x155   : > { %1029 = vst.msk [vmem:[%s2116_s12 + $0x30] sm:$0xf] %vm1016_vm2, %v1438_v54 }
 0x156   : > { %s2282_s6 = smov (!%p1039_p9, %s1038_s6), 13 }
 0x157   : > { %s1414_s11 = sshll.u32 %s2282_s6, 6 }
 0x158   : > { %p1417_p10 = scmp.eq.s32.totalorder %s1414_s11, 0 }
 0x159   : > { %1719 = sdivrem.u32 (!%p1417_p10), %s2282_s6, 13 }
 0x15a   : > { %1048 = sbr.rel (%p1417_p10) target bundleno = 404 (0x194), region = 48 }
 0x162   : > { %s2198_s20 = spop.drf %1719 }
 0x163   : > { %p1418_p11 = scmp.le.s32.totalorder %s2198_s20, 0 }
 0x164   : > { %s2272_s14 = smov (!%p1418_p11), %s2192_s10  ;;  %s2273_s29 = smov (!%p1418_p11), %s2116_s12 }
 0x165   : > { %1273 = sbr.rel (%p1418_p11) target bundleno = 379 (0x17b), region = 126  ;;  %s2207_s17 = smov (!%p1418_p11), 0  }
 0x166   : > { %s2209_s19 = smov (!%p1418_p11), 0  }
 0x16a LB: >> { %v1066_v17 = vld [vmem:[%s1801_s29] sm:$0xf]  ;;  %v1068_v60 = vld [vmem:[%s1801_s29 + $0x4] sm:$0xf]  ;;  %v1070_v61 = vld [vmem:[%s1801_s29 + $0x8] sm:$0xf]  ;;  %s1809_s19 = sphi %s2209_s19, %s1060_s19   ;;  %s1805_s17 = sphi %s2207_s17, %s2274_s17   ;;  %s1801_s29 = sphi %s2273_s29, %s1097_s29   ;;  %s1797_s14 = sphi %s2272_s14, %s1098_s14  }
 0x16b   : >> { %1067 = vst [vmem:[%s1797_s14] sm:$0xf] %v1066_v17  ;;  %1069 = vst [vmem:[%s1797_s14 + $0x4] sm:$0xf] %v1068_v60  ;;  %v1072_v62 = vld [vmem:[%s1801_s29 + $0xc] sm:$0xf]  ;;  %s1092_s21 = sadd.s32 1, %s1805_s17 }
 0x16c   : >> { %1071 = vst [vmem:[%s1797_s14 + $0x8] sm:$0xf] %v1070_v61  ;;  %v1074_v63 = vld [vmem:[%s1801_s29 + $0x10] sm:$0xf]  ;;  %v1076_v0 = vld [vmem:[%s1801_s29 + $0x14] sm:$0xf]  ;;  %p1093_p12 = scmp.ge.s32.totalorder %s1092_s21, %s2198_s20 }
 0x16d   : >> { %1073 = vst [vmem:[%s1797_s14 + $0xc] sm:$0xf] %v1072_v62  ;;  %1075 = vst [vmem:[%s1797_s14 + $0x10] sm:$0xf] %v1074_v63  ;;  %v1078_v3 = vld [vmem:[%s1801_s29 + $0x18] sm:$0xf] }
 0x16e   : >> { %1077 = vst [vmem:[%s1797_s14 + $0x14] sm:$0xf] %v1076_v0  ;;  %v1080_v5 = vld [vmem:[%s1801_s29 + $0x1c] sm:$0xf]  ;;  %v1082_v10 = vld [vmem:[%s1801_s29 + $0x20] sm:$0xf] }
 0x16f   : >> { %1079 = vst [vmem:[%s1797_s14 + $0x18] sm:$0xf] %v1078_v3  ;;  %1081 = vst [vmem:[%s1797_s14 + $0x1c] sm:$0xf] %v1080_v5  ;;  %v1084_v6 = vld [vmem:[%s1801_s29 + $0x24] sm:$0xf] }
 0x170   : >> { %1083 = vst [vmem:[%s1797_s14 + $0x20] sm:$0xf] %v1082_v10  ;;  %v1086_v7 = vld [vmem:[%s1801_s29 + $0x28] sm:$0xf]  ;;  %v1088_v8 = vld [vmem:[%s1801_s29 + $0x2c] sm:$0xf] }
 0x171   : >> { %1085 = vst [vmem:[%s1797_s14 + $0x24] sm:$0xf] %v1084_v6  ;;  %1087 = vst [vmem:[%s1797_s14 + $0x28] sm:$0xf] %v1086_v7  ;;  %v1090_v4 = vld [vmem:[%s1801_s29 + $0x30] sm:$0xf] }
 0x172   : >> { %1089 = vst [vmem:[%s1797_s14 + $0x2c] sm:$0xf] %v1088_v8  ;;  %1091 = vst [vmem:[%s1797_s14 + $0x30] sm:$0xf] %v1090_v4  ;;  %s2284_s21 = smov (%p1093_p12, %s1092_s21), 0  ;;  %s1060_s19 = sadd.s32 1, %s1809_s19  }
 0x173   : >> { %s1095_s23 = smul.u32 52, %s2284_s21  ;;  %p1059_p13 = scmp.ge.s32.totalorder %s1060_s19, %s2198_s20 }
 0x174   : >> { %s2274_s17 = smov %s2284_s21 }
 0x175   : >> { %s1097_s29 = scalar_lea.vmem %s2116_s12, %s1095_s23 [#allocation3]   ;;  %s1098_s14 = scalar_lea.vmem %s2192_s10, %s1095_s23  }
 0x176   : > { %1062 = sbr.rel (!%p1059_p13) target bundleno = 362 (0x16a), region = 132 }
 0x17b PF: > { %1721 = sdivrem.u32 %s2282_s6, 13 }
 0x17c   : > { %s1419_s24 = smul.u32 52, %s2198_s20 }
 0x17e   : > { %s1103_s25 = scalar_lea.vmem %s2116_s12, %s1419_s24 [#allocation3]   ;;  %s1105_s26 = scalar_lea.vmem %s2192_s10, %s1419_s24  }
 0x184   : > { %s1722_s27 = spop.drf %1721 }
 0x185   : > { %p1421_p0 = scmp.le.s32.totalorder %s1722_s27, 0 }
 0x186   : > { %s1811_s28 = smov (!%p1421_p0), %s1105_s26   ;;  %s1815_s30 = smov (!%p1421_p0), %s1103_s25  }
 0x187   : > { %1287 = sbr.rel (%p1421_p0) target bundleno = 404 (0x194), region = 137  ;;  %s1819_s4 = smov (!%p1421_p0), 0  }
 0x188   : > { %s1823_s5 = smov (!%p1421_p0), 0  }
 0x18c LB: >> { %v1115_v11 = vld [vmem:[%s1817_s30] sm:$0xf]  ;;  %s1117_s7 = sadd.s32 1, %s1821_s4  ;;  %s1109_s5 = sadd.s32 1, %s1825_s5   ;;  %s1825_s5 = sphi %s1823_s5, %s1109_s5   ;;  %s1821_s4 = sphi %s1819_s4, %s1820_s4   ;;  %s1817_s30 = sphi %s1815_s30, %s1122_s30   ;;  %s1813_s28 = sphi %s1811_s28, %s1123_s28  }
 0x18d   : >> { %1116 = vst [vmem:[%s1813_s28] sm:$0xf] %v1115_v11  ;;  %p1118_p1 = scmp.ge.s32.totalorder %s1117_s7, %s1722_s27  ;;  %p1108_p2 = scmp.ge.s32.totalorder %s1109_s5, %s1722_s27 }
 0x18f   : >> { %s2286_s7 = smov (%p1118_p1, %s1117_s7), 0  ;;  %1111 = sbr.rel (!%p1108_p2) target bundleno = 396 (0x18c), region = 143 }
 0x190   : >> { %s1422_s12 = sshll.u32 %s2286_s7, 2  ;;  %s1820_s4 = smov %s2286_s7  }
 0x191   : >> { %s1122_s30 = scalar_lea.vmem %s1103_s25, %s1422_s12 [#allocation3]   ;;  %s1123_s28 = scalar_lea.vmem %s1105_s26, %s1422_s12  }
 0x194 PF: > { %s13_s16 = sadd.s32 1, %s1793_s16   ;;  %s2275_s12 = smov %s1781_s13 }
 0x195   : > { %p10_p3 = scmp.ge.s32.totalorder %s13_s16, 4   ;;  %s2276_s13 = smov %s1890_s22 }
 0x196   : > { %s2277_s14 = smov %s1789_s15  ;;  %s2278_s15 = smov %s2280_s18 }
 0x197   :  { %12 = sbr.rel (!%p10_p3) target bundleno = 3 (0x3), region = 154 }

// kernel: video_transformer_forward.15
= control target key start
LH: loop header
LB: loop body
LE: loop exit
PB: predicated region body
PF: predicated region fallthrough
CT: control target
= control target key end

     0   :  { %s430_s15 = smov 0   ;;  %s465_s0 = inlined_call_operand.vmem [shape: bf16[32,32], index: 0, kind: input, shape index: {}]   ;;  %s466_s1 = inlined_call_operand.vmem [shape: bf16[32,32], index: 1, kind: input, shape index: {}]   ;;  %s467_s2 = inlined_call_operand.vmem [shape: f32[1,32], index: 2, kind: input, shape index: {}]   ;;  %s468_s3 = inlined_call_operand.vmem [shape: f32[1,32], index: 3, kind: input, shape index: {}]   ;;  %s469_s4 = inlined_call_operand.vmem [shape: bf16[32,32], index: 4, kind: output, shape index: {}]  }
   0x1 LB: > { %s358_s16 = sadd.s32 4294967295, %s403_s15   ;;  %p362_p0 = scmp.ge.s32.totalorder %s403_s15, 1  ;;  %s403_s15 = sphi %s430_s15, %s14_s15  }
   0x2   : > { %p174_p1 = scmp.lt.s32.totalorder %s403_s15, 3 }
   0x4   : > { %p175_p2 = pnand %p362_p0, %p174_p1 }
   0x5   : > { %s363_s17 = sshll.u32 (!%p175_p2), %s358_s16, 1 }
   0x6   : > { %178 = sbr.rel (%p175_p2) target bundleno = 335 (0x14f), region = 36  ;;  %p206_p3 = scmp.lt.s32.totalorder (!%p175_p2), %s363_s17, 3 }
   0xb   : > { %s471_s17 = smov (!%p206_p3, %s363_s17), 3  ;;  %vm233_vm0 = vcmask 261120   ;;  %v369_v27 = vld [vmem:[%s467_s2] ss:$0 sm:$0xff]  ;;  %vm287_vm1 = vcmask 257024  }
   0xc   : > { %s438_s18 = sshll.u32 %s471_s17, 2  ;;  %v370_v29 = vld [vmem:[%s468_s3] ss:$0 sm:$0xff] }
   0xd   : > { %s209_s21 = scalar_lea.vmem %s465_s0, %s438_s18  ;;  %s215_s24 = scalar_lea.vmem %s466_s1, %s438_s18 }
   0xe   : > { %v378_v0 = vld [vmem:[%s209_s21] sm:$0xff]   ;;  %s221_s5 = scalar_lea.vmem %s469_s4, %s438_s18 }
   0xf   : > { %v382_v1 = vld [vmem:[%s215_s24] sm:$0xff]   ;;  %v379_v2 = vunpack.c.l.bf16 %v378_v0  ;;  %v380_v4 = vunpack.c.h.bf16 %v378_v0 }
  0x10   : > { %v383_v3 = vunpack.c.l.bf16 %v382_v1  ;;  %v384_v5 = vunpack.c.h.bf16 %v382_v1 }
  0x12   : > { %v231_v6 = vadd.f32 %v383_v3, %v379_v2  ;;  %v232_v7 = vadd.f32 %v384_v5, %v380_v4 }
  0x14   : > { %v234_v8 = vsel %vm233_vm0, %v231_v6, 0.0  ;;  %v237_v9 = vsel %vm233_vm0, %v232_v7, 0.0 }
  0x15   : > { %235 = vadd.xlane.f32.xlu0 %v234_v8 }
  0x19   : > { %238 = vadd.xlane.f32.xlu0 %v237_v9 }
  0x9e   : > { %v236_v10 = vpop.xlane.xlu0 %235 }
  0x9f   : > { %v241_v11 = vmul.f32 0.03125, %v236_v10 }
  0xa1   : > { %v243_v12 = vsub.f32 %v231_v6, %v241_v11 }
  0xa2   : > { %v239_v13 = vpop.xlane.xlu0 %238 }
  0xa3   : > { %v242_v14 = vmul.f32 0.03125, %v239_v13  ;;  %v245_v15 = vmul.f32 %v243_v12, %v243_v12 }
  0xa5   : > { %v244_v16 = vsub.f32 %v232_v7, %v242_v14  ;;  %v247_v17 = vsel %vm233_vm0, %v245_v15, 0.0 }
  0xa6   : > { %248 = vadd.xlane.f32.xlu1 %v247_v17 }
  0xa7   : > { %v246_v18 = vmul.f32 %v244_v16, %v244_v16 }
  0xa9   : > { %v250_v19 = vsel %vm233_vm0, %v246_v18, 0.0 }
  0xaa   : > { %251 = vadd.xlane.f32.xlu1 %v250_v19 }
 0x12f   : > { %v249_v20 = vpop.xlane.xlu1 %248 }
 0x130   : > { %v253_v21 = vmul.f32 0.03125, %v249_v20 }
 0x132   : > { %v255_v22 = vadd.f32 1e-05, %v253_v21 }
 0x133   : > { %v252_v23 = vpop.xlane.xlu1 %251 }
 0x134   : > { %393 = vrsqrt.f32 %v255_v22  ;;  %v254_v24 = vmul.f32 0.03125, %v252_v23 }
 0x136   : > { %v256_v25 = vadd.f32 1e-05, %v254_v24 }
 0x138   : > { %395 = vrsqrt.f32 %v256_v25 }
 0x141   : > { %v394_v26 = vpop.eup %393 }
 0x142   : > { %v259_v28 = vmul.f32 %v394_v26, %v243_v12 }
 0x144   : > { %v268_v30 = vmul.f32 %v369_v27, %v259_v28 }
 0x145   : > { %v396_v31 = vpop.eup %395 }
 0x146   : > { %v277_v32 = vadd.f32 %v370_v29, %v268_v30  ;;  %v260_v33 = vmul.f32 %v396_v31, %v244_v16 }
 0x148   : > { %v375_v34 = vpack.c.bf16 %v277_v32, %v277_v32  ;;  %v269_v35 = vmul.f32 %v369_v27, %v260_v33 }
 0x14a   : > { %288 = vst.msk [vmem:[%s221_s5] sm:$0xf] %vm287_vm1, %v375_v34  ;;  %v278_v36 = vadd.f32 %v370_v29, %v269_v35 }
 0x14c   : > { %v376_v37 = vpack.c.bf16 %v278_v36, %v278_v36 }
 0x14e   : > { %289 = vst.msk [vmem:[%s221_s5 + $0x4] sm:$0xf] %vm287_vm1, %v376_v37 }
 0x14f PF: > { %s14_s15 = sadd.s32 1, %s403_s15  }
 0x150   : > { %p11_p4 = scmp.ge.s32.totalorder %s14_s15, 4  }
 0x152   :  { %13 = sbr.rel (!%p11_p4) target bundleno = 1 (0x1), region = 69 }

// kernel: video_transformer_forward.16
= control target key start
LH: loop header
LB: loop body
LE: loop exit
PB: predicated region body
PF: predicated region fallthrough
CT: control target
= control target key end

     0   :  { %s574_s18 = smov 0   ;;  %s622_s0 = inlined_call_operand.vmem [shape: bf16[32,32], index: 0, kind: input, shape index: {}]   ;;  %s623_s1 = inlined_call_operand.vmem [shape: bf16[32,64], index: 1, kind: input, shape index: {}]   ;;  %s624_s2 = inlined_call_operand.vmem [shape: f32[1,64], index: 2, kind: input, shape index: {}]   ;;  %s625_s3 = inlined_call_operand.vmem [shape: bf16[64,32], index: 3, kind: input, shape index: {}]   ;;  %s626_s4 = inlined_call_operand.vmem [shape: f32[1,32], index: 4, kind: input, shape index: {}]   ;;  %s627_s5 = inlined_call_operand.vmem [shape: bf16[32,32], index: 5, kind: output, shape index: {}]  }
   0x1 LB: > { %s462_s19 = sadd.s32 4294967295, %s540_s18   ;;  %p466_p0 = scmp.ge.s32.totalorder %s540_s18, 1  ;;  %s540_s18 = sphi %s574_s18, %s15_s18  }
   0x2   : > { %p188_p1 = scmp.lt.s32.totalorder %s540_s18, 3 }
   0x4   : > { %p189_p2 = pnand %p466_p0, %p188_p1 }
   0x5   : > { %s467_s24 = sshll.u32 (!%p189_p2), %s462_s19, 1 }
   0x6   : > { %192 = sbr.rel (%p189_p2) target bundleno = 427 (0x1ab), region = 40  ;;  %p217_p3 = scmp.lt.s32.totalorder (!%p189_p2), %s467_s24, 3 }
   0xb   : > { %v526_v0 = vld [vmem:[%s623_s1 + $0x8] sm:$0xff]   ;;  %v542_v1 = vmov 0.0   ;;  %v527_v2 = vld [vmem:[%s623_s1] sm:$0xff]   ;;  %vm543_vm0 = vmmov 0   ;;  %v529_v3 = vld [vmem:[%s625_s3 + $0x18] sm:$0xff]   ;;  %s629_s24 = smov (!%p217_p3, %s467_s24), 3 }
   0xc   : > { %496 = vmatprep.subr.bf16.mxu0 %v542_v1  ;;  %504 = vmatprep.subr.bf16.mxu1 %v542_v1  ;;  %s468_s27 = sshll.u32 %s629_s24, 2  ;;  %vm259_vm1 = vcmask 261120   ;;  %v530_v5 = vld [vmem:[%s625_s3 + $0x10] sm:$0xff]   ;;  %v531_v6 = vld [vmem:[%s625_s3 + $0x8] sm:$0xff]   ;;  %v532_v7 = vld [vmem:[%s625_s3] sm:$0xff]   ;;  %vm346_vm2 = vcmask 523264  }
   0xd   : > { %497 = vmatpush3.bf16.msra.mxu0 %v526_v0  ;;  %500 = vmatprep.mubr.msk.bf16.mxu0 %vm543_vm0, %v542_v1  ;;  %s220_s30 = scalar_lea.vmem %s622_s0, %s468_s27  ;;  %v471_v8 = vld [vmem:[%s624_s2] ss:$0 sm:$0xff]  ;;  %s226_s19 = scalar_lea.vmem %s627_s5, %s468_s27  ;;  %vm403_vm3 = vcmask 257024  }
   0xe   : > { %498 = vmatprep.subr.bf16.mxu0 %v542_v1  ;;  %512 = vmatprep.mubr.msk.bf16.mxu1 %vm543_vm0, %v542_v1  ;;  %v229_v4 = vld [vmem:[%s220_s30] sm:$0xff]  }
   0xf   : > { %505 = vmatpush3.bf16.msra.mxu1 %v529_v3  ;;  %v476_v18 = vld [vmem:[%s626_s4] ss:$0 sm:$0xff]  ;;  %v391_v19 = vunpack.c.l.bf16 %v229_v4  ;;  %v392_v24 = vunpack.c.h.bf16 %v229_v4 }
  0x10   : > { %506 = vmatprep.subr.bf16.mxu1 %v542_v1 }
  0x11   : > { %499 = vmatpush3.bf16.msra.mxu0 %v527_v2 }
  0x13   : > { %507 = vmatpush3.bf16.msra.mxu1 %v530_v5 }
  0x14   : > { %501 = vmatmul.mubr.msk.bf16.vlgmr.msra.gmra.mxu0 %vm259_vm1, %v229_v4  ;;  %508 = vmatprep.subr.bf16.mxu1 %v542_v1 }
  0x17   : > { %509 = vmatpush3.bf16.msra.mxu1 %v531_v6 }
  0x18   : > { %510 = vmatprep.subr.bf16.mxu1 %v542_v1 }
  0x1b   : > { %511 = vmatpush3.bf16.msra.mxu1 %v532_v7 }
  0xd4   : > { %v297_v9 = vpop.f32.mrf.mxu0 }
  0xd5   : > { %v298_v11 = vadd.f32 %v471_v8, %v297_v9 }
  0xd6   : > { %v502_v10 = vpop.f32.mrf.mxu0 }
  0xd7   : > { %v304_v15 = vmax.f32 %v298_v11, 0.0 }
  0xd8   : > { %v300_v12 = vpop.f32.mrf.mxu0 }
  0xd9   : > { %v301_v13 = vadd.f32 %v471_v8, %v300_v12 }
  0xda   : > { %v503_v14 = vpop.f32.mrf.mxu0 }
  0xdb   : > { %v305_v16 = vmax.f32 %v301_v13, 0.0 }
  0xdd   : > { %v306_v17 = vpack.c.bf16 %v305_v16, %v304_v15 }
  0xdf   : > { %513 = vmatmul.mubr.msk.bf16.vlgmr.msra.gmra.mxu1 %vm346_vm2, %v306_v17 }
 0x19f   : > { %v384_v20 = vpop.f32.mrf.mxu1 }
 0x1a0   : > { %v385_v21 = vadd.f32 %v476_v18, %v384_v20 }
 0x1a1   : > { %v514_v22 = vpop.f32.mrf.mxu1 }
 0x1a2   : > { %v393_v23 = vadd.f32 %v391_v19, %v385_v21 }
 0x1a3   : > { %v387_v25 = vpop.f32.mrf.mxu1 }
 0x1a4   : > { %v486_v26 = vpack.c.bf16 %v393_v23, %v393_v23  ;;  %v388_v27 = vadd.f32 %v476_v18, %v387_v25 }
 0x1a5   : > { %v515_v28 = vpop.f32.mrf.mxu1 }
 0x1a6   : > { %404 = vst.msk [vmem:[%s226_s19] sm:$0xf] %vm403_vm3, %v486_v26  ;;  %v394_v29 = vadd.f32 %v392_v24, %v388_v27 }
 0x1a8   : > { %v487_v30 = vpack.c.bf16 %v394_v29, %v394_v29 }
 0x1aa   : > { %405 = vst.msk [vmem:[%s226_s19 + $0x4] sm:$0xf] %vm403_vm3, %v487_v30 }
 0x1ab PF: > { %s15_s18 = sadd.s32 1, %s540_s18  }
 0x1ac   : > { %p12_p4 = scmp.ge.s32.totalorder %s15_s18, 4  }
 0x1ae   :  { %14 = sbr.rel (!%p12_p4) target bundleno = 1 (0x1), region = 70 }

// kernel: video_transformer_forward.21
= control target key start
LH: loop header
LB: loop body
LE: loop exit
PB: predicated region body
PF: predicated region fallthrough
CT: control target
= control target key end

     0   :  { %vm22_vm0 = vcmask 254976   ;;  %s261_s0 = inlined_call_operand.vmem [shape: f32[2,32], index: 0, kind: input, shape index: {}]   ;;  %s262_s1 = inlined_call_operand.vmem [shape: f32[1,32], index: 1, kind: input, shape index: {}]   ;;  %s263_s2 = inlined_call_operand.vmem [shape: f32[1,32], index: 2, kind: input, shape index: {}]   ;;  %s264_s3 = inlined_call_operand.vmem [shape: f32[32,2], index: 3, kind: input, shape index: {}]   ;;  %s265_s4 = inlined_call_operand.vmem [shape: f32[1,2], index: 4, kind: input, shape index: {}]   ;;  %s266_s5 = inlined_call_operand.hbm [shape: f32[2,2], index: 5, kind: output, shape index: {}]  }
   0x1   :  { %v21_v0 = vld [vmem:[%s261_s0] sm:$0x3] }
   0x2   :  { %10 = vsyncpa [#allocation3], 0  ;;  %v23_v1 = vsel %vm22_vm0, %v21_v0, 0.0  ;;  %v56_v7 = vld [vmem:[%s264_s3 + $0x18] sm:$0xff]  ;;  %v201_v8 = vmov 0.0   ;;  %v55_v9 = vld [vmem:[%s264_s3 + $0x10] sm:$0xff] }
   0x3   :  { %24 = vadd.xlane.f32.xlu0 %v23_v1  ;;  %163 = vmatprep.subr.mxu0 %v201_v8  ;;  %vm202_vm1 = vmmov 0   ;;  %v54_v10 = vld [vmem:[%s264_s3 + $0x8] sm:$0xff]  ;;  %v53_v11 = vld [vmem:[%s264_s3] sm:$0xff]  ;;  %vm64_vm2 = vcmask 261120   ;;  %s203_s7 = smov [#allocation2]   ;;  %vm138_vm3 = vcmask 9216  }
   0x4   :  { %171 = vmatprep.mubr.msk.f32.mxu0 %vm202_vm1, %v201_v8  ;;  %164 = vmatpush3.msra.mxu0 %v56_v7  ;;  %v154_v16 = vld [vmem:[%s262_s1] ss:$0 sm:$0xff]  ;;  %s146_s8 = sshll.u32 %s203_s7, 4  ;;  %s147_s8 = int_to_ptr.vmem [resolvable:$true] %s146_s8 }
   0x5   :  { %165 = vmatprep.subr.mxu0 %v201_v8  ;;  %v155_v18 = vld [vmem:[%s263_s2] ss:$0 sm:$0xff]  ;;  %s179_s1 = scalar_lea.vmem %s147_s8, 32  ;;  %p184_p1 = scmp.lt.s32.totalorder %s147_s8, %s147_s8 }
   0x6   :  { %166 = vmatpush3.msra.mxu0 %v55_v9  ;;  %v156_v21 = vld [vmem:[%s265_s4] ss:$0 sm:$0xff]  ;;  %p180_p0 = scmp.ne.s32.totalorder %s147_s8, %s179_s1  ;;  %p185_p2 = scmp.lt.s32.totalorder %s179_s1, %s179_s1 }
   0x7   :  { %167 = vmatprep.subr.mxu0 %v201_v8 }
   0x8   :  { %168 = vmatpush3.msra.mxu0 %v54_v10  ;;  %p186_p3 = por %p185_p2, %p184_p1 }
   0x9   :  { %169 = vmatprep.subr.mxu0 %v201_v8 }
   0xa   :  { %170 = vmatpush3.msra.mxu0 %v53_v11  ;;  %p187_p4 = pnand %p186_p3, %p180_p0 }
  0x8c   :  { %v25_v2 = vpop.xlane.xlu0 %24 }
  0x8d   :  { %v27_v3 = vmul.f32 0.03125, %v25_v2 }
  0x8f   :  { %v28_v4 = vsub.f32 %v21_v0, %v27_v3 }
  0x91   :  { %v29_v5 = vmul.f32 %v28_v4, %v28_v4 }
  0x93   :  { %v30_v6 = vsel %vm22_vm0, %v29_v5, 0.0 }
  0x94   :  { %31 = vadd.xlane.f32.xlu0 %v30_v6 }
 0x11d   :  { %v32_v12 = vpop.xlane.xlu0 %31 }
 0x11e   :  { %v33_v13 = vmul.f32 0.03125, %v32_v12 }
 0x120   :  { %v34_v14 = vadd.f32 1e-05, %v33_v13 }
 0x122   :  { %177 = vrsqrt.f32 %v34_v14 }
 0x12f   :  { %v178_v15 = vpop.eup %177 }
 0x130   :  { %v36_v17 = vmul.f32 %v178_v15, %v28_v4 }
 0x132   :  { %v44_v19 = vmul.f32 %v154_v16, %v36_v17 }
 0x134   :  { %v52_v20 = vadd.f32 %v155_v18, %v44_v19 }
 0x136   :  { %172 = vmatmul.mubr.msk.f32.vlgmr.msra.gmra.mxu0 %vm64_vm2, %v52_v20 }
 0x1f6   :  { %v134_v22 = vpop.f32.mrf.mxu0 }
 0x1f7   :  { %v135_v23 = vadd.f32 %v156_v21, %v134_v22 }
 0x1f8   :  { %v173_v24 = vpop.f32.mrf.mxu0 }
 0x1f9   :  { %139 = vst.msk [vmem:[#allocation2] sm:$0x3] %vm138_vm3, %v135_v23 }
 0x1fa   :  { %190 = shalt.err (!%p187_p4)
}
 0x1fb   :  { %149 = dma.vmem_to_hbm [thread:$0]  %s147_s8, 32, %s266_s5, [#allocation3]  }
 0x1fc   :  { %199 = dma.done.wait [#allocation3], 32  }
 0x1fd   :  { %200 = vsyncadd [#allocation3], 4294967264 }
 0x1fe   :  { %153 = vsyncpa [#allocation3], 1 }

// kernel: video_transformer_forward.13
= control target key start
LH: loop header
LB: loop body
LE: loop exit
PB: predicated region body
PF: predicated region fallthrough
CT: control target
= control target key end

     0   :  { %s3680_s18 = smov 0   ;;  %s4088_s0 = inlined_call_operand.vmem [shape: bf16[8,4,32], index: 0, kind: input, shape index: {}]   ;;  %s4089_s1 = inlined_call_operand.vmem [shape: bf16[32,96], index: 1, kind: input, shape index: {}]   ;;  %s4090_s2 = inlined_call_operand.vmem [shape: f32[1,96], index: 2, kind: input, shape index: {}]   ;;  %s4091_s3 = inlined_call_operand.vmem [shape: bf16[32,32], index: 3, kind: input, shape index: {}]   ;;  %s4092_s4 = inlined_call_operand.vmem [shape: f32[1,32], index: 4, kind: input, shape index: {}]   ;;  %s4093_s5 = inlined_call_operand.vmem [shape: bf16[8,4,32], index: 5, kind: output, shape index: {}]  }
   0x1 LB: > { %s3203_s19 = sadd.s32 4294967295, %s3631_s18   ;;  %p3207_p0 = scmp.ge.s32.totalorder %s3631_s18, 1  ;;  %s3631_s18 = sphi %s3680_s18, %s15_s18  }
   0x2   : > { %p188_p1 = scmp.lt.s32.totalorder %s3631_s18, 3 }
   0x4   : > { %p189_p2 = pnand %p3207_p0, %p188_p1 }
   0x5   : > { %s3208_s24 = sshll.u32 (!%p189_p2), %s3203_s19, 2  ;;  %s3636_s6 = smov (!%p189_p2), 96  }
   0x6   : > { %192 = sbr.rel (%p189_p2) target bundleno = 2300 (0x8fc), region = 40  ;;  %p217_p3 = scmp.lt.s32.totalorder (!%p189_p2), %s3208_s24, 7 }
   0x7   : > { %s3637_s7 = smov (!%p189_p2), 64   ;;  %s3638_s8 = smov (!%p189_p2), 88  }
   0x8   : > { %s3639_s9 = smov (!%p189_p2), 120   ;;  %s3640_s10 = smov (!%p189_p2), 56  }
   0x9   : > { %s3641_s11 = smov (!%p189_p2), 80   ;;  %s3642_s12 = smov (!%p189_p2), 112  }
   0xa   : > { %s3643_s13 = smov (!%p189_p2), 48   ;;  %s3644_s14 = smov (!%p189_p2), 72  }
   0xb   : > { %v3557_v0 = vld [vmem:[%s4089_s1 + $0x8] sm:$0xff]   ;;  %v253_v1 = vlaneseq  ;;  %v3633_v2 = vmov 0.0   ;;  %v3558_v3 = vld [vmem:[%s4089_s1] sm:$0xff]   ;;  %vm3634_vm0 = vmmov 0   ;;  %v3635_v4 = vmov 1983009808  }
   0xc   : > { %3356 = vmatprep.subr.bf16.mxu0 %v3633_v2  ;;  %3369 = vmatprep.subr.mxu1 %v3633_v2  ;;  %v251_v5 = vunpack.c.l.s4 %v3635_v4  ;;  %s4095_s24 = smov (!%p217_p3, %s3208_s24), 7  ;;  %vm277_vm1 = vcmask 261120   ;;  %v3212_v18 = vld [vmem:[%s4090_s2] ss:$0 sm:$0xff]  ;;  %vm328_vm2 = vcmask 64512   ;;  %vm678_vm3 = vcmask 1043456  }
   0xd   : > { %3357 = vmatpush3.bf16.msra.mxu0 %v3557_v0  ;;  %3360 = vmatprep.mubr.msk.bf16.mxu0 %vm3634_vm0, %v3633_v2  ;;  %v254_v6 = vshrl.u32 %v253_v1, 7  ;;  %s3209_s25 = sshll.u32 %s4095_s24, 1  ;;  %vm635_vm4 = vcmask 27648   ;;  %vm674_vm5 = vcmask 31744   ;;  %s3645_s15 = smov 104   ;;  %vm3046_vm6 = vcmask 130048  }
   0xe   : > { %3358 = vmatprep.subr.bf16.mxu0 %v3633_v2  ;;  %3371 = vmatprep.mubr.msk.f32.mxu1 %vm3634_vm0, %v3633_v2  ;;  %v252_v7 = vunpack.c.0.s8 %v251_v5  ;;  %s220_s28 = scalar_lea.vmem %s4088_s0, %s3209_s25  ;;  %s3646_s16 = smov 40   ;;  %vm3051_vm7 = vcmask 195584   ;;  %vm3142_vm8 = vcmask 254976  }
   0xf   : > { %v229_v9 = vld [vmem:[%s220_s28] sm:$0x3]  ;;  %v230_v10 = vld [vmem:[%s220_s28 + $0x2] sm:$0x3]  ;;  %v231_v11 = vld [vmem:[%s220_s28 + $0x4] sm:$0x3] }
  0x10   : > { %v255_v8 = vsub.s32 %v252_v7, %v254_v6  ;;  %v232_v12 = vld [vmem:[%s220_s28 + $0x6] sm:$0x3]  ;;  %v248_v13 = vcombine.low %v229_v9, %v230_v10  ;;  %s3647_s17 = smov 8   ;;  %s3648_s19 = smov 16  }
  0x11   : > { %3359 = vmatpush3.bf16.msra.mxu0 %v3558_v3  ;;  %v249_v14 = vcombine.low %v231_v11, %v232_v12  ;;  %s3649_s26 = smov 24  }
  0x12   : > { %3364 = vmatprep.subr.mxu0 %v3633_v2  ;;  %v256_v15 = vrot.slane %v248_v13, %v255_v8 }
  0x13   : > { %v263_v16 = vrot.slane %v249_v14, %v255_v8 }
  0x15   : > { %v264_v17 = vcombine.low %v256_v15, %v263_v16 }
  0x17   : > { %3361 = vmatmul.mubr.msk.bf16.vlgmr.msra.gmra.mxu0 %vm277_vm1, %v264_v17 }
  0x18   : > { %3366 = vmatprep.mubr.msk.f32.mxu0 %vm3634_vm0, %v3633_v2 }
  0xd7   : > { %v315_v19 = vpop.f32.mrf.mxu0 }
  0xd8   : > { %v3716_v20 = vadd.f32 %v3212_v18, %v315_v19 }
  0xd9   : > { %v3362_v21 = vpop.f32.mrf.mxu0 }
  0xda   : > { %326 = vrot.lane.b32.xlu0 %v3716_v20, %s3636_s6  ;;  %v3723_v24 = vcombine.high %v3716_v20, %v3716_v20 }
  0xdb   : > { %v318_v22 = vpop.f32.mrf.mxu0 }
  0xdc   : > { %v3719_v23 = vadd.f32 %v3212_v18, %v318_v22 }
  0xdd   : > { %v3363_v25 = vpop.f32.mrf.mxu0 }
  0xde   : > { %403 = vrot.lane.b32.xlu0 %v3723_v24, %s3636_s6  ;;  %479 = vrot.lane.b32.xlu1 %v3719_v23, %s3636_s6  ;;  %v3729_v26 = vcombine.high %v3719_v23, %v3719_v23 }
  0xe2   : > { %751 = vrot.lane.b32.xlu0 %v3723_v24, %s3637_s7  ;;  %555 = vrot.lane.b32.xlu1 %v3729_v26, %s3636_s6  ;;  %s226_s6 = scalar_lea.vmem %s4093_s5, %s3209_s25 }
  0xe6   : > { %992 = vrot.lane.b32.xlu0 %v3716_v20, %s3638_s8  ;;  %672 = vrot.lane.b32.xlu1 %v3716_v20, %s3637_s7 }
  0xea   : > { %828 = vrot.lane.b32.xlu1 %v3719_v23, %s3637_s7 }
  0xee   : > { %1070 = vrot.lane.b32.xlu1 %v3723_v24, %s3638_s8 }
  0xf2   : > { %905 = vrot.lane.b32.xlu1 %v3729_v26, %s3637_s7 }
 0x14c   : > { %v327_v27 = vpop.permute.xlu0 %326 }
 0x14d   : > { %3365 = vmatpush3.xpose.msk.msra.mxu0 %vm328_vm2, %v327_v27 }
 0x14e   : > { %3379 = vmatprep.subr.mxu0 %v3633_v2 }
 0x150   : > { %3367 = vmatmul.mubr.msk.f32.vlgmr.msra.gmra.mxu0 %vm328_vm2, %v3716_v20  ;;  %v404_v28 = vpop.permute.xlu0 %403  ;;  %v480_v29 = vpop.permute.xlu1 %479 }
 0x151   : > { %3370 = vmatpush3.xpose.msk.msra.mxu1 %vm328_vm2, %v404_v28  ;;  %3381 = vmatprep.mubr.msk.f32.mxu0 %vm3634_vm0, %v3633_v2 }
 0x152   : > { %3374 = vmatprep.subr.mxu1 %v3633_v2 }
 0x154   : > { %3372 = vmatmul.mubr.msk.f32.vlgmr.msra.gmra.mxu1 %vm328_vm2, %v3723_v24  ;;  %v556_v30 = vpop.permute.xlu1 %555  ;;  %v752_v31 = vpop.permute.xlu0 %751 }
 0x155   : > { %3375 = vmatpush3.xpose.msk.msra.mxu1 %vm328_vm2, %v480_v29  ;;  %3380 = vmatpush3.xpose.msk.msra.mxu0 %vm328_vm2, %v556_v30 }
 0x156   : > { %3376 = vmatprep.mubr.msk.f32.mxu1 %vm3634_vm0, %v3633_v2  ;;  %3384 = vmatprep.subr.mxu1 %v3633_v2 }
 0x157   : > { %3389 = vmatprep.subr.mxu0 %v3633_v2 }
 0x158   : > { %3377 = vmatmul.mubr.msk.f32.vlgmr.msra.gmra.mxu1 %vm328_vm2, %v3719_v23  ;;  %3382 = vmatmul.mubr.msk.f32.vlgmr.msra.gmra.mxu0 %vm328_vm2, %v3729_v26  ;;  %v673_v32 = vpop.permute.xlu1 %672  ;;  %v993_v51 = vpop.permute.xlu0 %992 }
 0x159   : > { %3385 = vmatpush3.msk.msra.mxu1 %vm678_vm3, %v673_v32  ;;  %3390 = vmatpush3.msk.msra.mxu0 %vm678_vm3, %v752_v31 }
 0x15a   : > { %3386 = vmatprep.mubr.msk.f32.mxu1 %vm3634_vm0, %v3633_v2  ;;  %3394 = vmatprep.subr.mxu1 %v3633_v2 }
 0x15b   : > { %3391 = vmatprep.mubr.msk.f32.mxu0 %vm3634_vm0, %v3633_v2  ;;  %3399 = vmatprep.subr.mxu0 %v3633_v2 }
 0x15c   : > { %v829_v49 = vpop.permute.xlu1 %828 }
 0x160   : > { %v1071_v50 = vpop.permute.xlu1 %1070 }
 0x164   : > { %v906_v52 = vpop.permute.xlu1 %905 }
 0x210   : > { %v399_v33 = vpop.f32.mrf.mxu0 }
 0x211   : > { %v631_v34 = vmul.f32 0.35355338, %v399_v33 }
 0x212   : > { %v3368_v35 = vpop.f32.mrf.mxu0 }
 0x213   : > { %v636_v36 = vsel %vm635_vm4, %v631_v34, -inf }
 0x214   : > { %v475_v37 = vpop.f32.mrf.mxu1  ;;  %637 = vmax.xlane.f32.xlu0 %v636_v36 }
 0x215   : > { %v632_v38 = vmul.f32 0.35355338, %v475_v37 }
 0x216   : > { %v3373_v39 = vpop.f32.mrf.mxu1 }
 0x217   : > { %v639_v40 = vsel %vm635_vm4, %v632_v38, -inf }
 0x218   : > { %v551_v41 = vpop.f32.mrf.mxu1  ;;  %640 = vmax.xlane.f32.xlu1 %v639_v40  ;;  %v627_v42 = vpop.f32.mrf.mxu0 }
 0x219   : > { %v633_v43 = vmul.f32 0.35355338, %v551_v41  ;;  %v634_v46 = vmul.f32 0.35355338, %v627_v42 }
 0x21a   : > { %v3378_v44 = vpop.f32.mrf.mxu1  ;;  %v3383_v45 = vpop.f32.mrf.mxu0 }
 0x21b   : > { %v642_v47 = vsel %vm635_vm4, %v633_v43, -inf  ;;  %v645_v48 = vsel %vm635_vm4, %v634_v46, -inf }
 0x21c   : > { %643 = vmax.xlane.f32.xlu0 %v642_v47 }
 0x220   : > { %646 = vmax.xlane.f32.xlu0 %v645_v48 }
 0x229   : > { %1068 = vrot.lane.b32.xlu1 %v3723_v24, %s3639_s9 }
 0x22d   : > { %1226 = vrot.lane.b32.xlu1 %v3729_v26, %s3638_s8 }
 0x231   : > { %1224 = vrot.lane.b32.xlu1 %v3729_v26, %s3639_s9 }
 0x235   : > { %1342 = vrot.lane.b32.xlu1 %v3716_v20, %s3640_s10 }
 0x236   : > { %990 = vrot.lane.b32.xlu0 %v3716_v20, %s3639_s9 }
 0x239   : > { %1496 = vrot.lane.b32.xlu1 %v3719_v23, %s3640_s10 }
 0x23a   : > { %1148 = vrot.lane.b32.xlu0 %v3719_v23, %s3638_s8 }
 0x23d   : > { %1573 = vrot.lane.b32.xlu1 %v3729_v26, %s3640_s10 }
 0x23e   : > { %1146 = vrot.lane.b32.xlu0 %v3719_v23, %s3639_s9 }
 0x241   : > { %1738 = vrot.lane.b32.xlu1 %v3723_v24, %s3641_s11 }
 0x242   : > { %1419 = vrot.lane.b32.xlu0 %v3723_v24, %s3640_s10 }
 0x246   : > { %1660 = vrot.lane.b32.xlu0 %v3716_v20, %s3641_s11 }
 0x29d   : > { %v638_v53 = vpop.xlane.xlu0 %637 }
 0x29e   : > { %v648_v54 = vsub.f32 %v631_v34, %v638_v53 }
 0x2a0   : > { %v652_v55 = vmul.f32 1.442695, %v648_v54 }
 0x2a1   : > { %v641_v56 = vpop.xlane.xlu1 %640 }
 0x2a2   : > { %3561 = vpow2.f32 %v652_v55  ;;  %v649_v57 = vsub.f32 %v632_v38, %v641_v56 }
 0x2a4   : > { %v654_v58 = vmul.f32 1.442695, %v649_v57 }
 0x2a5   : > { %v644_v59 = vpop.xlane.xlu0 %643  ;;  %v1069_v1 = vpop.permute.xlu1 %1068 }
 0x2a6   : > { %3563 = vpow2.f32 %v654_v58  ;;  %v650_v60 = vsub.f32 %v633_v43, %v644_v59 }
 0x2a8   : > { %v656_v61 = vmul.f32 1.442695, %v650_v60 }
 0x2a9   : > { %v647_v62 = vpop.xlane.xlu0 %646  ;;  %v1227_v6 = vpop.permute.xlu1 %1226 }
 0x2aa   : > { %3565 = vpow2.f32 %v656_v61  ;;  %v651_v63 = vsub.f32 %v634_v46, %v647_v62 }
 0x2ac   : > { %v658_v0 = vmul.f32 1.442695, %v651_v63 }
 0x2ad   : > { %v991_v4 = vpop.permute.xlu0 %990  ;;  %v1225_v9 = vpop.permute.xlu1 %1224 }
 0x2ae   : > { %3567 = vpow2.f32 %v658_v0 }
 0x2af   : > { %v3788_v3 = vpop.eup %3561 }
 0x2b0   : > { %3387 = vmatmul.mubr.msk.f32.vlgmr.msra.gmra.mxu1 %vm674_vm5, %v3788_v3 }
 0x2b1   : > { %3395 = vmatpush3.msk.msra.mxu1 %vm678_vm3, %v829_v49  ;;  %3396 = vmatprep.mubr.msk.f32.mxu1 %vm3634_vm0, %v3633_v2  ;;  %v1149_v8 = vpop.permute.xlu0 %1148  ;;  %v1343_v12 = vpop.permute.xlu1 %1342 }
 0x2b2   : > { %3404 = vmatprep.subr.mxu1 %v3633_v2 }
 0x2b3   : > { %v3796_v5 = vpop.eup %3563 }
 0x2b4   : > { %3392 = vmatmul.mubr.msk.f32.vlgmr.msra.gmra.mxu0 %vm674_vm5, %v3796_v5 }
 0x2b5   : > { %3400 = vmatpush3.msk.msra.mxu0 %vm678_vm3, %v906_v52  ;;  %3401 = vmatprep.mubr.msk.f32.mxu0 %vm3634_vm0, %v3633_v2  ;;  %v1147_v11 = vpop.permute.xlu0 %1146  ;;  %v1497_v42 = vpop.permute.xlu1 %1496 }
 0x2b6   : > { %3409 = vmatprep.subr.mxu0 %v3633_v2 }
 0x2b7   : > { %v3804_v7 = vpop.eup %3565 }
 0x2b8   : > { %3397 = vmatmul.mubr.msk.f32.vlgmr.msra.gmra.mxu1 %vm674_vm5, %v3804_v7 }
 0x2b9   : > { %3405 = vmatpush3.xpose.msk.msra.mxu1 %vm328_vm2, %v993_v51  ;;  %3406 = vmatprep.mubr.msk.f32.mxu1 %vm3634_vm0, %v3633_v2  ;;  %v1420_v13 = vpop.permute.xlu0 %1419  ;;  %v1574_v43 = vpop.permute.xlu1 %1573 }
 0x2ba   : > { %3414 = vmatprep.subr.mxu1 %v3633_v2 }
 0x2bb   : > { %v3812_v10 = vpop.eup %3567 }
 0x2bc   : > { %3402 = vmatmul.mubr.msk.f32.vlgmr.msra.gmra.mxu0 %vm674_vm5, %v3812_v10  ;;  %3407 = vmatmul.mubr.msk.f32.vlgmr.msra.gmra.mxu1 %vm328_vm2, %v991_v4 }
 0x2bd   : > { %3410 = vmatpush3.xpose.msk.msra.mxu0 %vm328_vm2, %v1071_v50  ;;  %3415 = vmatpush3.xpose.msk.msra.mxu1 %vm328_vm2, %v1149_v8  ;;  %v1661_v44 = vpop.permute.xlu0 %1660  ;;  %v1739_v45 = vpop.permute.xlu1 %1738 }
 0x2be   : > { %3411 = vmatprep.mubr.msk.f32.mxu0 %vm3634_vm0, %v3633_v2  ;;  %3416 = vmatprep.mubr.msk.f32.mxu1 %vm3634_vm0, %v3633_v2 }
 0x2bf   : > { %3419 = vmatprep.subr.mxu0 %v3633_v2  ;;  %3424 = vmatprep.subr.mxu1 %v3633_v2 }
 0x2c0   : > { %3412 = vmatmul.mubr.msk.f32.vlgmr.msra.gmra.mxu0 %vm328_vm2, %v1069_v1  ;;  %3417 = vmatmul.mubr.msk.f32.vlgmr.msra.gmra.mxu1 %vm328_vm2, %v1147_v11 }
 0x2c1   : > { %3420 = vmatpush3.xpose.msk.msra.mxu0 %vm328_vm2, %v1227_v6  ;;  %3425 = vmatpush3.msk.msra.mxu1 %vm678_vm3, %v1343_v12 }
 0x2c2   : > { %3421 = vmatprep.mubr.msk.f32.mxu0 %vm3634_vm0, %v3633_v2  ;;  %3429 = vmatprep.subr.mxu0 %v3633_v2 }
 0x2c3   : > { %3426 = vmatprep.mubr.msk.f32.mxu1 %vm3634_vm0, %v3633_v2  ;;  %3434 = vmatprep.subr.mxu1 %v3633_v2 }
 0x2c4   : > { %3422 = vmatmul.mubr.msk.f32.vlgmr.msra.gmra.mxu0 %vm328_vm2, %v1225_v9 }
 0x2c5   : > { %3430 = vmatpush3.msk.msra.mxu0 %vm678_vm3, %v1420_v13  ;;  %3431 = vmatprep.mubr.msk.f32.mxu0 %vm3634_vm0, %v3633_v2 }
 0x2c6   : > { %3439 = vmatprep.subr.mxu0 %v3633_v2 }
 0x370   : > { %v3840_v14 = vpop.f32.mrf.mxu1 }
 0x372   : > { %v3388_v15 = vpop.f32.mrf.mxu1 }
 0x374   : > { %v3842_v16 = vpop.f32.mrf.mxu0 }
 0x376   : > { %v3393_v17 = vpop.f32.mrf.mxu0 }
 0x378   : > { %v3844_v18 = vpop.f32.mrf.mxu1 }
 0x37a   : > { %v3398_v19 = vpop.f32.mrf.mxu1 }
 0x37c   : > { %v3846_v21 = vpop.f32.mrf.mxu0  ;;  %v1064_v22 = vpop.f32.mrf.mxu1 }
 0x37d   : > { %v1302_v25 = vmul.f32 0.35355338, %v1064_v22 }
 0x37e   : > { %v3403_v27 = vpop.f32.mrf.mxu0  ;;  %v3408_v28 = vpop.f32.mrf.mxu1 }
 0x37f   : > { %v1306_v29 = vsel %vm635_vm4, %v1302_v25, -inf }
 0x380   : > { %1307 = vmax.xlane.f32.xlu0 %v1306_v29  ;;  %v1142_v30 = vpop.f32.mrf.mxu0  ;;  %v1220_v31 = vpop.f32.mrf.mxu1 }
 0x381   : > { %v1303_v32 = vmul.f32 0.35355338, %v1142_v30  ;;  %v1304_v33 = vmul.f32 0.35355338, %v1220_v31 }
 0x382   : > { %v3413_v34 = vpop.f32.mrf.mxu0  ;;  %v3418_v35 = vpop.f32.mrf.mxu1 }
 0x383   : > { %v1312_v36 = vsel %vm635_vm4, %v1304_v33, -inf  ;;  %v1309_v37 = vsel %vm635_vm4, %v1303_v32, -inf }
 0x384   : > { %1313 = vmax.xlane.f32.xlu0 %v1312_v36  ;;  %1310 = vmax.xlane.f32.xlu1 %v1309_v37  ;;  %v1298_v38 = vpop.f32.mrf.mxu0 }
 0x385   : > { %v1305_v39 = vmul.f32 0.35355338, %v1298_v38 }
 0x386   : > { %v3423_v40 = vpop.f32.mrf.mxu0 }
 0x387   : > { %v1315_v41 = vsel %vm635_vm4, %v1305_v39, -inf }
 0x388   : > { %1316 = vmax.xlane.f32.xlu0 %v1315_v41 }
 0x395   : > { %1736 = vrot.lane.b32.xlu1 %v3723_v24, %s3642_s12 }
 0x399   : > { %1894 = vrot.lane.b32.xlu1 %v3729_v26, %s3641_s11 }
 0x39d   : > { %1892 = vrot.lane.b32.xlu1 %v3729_v26, %s3642_s12 }
 0x39e   : > { %1658 = vrot.lane.b32.xlu0 %v3716_v20, %s3642_s12 }
 0x3a1   : > { %2010 = vrot.lane.b32.xlu1 %v3716_v20, %s3643_s13 }
 0x3a2   : > { %1816 = vrot.lane.b32.xlu0 %v3719_v23, %s3641_s11 }
 0x3a5   : > { %2164 = vrot.lane.b32.xlu1 %v3719_v23, %s3643_s13 }
 0x3a6   : > { %1814 = vrot.lane.b32.xlu0 %v3719_v23, %s3642_s12 }
 0x3a9   : > { %2241 = vrot.lane.b32.xlu1 %v3729_v26, %s3643_s13 }
 0x3aa   : > { %2087 = vrot.lane.b32.xlu0 %v3723_v24, %s3643_s13 }
 0x3ad   : > { %2406 = vrot.lane.b32.xlu1 %v3723_v24, %s3644_s14 }
 0x3ae   : > { %2328 = vrot.lane.b32.xlu0 %v3716_v20, %s3644_s14 }
 0x409   : > { %v1308_v46 = vpop.xlane.xlu0 %1307 }
 0x40a   : > { %v1318_v47 = vsub.f32 %v1302_v25, %v1308_v46 }
 0x40c   : > { %v1322_v48 = vmul.f32 1.442695, %v1318_v47 }
 0x40d   : > { %v1314_v49 = vpop.xlane.xlu0 %1313  ;;  %v1311_v50 = vpop.xlane.xlu1 %1310 }
 0x40e   : > { %3569 = vpow2.f32 %v1322_v48  ;;  %v1320_v51 = vsub.f32 %v1304_v33, %v1314_v49  ;;  %v1319_v52 = vsub.f32 %v1303_v32, %v1311_v50 }
 0x410   : > { %v1326_v53 = vmul.f32 1.442695, %v1320_v51  ;;  %v1324_v54 = vmul.f32 1.442695, %v1319_v52 }
 0x411   : > { %v1317_v55 = vpop.xlane.xlu0 %1316  ;;  %v1737_v58 = vpop.permute.xlu1 %1736 }
 0x412   : > { %3571 = vpow2.f32 %v1326_v53  ;;  %v1321_v56 = vsub.f32 %v1305_v39, %v1317_v55 }
 0x413   : > { %3573 = vpow2.f32 %v1324_v54 }
 0x414   : > { %v1328_v57 = vmul.f32 1.442695, %v1321_v56 }
 0x415   : > { %v1659_v60 = vpop.permute.xlu0 %1658  ;;  %v1895_v61 = vpop.permute.xlu1 %1894 }
 0x416   : > { %3575 = vpow2.f32 %v1328_v57 }
 0x419   : > { %v1817_v0 = vpop.permute.xlu0 %1816  ;;  %v1893_v1 = vpop.permute.xlu1 %1892 }
 0x41b   : > { %v3868_v59 = vpop.eup %3569 }
 0x41c   : > { %3427 = vmatmul.mubr.msk.f32.vlgmr.msra.gmra.mxu1 %vm674_vm5, %v3868_v59 }
 0x41d   : > { %3435 = vmatpush3.msk.msra.mxu1 %vm678_vm3, %v1497_v42  ;;  %3436 = vmatprep.mubr.msk.f32.mxu1 %vm3634_vm0, %v3633_v2  ;;  %v1815_v6 = vpop.permute.xlu0 %1814  ;;  %v2011_v8 = vpop.permute.xlu1 %2010 }
 0x41e   : > { %3444 = vmatprep.subr.mxu1 %v3633_v2 }
 0x41f   : > { %v3876_v62 = vpop.eup %3571 }
 0x420   : > { %v3878_v63 = vpop.eup %3573  ;;  %3437 = vmatmul.mubr.msk.f32.vlgmr.msra.gmra.mxu1 %vm674_vm5, %v3876_v62 }
 0x421   : > { %3432 = vmatmul.mubr.msk.f32.vlgmr.msra.gmra.mxu0 %vm674_vm5, %v3878_v63  ;;  %3445 = vmatpush3.xpose.msk.msra.mxu1 %vm328_vm2, %v1661_v44  ;;  %v2088_v9 = vpop.permute.xlu0 %2087 }
 0x422   : > { %3440 = vmatpush3.msk.msra.mxu0 %vm678_vm3, %v1574_v43  ;;  %3441 = vmatprep.mubr.msk.f32.mxu0 %vm3634_vm0, %v3633_v2  ;;  %v2165_v43 = vpop.permute.xlu1 %2164 }
 0x423   : > { %v3888_v4 = vpop.eup %3575  ;;  %3446 = vmatprep.mubr.msk.f32.mxu1 %vm3634_vm0, %v3633_v2  ;;  %3449 = vmatprep.subr.mxu0 %v3633_v2 }
 0x424   : > { %3454 = vmatprep.subr.mxu1 %v3633_v2  ;;  %3447 = vmatmul.mubr.msk.f32.vlgmr.msra.gmra.mxu1 %vm328_vm2, %v1659_v60 }
 0x425   : > { %3442 = vmatmul.mubr.msk.f32.vlgmr.msra.gmra.mxu0 %vm674_vm5, %v3888_v4  ;;  %3455 = vmatpush3.xpose.msk.msra.mxu1 %vm328_vm2, %v1817_v0 }
 0x426   : > { %3450 = vmatpush3.xpose.msk.msra.mxu0 %vm328_vm2, %v1739_v45  ;;  %3451 = vmatprep.mubr.msk.f32.mxu0 %vm3634_vm0, %v3633_v2  ;;  %v2242_v44 = vpop.permute.xlu1 %2241  ;;  %v2329_v45 = vpop.permute.xlu0 %2328 }
 0x427   : > { %3456 = vmatprep.mubr.msk.f32.mxu1 %vm3634_vm0, %v3633_v2  ;;  %3459 = vmatprep.subr.mxu0 %v3633_v2 }
 0x428   : > { %3464 = vmatprep.subr.mxu1 %v3633_v2  ;;  %3457 = vmatmul.mubr.msk.f32.vlgmr.msra.gmra.mxu1 %vm328_vm2, %v1815_v6 }
 0x429   : > { %3452 = vmatmul.mubr.msk.f32.vlgmr.msra.gmra.mxu0 %vm328_vm2, %v1737_v58  ;;  %3465 = vmatpush3.msk.msra.mxu1 %vm678_vm3, %v2011_v8 }
 0x42a   : > { %3460 = vmatpush3.xpose.msk.msra.mxu0 %vm328_vm2, %v1895_v61  ;;  %3461 = vmatprep.mubr.msk.f32.mxu0 %vm3634_vm0, %v3633_v2  ;;  %v2407_v47 = vpop.permute.xlu1 %2406 }
 0x42b   : > { %3469 = vmatprep.subr.mxu0 %v3633_v2  ;;  %3466 = vmatprep.mubr.msk.f32.mxu1 %vm3634_vm0, %v3633_v2 }
 0x42c   : > { %3474 = vmatprep.subr.mxu1 %v3633_v2 }
 0x42d   : > { %3462 = vmatmul.mubr.msk.f32.vlgmr.msra.gmra.mxu0 %vm328_vm2, %v1893_v1 }
 0x42e   : > { %3470 = vmatpush3.msk.msra.mxu0 %vm678_vm3, %v2088_v9  ;;  %3471 = vmatprep.mubr.msk.f32.mxu0 %vm3634_vm0, %v3633_v2 }
 0x42f   : > { %3479 = vmatprep.subr.mxu0 %v3633_v2 }
 0x4dc   : > { %v3920_v11 = vpop.f32.mrf.mxu1 }
 0x4de   : > { %v3428_v12 = vpop.f32.mrf.mxu1 }
 0x4e0   : > { %v3922_v13 = vpop.f32.mrf.mxu1 }
 0x4e1   : > { %v3924_v15 = vpop.f32.mrf.mxu0 }
 0x4e2   : > { %v3438_v17 = vpop.f32.mrf.mxu1 }
 0x4e3   : > { %v3433_v19 = vpop.f32.mrf.mxu0 }
 0x4e4   : > { %v1732_v22 = vpop.f32.mrf.mxu1 }
 0x4e5   : > { %v3926_v25 = vpop.f32.mrf.mxu0  ;;  %v1970_v27 = vmul.f32 0.35355338, %v1732_v22 }
 0x4e6   : > { %v3448_v28 = vpop.f32.mrf.mxu1 }
 0x4e7   : > { %v3443_v29 = vpop.f32.mrf.mxu0  ;;  %v1974_v30 = vsel %vm635_vm4, %v1970_v27, -inf }
 0x4e8   : > { %1975 = vmax.xlane.f32.xlu0 %v1974_v30  ;;  %v1888_v31 = vpop.f32.mrf.mxu1 }
 0x4e9   : > { %v1810_v32 = vpop.f32.mrf.mxu0  ;;  %v1972_v33 = vmul.f32 0.35355338, %v1888_v31 }
 0x4ea   : > { %v1971_v34 = vmul.f32 0.35355338, %v1810_v32  ;;  %v3458_v35 = vpop.f32.mrf.mxu1 }
 0x4eb   : > { %v3453_v36 = vpop.f32.mrf.mxu0  ;;  %v1980_v37 = vsel %vm635_vm4, %v1972_v33, -inf }
 0x4ec   : > { %1981 = vmax.xlane.f32.xlu0 %v1980_v37  ;;  %v1977_v38 = vsel %vm635_vm4, %v1971_v34, -inf }
 0x4ed   : > { %1978 = vmax.xlane.f32.xlu1 %v1977_v38  ;;  %v1966_v39 = vpop.f32.mrf.mxu0 }
 0x4ee   : > { %v1973_v40 = vmul.f32 0.35355338, %v1966_v39 }
 0x4ef   : > { %v3463_v41 = vpop.f32.mrf.mxu0 }
 0x4f0   : > { %v1983_v42 = vsel %vm635_vm4, %v1973_v40, -inf }
 0x4f1   : > { %1984 = vmax.xlane.f32.xlu0 %v1983_v42 }
 0x4fe   : > { %2404 = vrot.lane.b32.xlu1 %v3723_v24, %s3645_s15 }
 0x502   : > { %2562 = vrot.lane.b32.xlu1 %v3729_v26, %s3644_s14 }
 0x506   : > { %2560 = vrot.lane.b32.xlu1 %v3729_v26, %s3645_s15 }
 0x507   : > { %2326 = vrot.lane.b32.xlu0 %v3716_v20, %s3645_s15 }
 0x50a   : > { %2678 = vrot.lane.b32.xlu1 %v3716_v20, %s3646_s16 }
 0x50b   : > { %2484 = vrot.lane.b32.xlu0 %v3719_v23, %s3644_s14 }
 0x50f   : > { %2482 = vrot.lane.b32.xlu0 %v3719_v23, %s3645_s15 }
 0x571   : > { %v1976_v46 = vpop.xlane.xlu0 %1975 }
 0x572   : > { %v1986_v48 = vsub.f32 %v1970_v27, %v1976_v46 }
 0x574   : > { %v1990_v49 = vmul.f32 1.442695, %v1986_v48 }
 0x575   : > { %v1982_v50 = vpop.xlane.xlu0 %1981 }
 0x576   : > { %3577 = vpow2.f32 %v1990_v49  ;;  %v1988_v51 = vsub.f32 %v1972_v33, %v1982_v50  ;;  %v1979_v52 = vpop.xlane.xlu1 %1978  ;;  %v1333_v50 = vsel %vm635_vm4, %v3878_v63, 0.0 }
 0x577   : > { %v1987_v53 = vsub.f32 %v1971_v34, %v1979_v52 }
 0x578   : > { %v1994_v54 = vmul.f32 1.442695, %v1988_v51  ;;  %v1330_v51 = vsel %vm635_vm4, %v3868_v59, 0.0 }
 0x579   : > { %v1992_v55 = vmul.f32 1.442695, %v1987_v53 }
 0x57a   : > { %3579 = vpow2.f32 %v1994_v54  ;;  %v1985_v20 = vpop.xlane.xlu0 %1984  ;;  %v2405_v58 = vpop.permute.xlu1 %2404 }
 0x57b   : > { %3581 = vpow2.f32 %v1992_v55  ;;  %v1989_v56 = vsub.f32 %v1973_v40, %v1985_v20 }
 0x57d   : > { %v1996_v57 = vmul.f32 1.442695, %v1989_v56 }
 0x57e   : > { %v2327_v61 = vpop.permute.xlu0 %2326  ;;  %v2563_v0 = vpop.permute.xlu1 %2562 }
 0x57f   : > { %3583 = vpow2.f32 %v1996_v57 }
 0x582   : > { %v2485_v8 = vpop.permute.xlu0 %2484  ;;  %v2561_v9 = vpop.permute.xlu1 %2560 }
 0x583   : > { %v3942_v60 = vpop.eup %3577 }
 0x584   : > { %3467 = vmatmul.mubr.msk.f32.vlgmr.msra.gmra.mxu1 %vm674_vm5, %v3942_v60  ;;  %v1998_v52 = vsel %vm635_vm4, %v3942_v60, 0.0 }
 0x585   : > { %3475 = vmatpush3.msk.msra.mxu1 %vm678_vm3, %v2165_v43  ;;  %3476 = vmatprep.mubr.msk.f32.mxu1 %vm3634_vm0, %v3633_v2 }
 0x586   : > { %3484 = vmatprep.subr.mxu1 %v3633_v2  ;;  %v2483_v17 = vpop.permute.xlu0 %2482  ;;  %v2679_v19 = vpop.permute.xlu1 %2678 }
 0x587   : > { %v3950_v1 = vpop.eup %3579 }
 0x588   : > { %v3952_v6 = vpop.eup %3581  ;;  %3477 = vmatmul.mubr.msk.f32.vlgmr.msra.gmra.mxu1 %vm674_vm5, %v3950_v1 }
 0x589   : > { %3472 = vmatmul.mubr.msk.f32.vlgmr.msra.gmra.mxu0 %vm674_vm5, %v3952_v6  ;;  %3485 = vmatpush3.xpose.msk.msra.mxu1 %vm328_vm2, %v2329_v45  ;;  %v2001_v59 = vsel %vm635_vm4, %v3952_v6, 0.0 }
 0x58a   : > { %3480 = vmatpush3.msk.msra.mxu0 %vm678_vm3, %v2242_v44  ;;  %3481 = vmatprep.mubr.msk.f32.mxu0 %vm3634_vm0, %v3633_v2 }
 0x58b   : > { %3486 = vmatprep.mubr.msk.f32.mxu1 %vm3634_vm0, %v3633_v2  ;;  %3489 = vmatprep.subr.mxu0 %v3633_v2 }
 0x58c   : > { %v3965_v12 = vpop.eup %3583  ;;  %3494 = vmatprep.subr.mxu1 %v3633_v2  ;;  %3487 = vmatmul.mubr.msk.f32.vlgmr.msra.gmra.mxu1 %vm328_vm2, %v2327_v61 }
 0x58d   : > { %3482 = vmatmul.mubr.msk.f32.vlgmr.msra.gmra.mxu0 %vm674_vm5, %v3965_v12  ;;  %3495 = vmatpush3.xpose.msk.msra.mxu1 %vm328_vm2, %v2485_v8  ;;  %v2007_v63 = vsel %vm635_vm4, %v3965_v12, 0.0 }
 0x58e   : > { %3490 = vmatpush3.xpose.msk.msra.mxu0 %vm328_vm2, %v2407_v47  ;;  %3491 = vmatprep.mubr.msk.f32.mxu0 %vm3634_vm0, %v3633_v2 }
 0x58f   : > { %3496 = vmatprep.mubr.msk.f32.mxu1 %vm3634_vm0, %v3633_v2  ;;  %3499 = vmatprep.subr.mxu0 %v3633_v2 }
 0x590   : > { %3504 = vmatprep.subr.mxu1 %v3633_v2  ;;  %3497 = vmatmul.mubr.msk.f32.vlgmr.msra.gmra.mxu1 %vm328_vm2, %v2483_v17 }
 0x591   : > { %3492 = vmatmul.mubr.msk.f32.vlgmr.msra.gmra.mxu0 %vm328_vm2, %v2405_v58  ;;  %3505 = vmatpush3.msk.msra.mxu1 %vm678_vm3, %v2679_v19 }
 0x592   : > { %3500 = vmatpush3.xpose.msk.msra.mxu0 %vm328_vm2, %v2563_v0  ;;  %3501 = vmatprep.mubr.msk.f32.mxu0 %vm3634_vm0, %v3633_v2 }
 0x593   : > { %3509 = vmatprep.subr.mxu0 %v3633_v2  ;;  %3506 = vmatprep.mubr.msk.f32.mxu1 %vm3634_vm0, %v3633_v2 }
 0x594   : > { %3514 = vmatprep.subr.mxu1 %v3633_v2 }
 0x595   : > { %3502 = vmatmul.mubr.msk.f32.vlgmr.msra.gmra.mxu0 %vm328_vm2, %v2561_v9 }
 0x596   : > { %3511 = vmatprep.mubr.msk.f32.mxu0 %vm3634_vm0, %v3633_v2 }
 0x644   : > { %v3992_v22 = vpop.f32.mrf.mxu1 }
 0x646   : > { %v3468_v27 = vpop.f32.mrf.mxu1 }
 0x648   : > { %v3994_v28 = vpop.f32.mrf.mxu1 }
 0x649   : > { %v3996_v29 = vpop.f32.mrf.mxu0 }
 0x64a   : > { %v3478_v30 = vpop.f32.mrf.mxu1 }
 0x64b   : > { %v3473_v31 = vpop.f32.mrf.mxu0 }
 0x64c   : > { %v2400_v32 = vpop.f32.mrf.mxu1 }
 0x64d   : > { %v3998_v33 = vpop.f32.mrf.mxu0  ;;  %v2638_v34 = vmul.f32 0.35355338, %v2400_v32  ;;  %v660_v32 = vsel %vm635_vm4, %v3788_v3, 0.0 }
 0x64e   : > { %v3488_v35 = vpop.f32.mrf.mxu1 }
 0x64f   : > { %v3483_v36 = vpop.f32.mrf.mxu0  ;;  %v2642_v37 = vsel %vm635_vm4, %v2638_v34, -inf  ;;  %v666_v35 = vsel %vm635_vm4, %v3804_v7, 0.0 }
 0x650   : > { %2643 = vmax.xlane.f32.xlu0 %v2642_v37  ;;  %v2556_v38 = vpop.f32.mrf.mxu1  ;;  %v663_v36 = vsel %vm635_vm4, %v3796_v5, 0.0  ;;  %v669_v37 = vsel %vm635_vm4, %v3812_v10, 0.0 }
 0x651   : > { %v2478_v39 = vpop.f32.mrf.mxu0  ;;  %v2640_v40 = vmul.f32 0.35355338, %v2556_v38 }
 0x652   : > { %v2639_v41 = vmul.f32 0.35355338, %v2478_v39  ;;  %v3498_v42 = vpop.f32.mrf.mxu1 }
 0x653   : > { %v3493_v43 = vpop.f32.mrf.mxu0  ;;  %v2648_v44 = vsel %vm635_vm4, %v2640_v40, -inf }
 0x654   : > { %2649 = vmax.xlane.f32.xlu0 %v2648_v44  ;;  %v2645_v45 = vsel %vm635_vm4, %v2639_v41, -inf }
 0x655   : > { %2646 = vmax.xlane.f32.xlu1 %v2645_v45  ;;  %v2634_v46 = vpop.f32.mrf.mxu0 }
 0x656   : > { %v2641_v47 = vmul.f32 0.35355338, %v2634_v46 }
 0x657   : > { %v3503_v48 = vpop.f32.mrf.mxu0 }
 0x658   : > { %v2651_v49 = vsel %vm635_vm4, %v2641_v47, -inf }
 0x659   : > { %2652 = vmax.xlane.f32.xlu0 %v2651_v49 }
 0x666   : > { %2832 = vrot.lane.b32.xlu1 %v3719_v23, %s3646_s16  ;;  %v1336_v23 = vsel %vm635_vm4, %v3876_v62, 0.0 }
 0x66a   : > { %2909 = vrot.lane.b32.xlu1 %v3729_v26, %s3646_s16  ;;  %v2004_v26 = vsel %vm635_vm4, %v3950_v1, 0.0 }
 0x66f   : > { %2755 = vrot.lane.b32.xlu0 %v3723_v24, %s3646_s16  ;;  %v1339_v24 = vsel %vm635_vm4, %v3888_v4, 0.0 }
 0x68e   : > { %1334 = vadd.xlane.f32.xlu1 %v1333_v50  ;;  %1331 = vadd.xlane.f32.xlu0 %v1330_v51 }
 0x692   : > { %1999 = vadd.xlane.f32.xlu1 %v1998_v52  ;;  %1337 = vadd.xlane.f32.xlu0 %v1336_v23 }
 0x696   : > { %2005 = vadd.xlane.f32.xlu1 %v2004_v26  ;;  %1340 = vadd.xlane.f32.xlu0 %v1339_v24 }
 0x69a   : > { %2002 = vadd.xlane.f32.xlu0 %v2001_v59 }
 0x69e   : > { %2008 = vadd.xlane.f32.xlu0 %v2007_v63 }
 0x6d9   : > { %v2644_v53 = vpop.xlane.xlu0 %2643 }
 0x6da   : > { %v2654_v62 = vsub.f32 %v2638_v34, %v2644_v53 }
 0x6dc   : > { %v2658_v54 = vmul.f32 1.442695, %v2654_v62 }
 0x6dd   : > { %v2650_v55 = vpop.xlane.xlu0 %2649 }
 0x6de   : > { %3585 = vpow2.f32 %v2658_v54  ;;  %v2656_v20 = vsub.f32 %v2640_v40, %v2650_v55  ;;  %v2647_v56 = vpop.xlane.xlu1 %2646 }
 0x6df   : > { %v2655_v57 = vsub.f32 %v2639_v41, %v2647_v56 }
 0x6e0   : > { %v2662_v58 = vmul.f32 1.442695, %v2656_v20 }
 0x6e1   : > { %v2660_v4 = vmul.f32 1.442695, %v2655_v57 }
 0x6e2   : > { %3587 = vpow2.f32 %v2662_v58  ;;  %v2653_v60 = vpop.xlane.xlu0 %2652  ;;  %v2833_v8 = vpop.permute.xlu1 %2832 }
 0x6e3   : > { %3589 = vpow2.f32 %v2660_v4  ;;  %v2657_v61 = vsub.f32 %v2641_v47, %v2653_v60 }
 0x6e5   : > { %v2664_v0 = vmul.f32 1.442695, %v2657_v61 }
 0x6e6   : > { %v2756_v1 = vpop.permute.xlu0 %2755  ;;  %v2910_v27 = vpop.permute.xlu1 %2909 }
 0x6e7   : > { %3591 = vpow2.f32 %v2664_v0  ;;  %3510 = vmatpush3.msk.msra.mxu0 %vm678_vm3, %v2756_v1 }
 0x6e8   : > { %3519 = vmatprep.subr.mxu0 %v3633_v2 }
 0x6eb   : > { %v3586_v6 = vpop.eup %3585 }
 0x6ec   : > { %3507 = vmatmul.mubr.msk.f32.vlgmr.msra.gmra.mxu1 %vm674_vm5, %v3586_v6  ;;  %v2666_v9 = vsel %vm635_vm4, %v3586_v6, 0.0 }
 0x6ed   : > { %3515 = vmatpush3.msk.msra.mxu1 %vm678_vm3, %v2833_v8  ;;  %2667 = vadd.xlane.f32.xlu1 %v2666_v9 }
 0x6ee   : > { %3516 = vmatprep.mubr.msk.f32.mxu1 %vm3634_vm0, %v3633_v2  ;;  %3524 = vmatprep.subr.bf16.mxu1 %v3633_v2 }
 0x6ef   : > { %v3588_v12 = vpop.eup %3587 }
 0x6f0   : > { %v3590_v17 = vpop.eup %3589  ;;  %3517 = vmatmul.mubr.msk.f32.vlgmr.msra.gmra.mxu1 %vm674_vm5, %v3588_v12  ;;  %v2672_v19 = vsel %vm635_vm4, %v3588_v12, 0.0 }
 0x6f1   : > { %3512 = vmatmul.mubr.msk.f32.vlgmr.msra.gmra.mxu0 %vm674_vm5, %v3590_v17  ;;  %2673 = vadd.xlane.f32.xlu1 %v2672_v19  ;;  %v2669_v30 = vsel %vm635_vm4, %v3590_v17, 0.0 }
 0x6f2   : > { %3520 = vmatpush3.msk.msra.mxu0 %vm678_vm3, %v2910_v27  ;;  %2670 = vadd.xlane.f32.xlu0 %v2669_v30 }
 0x6f3   : > { %3521 = vmatprep.mubr.msk.f32.mxu0 %vm3634_vm0, %v3633_v2  ;;  %3528 = vmatprep.mubr.msk.bf16.mxu1 %vm3634_vm0, %v3633_v2 }
 0x6f4   : > { %v3592_v31 = vpop.eup %3591 }
 0x6f5   : > { %3522 = vmatmul.mubr.msk.f32.vlgmr.msra.gmra.mxu0 %vm674_vm5, %v3592_v31  ;;  %661 = vadd.xlane.f32.xlu1 %v660_v32  ;;  %v2675_v34 = vsel %vm635_vm4, %v3592_v31, 0.0 }
 0x6f6   : > { %2676 = vadd.xlane.f32.xlu0 %v2675_v34 }
 0x6f9   : > { %667 = vadd.xlane.f32.xlu1 %v666_v35 }
 0x6fa   : > { %664 = vadd.xlane.f32.xlu0 %v663_v36 }
 0x6fe   : > { %670 = vadd.xlane.f32.xlu0 %v669_v37 }
 0x717   : > { %v1335_v38 = vpop.xlane.xlu1 %1334  ;;  %v1332_v3 = vpop.xlane.xlu0 %1331 }
 0x718   : > { %3593 = vrcp.f32 %v1335_v38 }
 0x719   : > { %3595 = vrcp.f32 %v1332_v3 }
 0x71b   : > { %v2000_v39 = vpop.xlane.xlu1 %1999  ;;  %v1338_v40 = vpop.xlane.xlu0 %1337 }
 0x71c   : > { %3597 = vrcp.f32 %v2000_v39 }
 0x71d   : > { %3599 = vrcp.f32 %v1338_v40 }
 0x71f   : > { %v2006_v41 = vpop.xlane.xlu1 %2005  ;;  %v1341_v42 = vpop.xlane.xlu0 %1340 }
 0x720   : > { %3601 = vrcp.f32 %v2006_v41 }
 0x721   : > { %3603 = vrcp.f32 %v1341_v42 }
 0x723   : > { %v2003_v7 = vpop.xlane.xlu0 %2002 }
 0x724   : > { %3605 = vrcp.f32 %v2003_v7 }
 0x725   : > { %v3594_v5 = vpop.eup %3593 }
 0x726   : > { %v3596_v43 = vpop.eup %3595  ;;  %v1653_v44 = vmul.f32 %v3594_v5, %v3924_v15 }
 0x727   : > { %v2009_v10 = vpop.xlane.xlu0 %2008  ;;  %v1651_v45 = vmul.f32 %v3596_v43, %v3920_v11 }
 0x728   : > { %3607 = vrcp.f32 %v2009_v10  ;;  %3000 = vrot.lane.b32.xlu0 %v1653_v44, %s3647_s17 }
 0x729   : > { %v3598_v46 = vpop.eup %3597  ;;  %2998 = vrot.lane.b32.xlu1 %v1651_v45, %s3647_s17 }
 0x72a   : > { %v3600_v47 = vpop.eup %3599  ;;  %v2319_v48 = vmul.f32 %v3598_v46, %v3992_v22 }
 0x72b   : > { %v1655_v49 = vmul.f32 %v3600_v47, %v3922_v13 }
 0x72c   : > { %3014 = vrot.lane.b32.xlu0 %v2319_v48, %s3648_s19 }
 0x72d   : > { %v3602_v50 = vpop.eup %3601  ;;  %3002 = vrot.lane.b32.xlu1 %v1655_v49, %s3647_s17 }
 0x72e   : > { %v3604_v51 = vpop.eup %3603  ;;  %v2323_v15 = vmul.f32 %v3602_v50, %v3994_v28 }
 0x72f   : > { %v1657_v52 = vmul.f32 %v3604_v51, %v3926_v25  ;;  %v3559_v25 = vld [vmem:[%s4091_s3 + $0x8] sm:$0xff]  }
 0x730   : > { %3018 = vrot.lane.b32.xlu0 %v2323_v15, %s3648_s19  ;;  %3525 = vmatpush3.bf16.msra.mxu1 %v3559_v25 }
 0x731   : > { %v3606_v11 = vpop.eup %3605  ;;  %3004 = vrot.lane.b32.xlu1 %v1657_v52, %s3647_s17  ;;  %3526 = vmatprep.subr.bf16.mxu1 %v3633_v2 }
 0x732   : > { %v2321_v23 = vmul.f32 %v3606_v11, %v3996_v29 }
 0x735   : > { %v3608_v26 = vpop.eup %3607  ;;  %3016 = vrot.lane.b32.xlu1 %v2321_v23, %s3648_s19  ;;  %v3280_v23 = vld [vmem:[%s4092_s4] ss:$0 sm:$0xff] }
 0x736   : > { %v2325_v22 = vmul.f32 %v3608_v26, %v3998_v33  ;;  %v3560_v33 = vld [vmem:[%s4091_s3] sm:$0xff]  }
 0x737   : > { %3527 = vmatpush3.bf16.msra.mxu1 %v3560_v33 }
 0x739   : > { %3020 = vrot.lane.b32.xlu1 %v2325_v22, %s3648_s19 }
 0x776   : > { %v2668_v13 = vpop.xlane.xlu1 %2667 }
 0x777   : > { %3609 = vrcp.f32 %v2668_v13 }
 0x77a   : > { %v2674_v59 = vpop.xlane.xlu1 %2673 }
 0x77b   : > { %v2671_v24 = vpop.xlane.xlu0 %2670  ;;  %3611 = vrcp.f32 %v2674_v59 }
 0x77c   : > { %3613 = vrcp.f32 %v2671_v24 }
 0x77e   : > { %v662_v6 = vpop.xlane.xlu1 %661 }
 0x77f   : > { %v2677_v63 = vpop.xlane.xlu0 %2676 }
 0x780   : > { %3615 = vrcp.f32 %v2677_v63 }
 0x781   : > { %3617 = vrcp.f32 %v662_v6 }
 0x782   : > { %v668_v8 = vpop.xlane.xlu1 %667 }
 0x783   : > { %v665_v9 = vpop.xlane.xlu0 %664 }
 0x784   : > { %v3610_v28 = vpop.eup %3609  ;;  %3619 = vrcp.f32 %v665_v9 }
 0x785   : > { %3621 = vrcp.f32 %v668_v8 }
 0x787   : > { %v671_v17 = vpop.xlane.xlu0 %670 }
 0x788   : > { %v3612_v54 = vpop.eup %3611  ;;  %3623 = vrcp.f32 %v671_v17 }
 0x789   : > { %v3614_v20 = vpop.eup %3613 }
 0x78d   : > { %v3616_v2 = vpop.eup %3615 }
 0x78e   : > { %v3618_v35 = vpop.eup %3617 }
 0x78f   : > { %v983_v42 = vmul.f32 %v3618_v35, %v3840_v14 }
 0x791   : > { %v3620_v36 = vpop.eup %3619 }
 0x792   : > { %v3622_v3 = vpop.eup %3621  ;;  %v985_v40 = vmul.f32 %v3620_v36, %v3842_v16 }
 0x793   : > { %v987_v5 = vmul.f32 %v3622_v3, %v3844_v18 }
 0x795   : > { %v3624_v39 = vpop.eup %3623 }
 0x796   : > { %v989_v43 = vmul.f32 %v3624_v39, %v3846_v21 }
 0x79a   : > { %v3001_v27 = vpop.permute.xlu0 %3000 }
 0x79b   : > { %v2999_v12 = vpop.permute.xlu1 %2998  ;;  %v3043_v7 = vsel %vm328_vm2, %v985_v40, %v3001_v27 }
 0x79c   : > { %v3042_v45 = vsel %vm328_vm2, %v983_v42, %v2999_v12 }
 0x79e   : > { %v3015_v31 = vpop.permute.xlu0 %3014 }
 0x79f   : > { %v3003_v19 = vpop.permute.xlu1 %3002  ;;  %v3047_v48 = vsel %vm3046_vm6, %v3042_v45, %v3015_v31 }
 0x7a0   : > { %v3044_v46 = vsel %vm328_vm2, %v987_v5, %v3003_v19 }
 0x7a2   : > { %v3019_v34 = vpop.permute.xlu0 %3018 }
 0x7a3   : > { %v3005_v30 = vpop.permute.xlu1 %3004  ;;  %v3049_v49 = vsel %vm3046_vm6, %v3044_v46, %v3019_v34 }
 0x7a4   : > { %v3045_v47 = vsel %vm328_vm2, %v989_v43, %v3005_v30 }
 0x7a7   : > { %v3017_v32 = vpop.permute.xlu1 %3016 }
 0x7a8   : > { %v3048_v44 = vsel %vm3046_vm6, %v3043_v7, %v3017_v32 }
 0x7ab   : > { %v3021_v37 = vpop.permute.xlu1 %3020 }
 0x7ac   : > { %v2751_v29 = vpop.f32.mrf.mxu1  ;;  %v3050_v14 = vsel %vm3046_vm6, %v3045_v47, %v3021_v37 }
 0x7ad   : > { %v2987_v53 = vmul.f32 %v3610_v28, %v2751_v29 }
 0x7ae   : > { %v3508_v62 = vpop.f32.mrf.mxu1 }
 0x7af   : > { %3030 = vrot.lane.b32.xlu0 %v2987_v53, %s3649_s26 }
 0x7b0   : > { %v2905_v55 = vpop.f32.mrf.mxu1 }
 0x7b1   : > { %v2828_v56 = vpop.f32.mrf.mxu0  ;;  %v2991_v57 = vmul.f32 %v3612_v54, %v2905_v55 }
 0x7b2   : > { %v2989_v58 = vmul.f32 %v3614_v20, %v2828_v56  ;;  %v3518_v4 = vpop.f32.mrf.mxu1 }
 0x7b3   : > { %v3513_v60 = vpop.f32.mrf.mxu0  ;;  %3034 = vrot.lane.b32.xlu0 %v2991_v57, %s3649_s26 }
 0x7b4   : > { %3032 = vrot.lane.b32.xlu1 %v2989_v58, %s3649_s26 }
 0x7b5   : > { %v2982_v61 = vpop.f32.mrf.mxu0 }
 0x7b6   : > { %v2993_v0 = vmul.f32 %v3616_v2, %v2982_v61 }
 0x7b7   : > { %v3523_v1 = vpop.f32.mrf.mxu0 }
 0x7b8   : > { %3036 = vrot.lane.b32.xlu1 %v2993_v0, %s3649_s26 }
 0x821   : > { %v3031_v38 = vpop.permute.xlu0 %3030 }
 0x822   : > { %v3052_v51 = vsel %vm3051_vm7, %v3047_v48, %v3031_v38 }
 0x825   : > { %v3035_v10 = vpop.permute.xlu0 %3034 }
 0x826   : > { %v3033_v41 = vpop.permute.xlu1 %3032  ;;  %v3054_v15 = vsel %vm3051_vm7, %v3049_v49, %v3035_v10 }
 0x827   : > { %v3053_v16 = vsel %vm3051_vm7, %v3048_v44, %v3033_v41 }
 0x828   : > { %v3060_v52 = vcombine.low %v3052_v51, %v3053_v16 }
 0x82a   : > { %v3037_v50 = vpop.permute.xlu1 %3036 }
 0x82b   : > { %v3055_v18 = vsel %vm3051_vm7, %v3050_v14, %v3037_v50 }
 0x82c   : > { %v3061_v21 = vcombine.low %v3054_v15, %v3055_v18 }
 0x82e   : > { %v3064_v11 = vpack.c.bf16 %v3061_v21, %v3060_v52 }
 0x830   : > { %3529 = vmatmul.mubr.msk.bf16.vlgmr.msra.gmra.mxu1 %vm277_vm1, %v3064_v11 }
 0x8f0   : > { %v3125_v26 = vpop.f32.mrf.mxu1 }
 0x8f1   : > { %v3126_v22 = vadd.f32 %v3280_v23, %v3125_v26 }
 0x8f2   : > { %v3530_v13 = vpop.f32.mrf.mxu1 }
 0x8f3   : > { %v3134_v24 = vcombine.high %v3126_v22, %v3126_v22  ;;  %v3138_v59 = vpack.c.bf16 %v3126_v22, %v3126_v22 }
 0x8f4   : > { %v3128_v63 = vpop.f32.mrf.mxu1 }
 0x8f5   : > { %v3139_v25 = vpack.c.bf16 %v3134_v24, %v3134_v24  ;;  %3143 = vst.msk [vmem:[%s226_s6] sm:$0x3] %vm3142_vm8, %v3138_v59  ;;  %v3129_v28 = vadd.f32 %v3280_v23, %v3128_v63 }
 0x8f6   : > { %v3531_v29 = vpop.f32.mrf.mxu1 }
 0x8f7   : > { %3144 = vst.msk [vmem:[%s226_s6 + $0x2] sm:$0x3] %vm3142_vm8, %v3139_v25  ;;  %v3135_v33 = vcombine.high %v3129_v28, %v3129_v28  ;;  %v3140_v53 = vpack.c.bf16 %v3129_v28, %v3129_v28 }
 0x8f9   : > { %v3141_v62 = vpack.c.bf16 %v3135_v33, %v3135_v33  ;;  %3145 = vst.msk [vmem:[%s226_s6 + $0x4] sm:$0x3] %vm3142_vm8, %v3140_v53 }
 0x8fb   : > { %3146 = vst.msk [vmem:[%s226_s6 + $0x6] sm:$0x3] %vm3142_vm8, %v3141_v62 }
 0x8fc PF: > { %s15_s18 = sadd.s32 1, %s3631_s18  }
 0x8fd   : > { %p12_p4 = scmp.ge.s32.totalorder %s15_s18, 4  }
 0x8ff   :  { %14 = sbr.rel (!%p12_p4) target bundleno = 1 (0x1), region = 70 }

</bundles_post_ra>
